<compile_context>
chip_gen: v6e
topology: v6e:2x2x1
jax: 0.10.0
libtpu: 0.0.40
codegen_flags: <defaults>
</compile_context>

<pallas_src>
import functools

import jax
import jax.numpy as jnp
from jax.experimental import pallas as pl
from jax.experimental.pallas import tpu as pltpu

EPS = 1e-5            # PyTorch BatchNorm default eps
LANE = 128            # TPU lane width -> channel padding target


def _round_up(x, m):
    return (x + m - 1) // m * m


@functools.lru_cache(maxsize=None)
def _vmem_limit_bytes():
    """Per-generation scoped-VMEM budget, leaving headroom below physical."""
    phys = 128 * 1024 * 1024
    try:
        info = pltpu.get_tpu_info()
        phys = int(getattr(info, "vmem_capacity_bytes", phys) or phys)
    except Exception:
        pass
    if phys <= 64 * 1024 * 1024:          # 64 MiB / TensorCore parts (v7x)
        return 48 * 1024 * 1024
    return 100 * 1024 * 1024              # 128 MiB parts (v5e / v6e)


def _compiler_params(dims):
    return pltpu.CompilerParams(dimension_semantics=dims,
                                vmem_limit_bytes=_vmem_limit_bytes())


def _col_mask(hw2, w2, W):
    """(hw2, 1) bool mask of valid columns of a width-extended plane."""
    col = jax.lax.broadcasted_iota(jnp.int32, (hw2, 1), 0)
    return (col % w2) < W


# ----------------------------- Pallas kernels ------------------------------

def _conv_tap_kernel(x_ref, w_ref, y_ref, stats_ref, acc_ref, *,
                     ks, dil, w2, W, hw2):
    """One output depth-plane of a ks^3 conv (stride 1), tap-decomposed.

    x_ref : (Rp, Cin)              bf16  row-flattened padded plane d + kd*dil
    w_ref : (ks, ks*ks, Cin, Cpad) bf16  full weight, VMEM-resident
    y_ref : (hw2, Cpad)            bf16  pre-BN conv output (width-extended)
    stats_ref : (2, Cpad)          f32   per-plane (sum, sumsq), valid voxels
    acc_ref : VMEM (hw2, Cpad)     f32   accumulator across the kd grid axis
    """
    kd = pl.program_id(2)

    # ks*ks in-plane taps as contiguous row-slices of the flattened plane,
    # value-chained so accumulation stays in the MXU result path / vregs
    # (no per-tap f32 VMEM read-modify-write).
    acc = None
    for kh in range(ks):
        for kw in range(ks):
            off = (kh * w2 + kw) * dil
            xs = x_ref[off:off + hw2, :]                       # (hw2, Cin)
            d = jnp.dot(xs, w_ref[kd, kh * ks + kw],
                        preferred_element_type=jnp.float32)
            acc = d if acc is None else acc + d

    @pl.when(kd == 0)
    def _first():
        acc_ref[...] = acc            # assign: no zero-init store + reload

    @pl.when(kd != 0)
    def _rest():
        acc_ref[...] = acc_ref[...] + acc

    @pl.when(kd == ks - 1)
    def _finalize():
        tot = acc_ref[...]
        y_ref[...] = tot.astype(y_ref.dtype)                   # bf16 writeback
        m = _col_mask(hw2, w2, W).astype(jnp.float32)
        tm = tot * m
        stats_ref[0:1, :] = jnp.sum(tm, axis=0, keepdims=True)
        stats_ref[1:2, :] = jnp.sum(tm * tot, axis=0, keepdims=True)


def _pointwise_conv_kernel(x_ref, w_ref, y_ref, stats_ref, *, w2, W):
    """1x1x1 conv (downsample branch) + per-plane BN partial stats."""
    y = jnp.dot(x_ref[...], w_ref[...], preferred_element_type=jnp.float32)
    y_ref[...] = y.astype(y_ref.dtype)                          # bf16
    hw2 = y.shape[0]
    m = _col_mask(hw2, w2, W).astype(jnp.float32)
    ym = y * m
    stats_ref[0:1, :] = jnp.sum(ym, axis=0, keepdims=True)
    stats_ref[1:2, :] = jnp.sum(ym * y, axis=0, keepdims=True)


def _bn_relu_pad_kernel(y_ref, s_ref, b_ref, o_ref, *, p, w2, W, hw2, D):
    """z = relu(y*scale+shift), masked to valid voxels, written directly into
    the zero-padded, row-flattened plane layout the next conv consumes."""
    dp = pl.program_id(1)
    z = jnp.maximum(y_ref[...].astype(jnp.float32) * s_ref[...] + b_ref[...],
                    0.0)
    ok = _col_mask(hw2, w2, W)                                  # valid columns
    ok = jnp.logical_and(ok, jnp.logical_and(dp >= p, dp < D + p))
    z = jnp.where(ok, z, 0.0).astype(o_ref.dtype)

    off = p * (w2 + 1)                                          # leading pad rows
    rp, cpad = o_ref.shape
    if off > 0:
        o_ref[0:off, :] = jnp.zeros((off, cpad), o_ref.dtype)
    o_ref[off:off + hw2, :] = z
    tail = rp - off - hw2
    if tail > 0:
        o_ref[off + hw2:rp, :] = jnp.zeros((tail, cpad), o_ref.dtype)


def _bn_add_relu_kernel(y_ref, r_ref, sy_ref, by_ref, sr_ref, br_ref, o_ref):
    """out = relu(BN2(conv2) + BN_d(residual)); bf16 inputs, f32 math."""
    a = y_ref[...].astype(jnp.float32) * sy_ref[...] + by_ref[...]
    r = r_ref[...].astype(jnp.float32) * sr_ref[...] + br_ref[...]
    o_ref[...] = jnp.maximum(a + r, 0.0).astype(o_ref.dtype)


# --------------------------- pallas_call wrappers ---------------------------

def conv3d_tap(xflat, w_packed, *, ks, dil, H, W, cpad):
    """Tap-decomposed ks^3 conv, stride 1.

    xflat    : (N, Dp, Rp, Cin) bf16, Rp = (H+2p+1)*(W+4p), Dp = D+2p
    w_packed : (ks, ks*ks, Cin, Cpad) bf16
    Returns pre-BN output (N, D, H*w2, Cpad) bf16 and per-plane f32 stats.
    """
    N, Dp, Rp, Cin = xflat.shape
    p = dil * (ks // 2)
    D = Dp - 2 * p
    w2 = W + 4 * p
    hw2 = H * w2

    kern = functools.partial(_conv_tap_kernel, ks=ks, dil=dil, w2=w2, W=W,
                             hw2=hw2)
    return pl.pallas_call(
        kern,
        out_shape=(jax.ShapeDtypeStruct((N, D, hw2, cpad), jnp.bfloat16),
                   jax.ShapeDtypeStruct((N, D, 2, cpad), jnp.float32)),
        grid=(N, D, ks),
        in_specs=[
            # depth-tap shift handled by the index_map (no im2col in HBM)
            pl.BlockSpec((None, None, Rp, Cin),
                         lambda n, d, kd: (n, d + kd * dil, 0, 0)),
            # full weight, constant index_map -> resident in VMEM, one DMA
            pl.BlockSpec((ks, ks * ks, Cin, cpad),
                         lambda n, d, kd: (0, 0, 0, 0)),
        ],
        out_specs=(
            pl.BlockSpec((None, None, hw2, cpad), lambda n, d, kd: (n, d, 0, 0)),
            pl.BlockSpec((None, None, 2, cpad), lambda n, d, kd: (n, d, 0, 0)),
        ),
        scratch_shapes=[pltpu.VMEM((hw2, cpad), jnp.float32)],
        compiler_params=_compiler_params(("parallel", "parallel", "arbitrary")),
    )(xflat, w_packed)


def pointwise_conv(xext, w, *, W, w2, cpad):
    """1x1x1 conv on the width-extended flattened grid (bf16 out + stats)."""
    N, D, hw2, Cin = xext.shape
    kern = functools.partial(_pointwise_conv_kernel, w2=w2, W=W)
    return pl.pallas_call(
        kern,
        out_shape=(jax.ShapeDtypeStruct((N, D, hw2, cpad), jnp.bfloat16),
                   jax.ShapeDtypeStruct((N, D, 2, cpad), jnp.float32)),
        grid=(N, D),
        in_specs=[
            pl.BlockSpec((None, None, hw2, Cin), lambda n, d: (n, d, 0, 0)),
            pl.BlockSpec((Cin, cpad), lambda n, d: (0, 0)),    # resident W
        ],
        out_specs=(
            pl.BlockSpec((None, None, hw2, cpad), lambda n, d: (n, d, 0, 0)),
            pl.BlockSpec((None, None, 2, cpad), lambda n, d: (n, d, 0, 0)),
        ),
        compiler_params=_compiler_params(("parallel", "parallel")),
    )(xext, w)


def bn_relu_pad(y, scale, shift, *, p, w2, W):
    """Fused BN+ReLU that writes z1 straight into the zero-padded,
    row-flattened (N, D+2p, (H+2p+1)*w2, cpad) bf16 layout conv2 reads."""
    N, D, hw2, cpad = y.shape
    H = hw2 // w2
    Dp = D + 2 * p
    Rp = (H + 2 * p + 1) * w2
    kern = functools.partial(_bn_relu_pad_kernel, p=p, w2=w2, W=W, hw2=hw2,
                             D=D)
    return pl.pallas_call(
        kern,
        out_shape=jax.ShapeDtypeStruct((N, Dp, Rp, cpad), jnp.bfloat16),
        grid=(N, Dp),
        in_specs=[
            pl.BlockSpec((None, None, hw2, cpad),
                         lambda n, dp: (n, jnp.clip(dp - p, 0, D - 1), 0, 0)),
            pl.BlockSpec((1, cpad), lambda n, dp: (0, 0)),
            pl.BlockSpec((1, cpad), lambda n, dp: (0, 0)),
        ],
        out_specs=pl.BlockSpec((None, None, Rp, cpad),
                               lambda n, dp: (n, dp, 0, 0)),
        compiler_params=_compiler_params(("parallel", "parallel")),
    )(y, scale, shift)


def bn_add_relu(y, r, sy, by, sr, br, out_dtype):
    N, D, hw2, cpad = y.shape
    blk = pl.BlockSpec((None, None, hw2, cpad), lambda n, d: (n, d, 0, 0))
    vec = pl.BlockSpec((1, cpad), lambda n, d: (0, 0))
    return pl.pallas_call(
        _bn_add_relu_kernel,
        out_shape=jax.ShapeDtypeStruct((N, D, hw2, cpad), out_dtype),
        grid=(N, D),
        in_specs=[blk, blk, vec, vec, vec, vec],
        out_specs=blk,
        compiler_params=_compiler_params(("parallel", "parallel")),
    )(y, r, sy, by, sr, br)


# ------------------------------- JAX glue -----------------------------------

def _pad_and_flatten(x, ks, dil):
    """(N,D,H,W,C) -> (N, D+2p, (H+2p+1)*(W+4p), C).

    Spatial zero-padding, width extended by 2p extra columns + 1 safety row so
    every in-plane conv tap becomes a contiguous row offset of the flattened
    plane (garbage columns are masked downstream)."""
    p = dil * (ks // 2)
    N, D, H, W, C = x.shape
    xp = jnp.pad(x, ((0, 0), (p, p), (p, p + 1), (p, 3 * p), (0, 0)))
    return xp.reshape(N, D + 2 * p, (H + 2 * p + 1) * (W + 4 * p), C)


def _width_extend(x, w2):
    """(N,D,H,W,C) -> (N, D, H*w2, C) by zero right-padding the W axis."""
    N, D, H, W, C = x.shape
    xe = jnp.pad(x, ((0, 0), (0, 0), (0, 0), (0, w2 - W), (0, 0)))
    return xe.reshape(N, D, H * w2, C)


def _bn_scale_shift(stats, gamma_p, beta_p, count):
    """Finish two-pass training-mode BN: per-channel scale/shift from partials."""
    s = jnp.sum(stats[:, :, 0, :], axis=(0, 1))
    ss = jnp.sum(stats[:, :, 1, :], axis=(0, 1))
    mean = s / count
    var = jnp.maximum(ss / count - mean * mean, 0.0)     # biased var
    scale = gamma_p * jax.lax.rsqrt(var + EPS)
    shift = beta_p - mean * scale
    return scale[None, :], shift[None, :]


def _pack_conv_weight(w, cin_pad, cout_pad):
    ks, _, _, cin, cout = w.shape
    wp = jnp.zeros((ks, ks, ks, cin_pad, cout_pad), jnp.float32)
    wp = wp.at[:, :, :, :cin, :cout].set(w)
    return wp.reshape(ks, ks * ks, cin_pad, cout_pad).astype(jnp.bfloat16)


def _pad_vec(v, cpad):
    return jnp.zeros((cpad,), jnp.float32).at[:v.shape[0]].set(v)


def init_params(key, inc, outc, ks):
    k1, k2, k3 = jax.random.split(key, 3)

    def kaiming(k, shape, fan_in):
        return jax.random.normal(k, shape, jnp.float32) * (2.0 / fan_in) ** 0.5

    return dict(
        w1=kaiming(k1, (ks, ks, ks, inc, outc), ks ** 3 * inc),
        g1=jnp.ones((outc,), jnp.float32), b1=jnp.zeros((outc,), jnp.float32),
        w2=kaiming(k2, (ks, ks, ks, outc, outc), ks ** 3 * outc),
        g2=jnp.ones((outc,), jnp.float32), b2=jnp.zeros((outc,), jnp.float32),
        wd=kaiming(k3, (inc, outc), inc),
        gd=jnp.ones((outc,), jnp.float32), bd=jnp.zeros((outc,), jnp.float32),
    )


def residual_block_forward(x_ncdhw, params, *, inc, outc, ks=3, stride=1,
                           dilation=1):
    if stride != 1:
        # TODO(synk): strided sparse-conv coordinate downsampling not
        # implemented in the Pallas path.
        raise NotImplementedError("stride != 1 not supported")
    assert ks % 2 == 1

    N, C, D, H, W = x_ncdhw.shape
    assert C == inc
    p = dilation * (ks // 2)
    w2 = W + 4 * p
    cpad = _round_up(outc, LANE)
    count = jnp.float32(N * D * H * W)

    x = jnp.transpose(x_ncdhw, (0, 2, 3, 4, 1))              # NDHWC f32
    x_bf = x.astype(jnp.bfloat16)                            # matmul operand

    g1 = _pad_vec(params["g1"], cpad); b1 = _pad_vec(params["b1"], cpad)
    g2 = _pad_vec(params["g2"], cpad); b2 = _pad_vec(params["b2"], cpad)

    # ---- conv1 (tap-decomposed) + partial BN stats ----
    w1p = _pack_conv_weight(params["w1"], inc, cpad)
    y1, st1 = conv3d_tap(_pad_and_flatten(x_bf, ks, dilation), w1p,
                         ks=ks, dil=dilation, H=H, W=W, cpad=cpad)
    s1, sh1 = _bn_scale_shift(st1, g1, b1, count)

    # ---- fused BN1 + ReLU, written straight into conv2's padded layout ----
    z1pad = bn_relu_pad(y1, s1, sh1, p=p, w2=w2, W=W)        # (N,Dp,Rp,cpad) bf16

    # ---- conv2 (tap-decomposed, stride 1) + partial BN stats ----
    w2p = _pack_conv_weight(params["w2"], cpad, cpad)
    y2, st2 = conv3d_tap(z1pad, w2p, ks=ks, dil=dilation, H=H, W=W, cpad=cpad)
    s2, sh2 = _bn_scale_shift(st2, g2, b2, count)

    # ---- residual branch ----
    if inc == outc:
        # TODO(synk): bn_add_relu could read the original NDHWC x directly
        # (custom index math) instead of this bf16 layout copy.
        r = _width_extend(x_bf, w2)                          # (N,D,hw2,inc) bf16
        r = jnp.pad(r, ((0, 0), (0, 0), (0, 0), (0, cpad - inc)))
        sr = jnp.ones((1, cpad), jnp.float32)
        br = jnp.zeros((1, cpad), jnp.float32)
    else:
        wdp = jnp.zeros((inc, cpad), jnp.float32).at[:, :outc].set(params["wd"])
        yd, std = pointwise_conv(_width_extend(x_bf, w2),
                                 wdp.astype(jnp.bfloat16),
                                 W=W, w2=w2, cpad=cpad)
        gd = _pad_vec(params["gd"], cpad); bd = _pad_vec(params["bd"], cpad)
        sr, br = _bn_scale_shift(std, gd, bd, count)
        r = yd

    # ---- fused: relu(BN2(conv2) + BN_d(residual)) ----
    out = bn_add_relu(y2, r, s2, sh2, sr, br, jnp.float32)
    out = out.reshape(N, D, H, w2, cpad)[:, :, :, :W, :outc]
    return jnp.transpose(out, (0, 4, 1, 2, 3))               # NCDHW


# --------------------------- pure-JAX reference ------------------------------

def reference_forward(x_ncdhw, params, *, inc, outc, ks=3, dilation=1):
    f32 = jnp.float32
    bf = lambda a: a.astype(jnp.bfloat16).astype(f32)   # match kernel rounding
    x = jnp.transpose(x_ncdhw, (0, 2, 3, 4, 1)).astype(f32)

    def conv(inp, w):
        return jax.lax.conv_general_dilated(
            bf(inp), bf(w), window_strides=(1, 1, 1), padding="SAME",
            rhs_dilation=(dilation,) * 3,
            dimension_numbers=("NDHWC", "DHWIO", "NDHWC"),
            preferred_element_type=f32)

    def bn(y, g, b):
        mean = jnp.mean(y, axis=(0, 1, 2, 3), keepdims=True)
        var = jnp.mean(jnp.square(y - mean), axis=(0, 1, 2, 3), keepdims=True)
        return (y - mean) * jax.lax.rsqrt(var + EPS) * g + b

    z1 = jnp.maximum(bn(conv(x, params["w1"]), params["g1"], params["b1"]), 0.0)
    h2 = bn(conv(z1, params["w2"]), params["g2"], params["b2"])
    if inc == outc:
        r = x
    else:
        wd = params["wd"].reshape(1, 1, 1, inc, outc)
        r = bn(conv(x, wd), params["gd"], params["bd"])
    out = jnp.maximum(h2 + r, 0.0)
    return jnp.transpose(out, (0, 4, 1, 2, 3))


# --------------------------------- demo --------------------------------------

if __name__ == "__main__":
    key = jax.random.PRNGKey(0)
    ks, stride, dilation = 3, 1, 1

    configs = [
        dict(N=2, inc=4, outc=8, S=8),     # downsample (1x1 conv) branch
        dict(N=1, inc=8, outc=8, S=8),     # identity residual branch
    ]

    for i, cfg in enumerate(configs):
        key, kx, kp = jax.random.split(key, 3)
        N, inc, outc, S = cfg["N"], cfg["inc"], cfg["outc"], cfg["S"]

        x = jax.random.normal(kx, (N, inc, S, S, S), jnp.float32)
        params = init_params(kp, inc, outc, ks)

        fwd = jax.jit(functools.partial(residual_block_forward,
                                        inc=inc, outc=outc, ks=ks,
                                        stride=stride, dilation=dilation))
        out = jax.block_until_ready(fwd(x, params))

        assert out.shape == (N, outc, S, S, S), out.shape
        assert bool(jnp.all(out >= 0.0))       # final ReLU
        assert bool(jnp.all(jnp.isfinite(out)))

        ref = reference_forward(x, params, inc=inc, outc=outc, ks=ks,
                                dilation=dilation)
        err = float(jnp.max(jnp.abs(out - ref)))
        assert err < 5e-2, f"config {i}: max abs err vs reference: {err}"

    print("KERNEL_OK")
</pallas_src>

<mosaic_0001>
module attributes {stable_mosaic.version = 11 : i64} {
  func.func @_bn_relu_pad_kernel(%arg0: i32, %arg1: i32, %arg2: memref<1x1x96x128xbf16, #tpu.memory_space<vmem>>, %arg3: memref<1x128xf32, #tpu.memory_space<vmem>>, %arg4: memref<1x128xf32, #tpu.memory_space<vmem>>, %arg5: memref<1x1x132x128xbf16, #tpu.memory_space<vmem>>) attributes {dimension_semantics = [#tpu.dimension_semantics<parallel>, #tpu.dimension_semantics<parallel>], iteration_bounds = array<i64: 2, 10>, scalar_prefetch = 0 : i64, scratch_operands = 0 : i64, tpu.core_type = #tpu.core_type<tc>, window_params = [{transform_indices = @transform_0, window_bounds = array<i64: 1, 1, 96, 128>}, {pipeline_mode = #tpu.pipeline_mode<synchronous>, transform_indices = @transform_1, window_bounds = array<i64: 1, 128>}, {pipeline_mode = #tpu.pipeline_mode<synchronous>, transform_indices = @transform_2, window_bounds = array<i64: 1, 128>}, {transform_indices = @transform_3, window_bounds = array<i64: 1, 1, 132, 128>}]} {
    %c0 = arith.constant 0 : index
    %c0_0 = arith.constant 0 : index
    %c0_1 = arith.constant 0 : index
    %c0_2 = arith.constant 0 : index
    %0 = vector.load %arg2[%c0, %c0_0, %c0_1, %c0_2] : memref<1x1x96x128xbf16, #tpu.memory_space<vmem>>, vector<1x1x96x128xbf16>
    %1 = vector.shape_cast %0 : vector<1x1x96x128xbf16> to vector<96x128xbf16>
    %2 = arith.extf %1 : vector<96x128xbf16> to vector<96x128xf32>
    %c0_3 = arith.constant 0 : index
    %c0_4 = arith.constant 0 : index
    %3 = vector.load %arg3[%c0_3, %c0_4] : memref<1x128xf32, #tpu.memory_space<vmem>>, vector<1x128xf32>
    %4 = vector.broadcast %3 : vector<1x128xf32> to vector<96x128xf32>
    %5 = arith.mulf %2, %4 : vector<96x128xf32>
    %c0_5 = arith.constant 0 : index
    %c0_6 = arith.constant 0 : index
    %6 = vector.load %arg4[%c0_5, %c0_6] : memref<1x128xf32, #tpu.memory_space<vmem>>, vector<1x128xf32>
    %7 = vector.broadcast %6 : vector<1x128xf32> to vector<96x128xf32>
    %8 = arith.addf %5, %7 : vector<96x128xf32>
    %cst = arith.constant 0.000000e+00 : f32
    %9 = vector.broadcast %cst : f32 to vector<96x128xf32>
    %10 = arith.maximumf %8, %9 : vector<96x128xf32>
    %11 = tpu.iota {dimensions = array<i32: 0>} : vector<96x1xi32>
    %c12_i32 = arith.constant 12 : i32
    %c0_i32 = arith.constant 0 : i32
    %12 = arith.cmpi eq, %c12_i32, %c0_i32 : i32
    %c1_i32 = arith.constant 1 : i32
    %13 = arith.select %12, %c1_i32, %c12_i32 : i32
    %14 = vector.broadcast %13 : i32 to vector<96x1xi32>
    %15 = arith.remsi %11, %14 : vector<96x1xi32>
    %c0_i32_7 = arith.constant 0 : i32
    %16 = vector.broadcast %c0_i32_7 : i32 to vector<96x1xi32>
    %17 = arith.cmpi ne, %15, %16 : vector<96x1xi32>
    %c0_i32_8 = arith.constant 0 : i32
    %18 = vector.broadcast %c0_i32_8 : i32 to vector<96x1xi32>
    %19 = arith.cmpi slt, %15, %18 : vector<96x1xi32>
    %c0_i32_9 = arith.constant 0 : i32
    %20 = arith.cmpi slt, %13, %c0_i32_9 : i32
    %21 = vector.broadcast %20 : i1 to vector<96x1xi1>
    %22 = vector.broadcast %21 : vector<96x1xi1> to vector<96x1xi1>
    %23 = arith.xori %19, %22 : vector<96x1xi1>
    %24 = arith.andi %23, %17 : vector<96x1xi1>
    %25 = vector.broadcast %13 : i32 to vector<96x1xi32>
    %26 = arith.addi %15, %25 : vector<96x1xi32>
    %27 = arith.select %24, %26, %15 : vector<96x1xi1>, vector<96x1xi32>
    %c8_i32 = arith.constant 8 : i32
    %28 = vector.broadcast %c8_i32 : i32 to vector<96x1xi32>
    %29 = arith.cmpi slt, %27, %28 : vector<96x1xi32>
    %c1_i32_10 = arith.constant 1 : i32
    %30 = arith.cmpi sge, %arg1, %c1_i32_10 : i32
    %c9_i32 = arith.constant 9 : i32
    %31 = arith.cmpi slt, %arg1, %c9_i32 : i32
    %32 = arith.andi %30, %31 : i1
    %33 = vector.broadcast %32 : i1 to vector<96x1xi1>
    %34 = arith.andi %29, %33 : vector<96x1xi1>
    %cst_11 = arith.constant 0.000000e+00 : f32
    %35 = vector.shape_cast %34 : vector<96x1xi1> to vector<96x1xi1>
    %36 = vector.broadcast %35 : vector<96x1xi1> to vector<96x128xi1>
    %37 = vector.broadcast %cst_11 : f32 to vector<96x128xf32>
    %38 = arith.select %36, %10, %37 : vector<96x128xi1>, vector<96x128xf32>
    %39 = arith.truncf %38 : vector<96x128xf32> to vector<96x128xbf16>
    %cst_12 = arith.constant 0.000000e+00 : bf16
    %40 = vector.broadcast %cst_12 : bf16 to vector<13x128xbf16>
    %c0_13 = arith.constant 0 : index
    %c0_14 = arith.constant 0 : index
    %c0_15 = arith.constant 0 : index
    %c0_16 = arith.constant 0 : index
    %41 = vector.load %arg5[%c0_13, %c0_14, %c0_15, %c0_16] : memref<1x1x132x128xbf16, #tpu.memory_space<vmem>>, vector<1x1x13x128xbf16>
    %42 = vector.shape_cast %41 : vector<1x1x13x128xbf16> to vector<13x128xbf16>
    %43 = vector.shape_cast %40 : vector<13x128xbf16> to vector<1x1x13x128xbf16>
    tpu.vector_store %arg5[%c0_13, %c0_14, %c0_15, %c0_16], %43 {strides = array<i32>} : memref<1x1x132x128xbf16, #tpu.memory_space<vmem>>, vector<1x1x13x128xbf16>,
    %c0_17 = arith.constant 0 : index
    %c0_18 = arith.constant 0 : index
    %c13 = arith.constant 13 : index
    %c0_19 = arith.constant 0 : index
    %44 = vector.load %arg5[%c0_17, %c0_18, %c13, %c0_19] : memref<1x1x132x128xbf16, #tpu.memory_space<vmem>>, vector<1x1x96x128xbf16>
    %45 = vector.shape_cast %44 : vector<1x1x96x128xbf16> to vector<96x128xbf16>
    %46 = vector.shape_cast %39 : vector<96x128xbf16> to vector<1x1x96x128xbf16>
    tpu.vector_store %arg5[%c0_17, %c0_18, %c13, %c0_19], %46 {strides = array<i32>} : memref<1x1x132x128xbf16, #tpu.memory_space<vmem>>, vector<1x1x96x128xbf16>,
    %cst_20 = arith.constant 0.000000e+00 : bf16
    %47 = vector.broadcast %cst_20 : bf16 to vector<23x128xbf16>
    %c0_21 = arith.constant 0 : index
    %c0_22 = arith.constant 0 : index
    %c109 = arith.constant 109 : index
    %c0_23 = arith.constant 0 : index
    %48 = vector.load %arg5[%c0_21, %c0_22, %c109, %c0_23] : memref<1x1x132x128xbf16, #tpu.memory_space<vmem>>, vector<1x1x23x128xbf16>
    %49 = vector.shape_cast %48 : vector<1x1x23x128xbf16> to vector<23x128xbf16>
    %50 = vector.shape_cast %47 : vector<23x128xbf16> to vector<1x1x23x128xbf16>
    tpu.vector_store %arg5[%c0_21, %c0_22, %c109, %c0_23], %50 {strides = array<i32>} : memref<1x1x132x128xbf16, #tpu.memory_space<vmem>>, vector<1x1x23x128xbf16>,
    return
  }
  func.func @transform_0(%arg0: i32, %arg1: i32) -> (i32, i32, i32, i32) {
    %c1_i32 = arith.constant 1 : i32
    %0 = arith.subi %arg1, %c1_i32 : i32
    %c0_i32 = arith.constant 0 : i32
    %c7_i32 = arith.constant 7 : i32
    %1 = arith.maxsi %c0_i32, %0 : i32
    %2 = arith.minsi %c7_i32, %1 : i32
    %c0_i32_0 = arith.constant 0 : i32
    %c0_i32_1 = arith.constant 0 : i32
    %c0_i32_2 = arith.constant 0 : i32
    return %arg0, %2, %c0_i32_0, %c0_i32_1 : i32, i32, i32, i32
  }
  func.func @transform_1(%arg0: i32, %arg1: i32) -> (i32, i32) {
    %c0_i32 = arith.constant 0 : i32
    %c0_i32_0 = arith.constant 0 : i32
    %c0_i32_1 = arith.constant 0 : i32
    return %c0_i32, %c0_i32_0 : i32, i32
  }
  func.func @transform_2(%arg0: i32, %arg1: i32) -> (i32, i32) {
    %c0_i32 = arith.constant 0 : i32
    %c0_i32_0 = arith.constant 0 : i32
    %c0_i32_1 = arith.constant 0 : i32
    return %c0_i32, %c0_i32_0 : i32, i32
  }
  func.func @transform_3(%arg0: i32, %arg1: i32) -> (i32, i32, i32, i32) {
    %c0_i32 = arith.constant 0 : i32
    %c0_i32_0 = arith.constant 0 : i32
    %c0_i32_1 = arith.constant 0 : i32
    return %arg0, %arg1, %c0_i32, %c0_i32_0 : i32, i32, i32, i32
  }
}

module attributes {stable_mosaic.version = 11 : i64} {
  func.func @_conv_tap_kernel(%arg0: i32, %arg1: i32, %arg2: i32, %arg3: memref<1x1x132x4xbf16, #tpu.memory_space<vmem>>, %arg4: memref<3x9x4x128xbf16, #tpu.memory_space<vmem>>, %arg5: memref<1x1x96x128xbf16, #tpu.memory_space<vmem>>, %arg6: memref<1x1x2x128xf32, #tpu.memory_space<vmem>>, %arg7: memref<96x128xf32, #tpu.memory_space<vmem>>) attributes {dimension_semantics = [#tpu.dimension_semantics<parallel>, #tpu.dimension_semantics<parallel>, #tpu.dimension_semantics<arbitrary>], iteration_bounds = array<i64: 2, 8, 3>, scalar_prefetch = 0 : i64, scratch_operands = 1 : i64, tpu.core_type = #tpu.core_type<tc>, window_params = [{transform_indices = @transform_0, window_bounds = array<i64: 1, 1, 132, 4>}, {pipeline_mode = #tpu.pipeline_mode<synchronous>, transform_indices = @transform_1, window_bounds = array<i64: 3, 9, 4, 128>}, {transform_indices = @transform_2, window_bounds = array<i64: 1, 1, 96, 128>}, {transform_indices = @transform_3, window_bounds = array<i64: 1, 1, 2, 128>}]} {
    %c0 = arith.constant 0 : index
    %c0_0 = arith.constant 0 : index
    %c0_1 = arith.constant 0 : index
    %c0_2 = arith.constant 0 : index
    %0 = vector.load %arg3[%c0, %c0_0, %c0_1, %c0_2] : memref<1x1x132x4xbf16, #tpu.memory_space<vmem>>, vector<1x1x96x4xbf16>
    %1 = vector.shape_cast %0 : vector<1x1x96x4xbf16> to vector<96x4xbf16>
    %2 = arith.index_cast %arg2 : i32 to index
    %c0_3 = arith.constant 0 : index
    %c0_4 = arith.constant 0 : index
    %c0_5 = arith.constant 0 : index
    %3 = vector.load %arg4[%2, %c0_3, %c0_4, %c0_5] : memref<3x9x4x128xbf16, #tpu.memory_space<vmem>>, vector<1x1x4x128xbf16>
    %4 = vector.shape_cast %3 : vector<1x1x4x128xbf16> to vector<4x128xbf16>
    %cst = arith.constant dense<0.000000e+00> : vector<96x128xf32>
    %5 = tpu.matmul %1, %4, %cst {dimension_numbers = #tpu.dot_dimension_numbers<[1], [0], [0], [1], [0, 0, 1, 1], [], []>} : vector<96x4xbf16>, vector<4x128xbf16>, vector<96x128xf32> -> vector<96x128xf32>
    %c0_6 = arith.constant 0 : index
    %c0_7 = arith.constant 0 : index
    %c1 = arith.constant 1 : index
    %c0_8 = arith.constant 0 : index
    %6 = vector.load %arg3[%c0_6, %c0_7, %c1, %c0_8] : memref<1x1x132x4xbf16, #tpu.memory_space<vmem>>, vector<1x1x96x4xbf16>
    %7 = vector.shape_cast %6 : vector<1x1x96x4xbf16> to vector<96x4xbf16>
    %8 = arith.index_cast %arg2 : i32 to index
    %c1_9 = arith.constant 1 : index
    %c0_10 = arith.constant 0 : index
    %c0_11 = arith.constant 0 : index
    %9 = vector.load %arg4[%8, %c1_9, %c0_10, %c0_11] : memref<3x9x4x128xbf16, #tpu.memory_space<vmem>>, vector<1x1x4x128xbf16>
    %10 = vector.shape_cast %9 : vector<1x1x4x128xbf16> to vector<4x128xbf16>
    %cst_12 = arith.constant dense<0.000000e+00> : vector<96x128xf32>
    %11 = tpu.matmul %7, %10, %cst_12 {dimension_numbers = #tpu.dot_dimension_numbers<[1], [0], [0], [1], [0, 0, 1, 1], [], []>} : vector<96x4xbf16>, vector<4x128xbf16>, vector<96x128xf32> -> vector<96x128xf32>
    %12 = arith.addf %5, %11 : vector<96x128xf32>
    %c0_13 = arith.constant 0 : index
    %c0_14 = arith.constant 0 : index
    %c2 = arith.constant 2 : index
    %c0_15 = arith.constant 0 : index
    %13 = vector.load %arg3[%c0_13, %c0_14, %c2, %c0_15] : memref<1x1x132x4xbf16, #tpu.memory_space<vmem>>, vector<1x1x96x4xbf16>
    %14 = vector.shape_cast %13 : vector<1x1x96x4xbf16> to vector<96x4xbf16>
    %15 = arith.index_cast %arg2 : i32 to index
    %c2_16 = arith.constant 2 : index
    %c0_17 = arith.constant 0 : index
    %c0_18 = arith.constant 0 : index
    %16 = vector.load %arg4[%15, %c2_16, %c0_17, %c0_18] : memref<3x9x4x128xbf16, #tpu.memory_space<vmem>>, vector<1x1x4x128xbf16>
    %17 = vector.shape_cast %16 : vector<1x1x4x128xbf16> to vector<4x128xbf16>
    %cst_19 = arith.constant dense<0.000000e+00> : vector<96x128xf32>
    %18 = tpu.matmul %14, %17, %cst_19 {dimension_numbers = #tpu.dot_dimension_numbers<[1], [0], [0], [1], [0, 0, 1, 1], [], []>} : vector<96x4xbf16>, vector<4x128xbf16>, vector<96x128xf32> -> vector<96x128xf32>
    %19 = arith.addf %12, %18 : vector<96x128xf32>
    %c0_20 = arith.constant 0 : index
    %c0_21 = arith.constant 0 : index
    %c12 = arith.constant 12 : index
    %c0_22 = arith.constant 0 : index
    %20 = vector.load %arg3[%c0_20, %c0_21, %c12, %c0_22] : memref<1x1x132x4xbf16, #tpu.memory_space<vmem>>, vector<1x1x96x4xbf16>
    %21 = vector.shape_cast %20 : vector<1x1x96x4xbf16> to vector<96x4xbf16>
    %22 = arith.index_cast %arg2 : i32 to index
    %c3 = arith.constant 3 : index
    %c0_23 = arith.constant 0 : index
    %c0_24 = arith.constant 0 : index
    %23 = vector.load %arg4[%22, %c3, %c0_23, %c0_24] : memref<3x9x4x128xbf16, #tpu.memory_space<vmem>>, vector<1x1x4x128xbf16>
    %24 = vector.shape_cast %23 : vector<1x1x4x128xbf16> to vector<4x128xbf16>
    %cst_25 = arith.constant dense<0.000000e+00> : vector<96x128xf32>
    %25 = tpu.matmul %21, %24, %cst_25 {dimension_numbers = #tpu.dot_dimension_numbers<[1], [0], [0], [1], [0, 0, 1, 1], [], []>} : vector<96x4xbf16>, vector<4x128xbf16>, vector<96x128xf32> -> vector<96x128xf32>
    %26 = arith.addf %19, %25 : vector<96x128xf32>
    %c0_26 = arith.constant 0 : index
    %c0_27 = arith.constant 0 : index
    %c13 = arith.constant 13 : index
    %c0_28 = arith.constant 0 : index
    %27 = vector.load %arg3[%c0_26, %c0_27, %c13, %c0_28] : memref<1x1x132x4xbf16, #tpu.memory_space<vmem>>, vector<1x1x96x4xbf16>
    %28 = vector.shape_cast %27 : vector<1x1x96x4xbf16> to vector<96x4xbf16>
    %29 = arith.index_cast %arg2 : i32 to index
    %c4 = arith.constant 4 : index
    %c0_29 = arith.constant 0 : index
    %c0_30 = arith.constant 0 : index
    %30 = vector.load %arg4[%29, %c4, %c0_29, %c0_30] : memref<3x9x4x128xbf16, #tpu.memory_space<vmem>>, vector<1x1x4x128xbf16>
    %31 = vector.shape_cast %30 : vector<1x1x4x128xbf16> to vector<4x128xbf16>
    %cst_31 = arith.constant dense<0.000000e+00> : vector<96x128xf32>
    %32 = tpu.matmul %28, %31, %cst_31 {dimension_numbers = #tpu.dot_dimension_numbers<[1], [0], [0], [1], [0, 0, 1, 1], [], []>} : vector<96x4xbf16>, vector<4x128xbf16>, vector<96x128xf32> -> vector<96x128xf32>
    %33 = arith.addf %26, %32 : vector<96x128xf32>
    %c0_32 = arith.constant 0 : index
    %c0_33 = arith.constant 0 : index
    %c14 = arith.constant 14 : index
    %c0_34 = arith.constant 0 : index
    %34 = vector.load %arg3[%c0_32, %c0_33, %c14, %c0_34] : memref<1x1x132x4xbf16, #tpu.memory_space<vmem>>, vector<1x1x96x4xbf16>
    %35 = vector.shape_cast %34 : vector<1x1x96x4xbf16> to vector<96x4xbf16>
    %36 = arith.index_cast %arg2 : i32 to index
    %c5 = arith.constant 5 : index
    %c0_35 = arith.constant 0 : index
    %c0_36 = arith.constant 0 : index
    %37 = vector.load %arg4[%36, %c5, %c0_35, %c0_36] : memref<3x9x4x128xbf16, #tpu.memory_space<vmem>>, vector<1x1x4x128xbf16>
    %38 = vector.shape_cast %37 : vector<1x1x4x128xbf16> to vector<4x128xbf16>
    %cst_37 = arith.constant dense<0.000000e+00> : vector<96x128xf32>
    %39 = tpu.matmul %35, %38, %cst_37 {dimension_numbers = #tpu.dot_dimension_numbers<[1], [0], [0], [1], [0, 0, 1, 1], [], []>} : vector<96x4xbf16>, vector<4x128xbf16>, vector<96x128xf32> -> vector<96x128xf32>
    %40 = arith.addf %33, %39 : vector<96x128xf32>
    %c0_38 = arith.constant 0 : index
    %c0_39 = arith.constant 0 : index
    %c24 = arith.constant 24 : index
    %c0_40 = arith.constant 0 : index
    %41 = vector.load %arg3[%c0_38, %c0_39, %c24, %c0_40] : memref<1x1x132x4xbf16, #tpu.memory_space<vmem>>, vector<1x1x96x4xbf16>
    %42 = vector.shape_cast %41 : vector<1x1x96x4xbf16> to vector<96x4xbf16>
    %43 = arith.index_cast %arg2 : i32 to index
    %c6 = arith.constant 6 : index
    %c0_41 = arith.constant 0 : index
    %c0_42 = arith.constant 0 : index
    %44 = vector.load %arg4[%43, %c6, %c0_41, %c0_42] : memref<3x9x4x128xbf16, #tpu.memory_space<vmem>>, vector<1x1x4x128xbf16>
    %45 = vector.shape_cast %44 : vector<1x1x4x128xbf16> to vector<4x128xbf16>
    %cst_43 = arith.constant dense<0.000000e+00> : vector<96x128xf32>
    %46 = tpu.matmul %42, %45, %cst_43 {dimension_numbers = #tpu.dot_dimension_numbers<[1], [0], [0], [1], [0, 0, 1, 1], [], []>} : vector<96x4xbf16>, vector<4x128xbf16>, vector<96x128xf32> -> vector<96x128xf32>
    %47 = arith.addf %40, %46 : vector<96x128xf32>
    %c0_44 = arith.constant 0 : index
    %c0_45 = arith.constant 0 : index
    %c25 = arith.constant 25 : index
    %c0_46 = arith.constant 0 : index
    %48 = vector.load %arg3[%c0_44, %c0_45, %c25, %c0_46] : memref<1x1x132x4xbf16, #tpu.memory_space<vmem>>, vector<1x1x96x4xbf16>
    %49 = vector.shape_cast %48 : vector<1x1x96x4xbf16> to vector<96x4xbf16>
    %50 = arith.index_cast %arg2 : i32 to index
    %c7 = arith.constant 7 : index
    %c0_47 = arith.constant 0 : index
    %c0_48 = arith.constant 0 : index
    %51 = vector.load %arg4[%50, %c7, %c0_47, %c0_48] : memref<3x9x4x128xbf16, #tpu.memory_space<vmem>>, vector<1x1x4x128xbf16>
    %52 = vector.shape_cast %51 : vector<1x1x4x128xbf16> to vector<4x128xbf16>
    %cst_49 = arith.constant dense<0.000000e+00> : vector<96x128xf32>
    %53 = tpu.matmul %49, %52, %cst_49 {dimension_numbers = #tpu.dot_dimension_numbers<[1], [0], [0], [1], [0, 0, 1, 1], [], []>} : vector<96x4xbf16>, vector<4x128xbf16>, vector<96x128xf32> -> vector<96x128xf32>
    %54 = arith.addf %47, %53 : vector<96x128xf32>
    %c0_50 = arith.constant 0 : index
    %c0_51 = arith.constant 0 : index
    %c26 = arith.constant 26 : index
    %c0_52 = arith.constant 0 : index
    %55 = vector.load %arg3[%c0_50, %c0_51, %c26, %c0_52] : memref<1x1x132x4xbf16, #tpu.memory_space<vmem>>, vector<1x1x96x4xbf16>
    %56 = vector.shape_cast %55 : vector<1x1x96x4xbf16> to vector<96x4xbf16>
    %57 = arith.index_cast %arg2 : i32 to index
    %c8 = arith.constant 8 : index
    %c0_53 = arith.constant 0 : index
    %c0_54 = arith.constant 0 : index
    %58 = vector.load %arg4[%57, %c8, %c0_53, %c0_54] : memref<3x9x4x128xbf16, #tpu.memory_space<vmem>>, vector<1x1x4x128xbf16>
    %59 = vector.shape_cast %58 : vector<1x1x4x128xbf16> to vector<4x128xbf16>
    %cst_55 = arith.constant dense<0.000000e+00> : vector<96x128xf32>
    %60 = tpu.matmul %56, %59, %cst_55 {dimension_numbers = #tpu.dot_dimension_numbers<[1], [0], [0], [1], [0, 0, 1, 1], [], []>} : vector<96x4xbf16>, vector<4x128xbf16>, vector<96x128xf32> -> vector<96x128xf32>
    %61 = arith.addf %54, %60 : vector<96x128xf32>
    %c0_i32 = arith.constant 0 : i32
    %62 = arith.cmpi eq, %arg2, %c0_i32 : i32
    %63 = arith.extui %62 : i1 to i32
    %c0_i32_56 = arith.constant 0 : i32
    %64 = arith.cmpi ne, %63, %c0_i32_56 : i32
    scf.if %64 {
      %c0_60 = arith.constant 0 : index
      %c0_61 = arith.constant 0 : index
      %71 = vector.load %arg7[%c0_60, %c0_61] : memref<96x128xf32, #tpu.memory_space<vmem>>, vector<96x128xf32>
      tpu.vector_store %arg7[%c0_60, %c0_61], %61 {strides = array<i32>} : memref<96x128xf32, #tpu.memory_space<vmem>>, vector<96x128xf32>,
    } else {
    }
    %c0_i32_57 = arith.constant 0 : i32
    %65 = arith.cmpi ne, %arg2, %c0_i32_57 : i32
    %66 = arith.extui %65 : i1 to i32
    %c0_i32_58 = arith.constant 0 : i32
    %67 = arith.cmpi ne, %66, %c0_i32_58 : i32
    scf.if %67 {
      %c0_60 = arith.constant 0 : index
      %c0_61 = arith.constant 0 : index
      %71 = vector.load %arg7[%c0_60, %c0_61] : memref<96x128xf32, #tpu.memory_space<vmem>>, vector<96x128xf32>
      %72 = arith.addf %71, %61 : vector<96x128xf32>
      %c0_62 = arith.constant 0 : index
      %c0_63 = arith.constant 0 : index
      %73 = vector.load %arg7[%c0_62, %c0_63] : memref<96x128xf32, #tpu.memory_space<vmem>>, vector<96x128xf32>
      tpu.vector_store %arg7[%c0_62, %c0_63], %72 {strides = array<i32>} : memref<96x128xf32, #tpu.memory_space<vmem>>, vector<96x128xf32>,
    } else {
    }
    %c2_i32 = arith.constant 2 : i32
    %68 = arith.cmpi eq, %arg2, %c2_i32 : i32
    %69 = arith.extui %68 : i1 to i32
    %c0_i32_59 = arith.constant 0 : i32
    %70 = arith.cmpi ne, %69, %c0_i32_59 : i32
    scf.if %70 {
      %c0_60 = arith.constant 0 : index
      %c0_61 = arith.constant 0 : index
      %71 = vector.load %arg7[%c0_60, %c0_61] : memref<96x128xf32, #tpu.memory_space<vmem>>, vector<96x128xf32>
      %72 = arith.truncf %71 : vector<96x128xf32> to vector<96x128xbf16>
      %c0_62 = arith.constant 0 : index
      %c0_63 = arith.constant 0 : index
      %c0_64 = arith.constant 0 : index
      %c0_65 = arith.constant 0 : index
      %73 = vector.load %arg5[%c0_62, %c0_63, %c0_64, %c0_65] : memref<1x1x96x128xbf16, #tpu.memory_space<vmem>>, vector<1x1x96x128xbf16>
      %74 = vector.shape_cast %73 : vector<1x1x96x128xbf16> to vector<96x128xbf16>
      %75 = vector.shape_cast %72 : vector<96x128xbf16> to vector<1x1x96x128xbf16>
      tpu.vector_store %arg5[%c0_62, %c0_63, %c0_64, %c0_65], %75 {strides = array<i32>} : memref<1x1x96x128xbf16, #tpu.memory_space<vmem>>, vector<1x1x96x128xbf16>,
      %76 = tpu.iota {dimensions = array<i32: 0>} : vector<96x1xi32>
      %c12_i32 = arith.constant 12 : i32
      %c0_i32_66 = arith.constant 0 : i32
      %77 = arith.cmpi eq, %c12_i32, %c0_i32_66 : i32
      %c1_i32 = arith.constant 1 : i32
      %78 = arith.select %77, %c1_i32, %c12_i32 : i32
      %79 = vector.broadcast %78 : i32 to vector<96x1xi32>
      %80 = arith.remsi %76, %79 : vector<96x1xi32>
      %c0_i32_67 = arith.constant 0 : i32
      %81 = vector.broadcast %c0_i32_67 : i32 to vector<96x1xi32>
      %82 = arith.cmpi ne, %80, %81 : vector<96x1xi32>
      %c0_i32_68 = arith.constant 0 : i32
      %83 = vector.broadcast %c0_i32_68 : i32 to vector<96x1xi32>
      %84 = arith.cmpi slt, %80, %83 : vector<96x1xi32>
      %c0_i32_69 = arith.constant 0 : i32
      %85 = arith.cmpi slt, %78, %c0_i32_69 : i32
      %86 = vector.broadcast %85 : i1 to vector<96x1xi1>
      %87 = vector.broadcast %86 : vector<96x1xi1> to vector<96x1xi1>
      %88 = arith.xori %84, %87 : vector<96x1xi1>
      %89 = arith.andi %88, %82 : vector<96x1xi1>
      %90 = vector.broadcast %78 : i32 to vector<96x1xi32>
      %91 = arith.addi %80, %90 : vector<96x1xi32>
      %92 = arith.select %89, %91, %80 : vector<96x1xi1>, vector<96x1xi32>
      %c8_i32 = arith.constant 8 : i32
      %93 = vector.broadcast %c8_i32 : i32 to vector<96x1xi32>
      %94 = arith.cmpi slt, %92, %93 : vector<96x1xi32>
      %95 = arith.extui %94 : vector<96x1xi1> to vector<96x1xi32>
      %96 = arith.sitofp %95 : vector<96x1xi32> to vector<96x1xf32>
      %97 = vector.broadcast %96 : vector<96x1xf32> to vector<96x128xf32>
      %98 = arith.mulf %71, %97 : vector<96x128xf32>
      %cst_70 = arith.constant dense<0.000000e+00> : vector<128xf32>
      %99 = vector.multi_reduction <add>, %98, %cst_70 [0] : vector<96x128xf32> to vector<128xf32>
      %100 = vector.shape_cast %99 : vector<128xf32> to vector<1x128xf32>
      %c0_71 = arith.constant 0 : index
      %c0_72 = arith.constant 0 : index
      %c0_73 = arith.constant 0 : index
      %c0_74 = arith.constant 0 : index
      %101 = vector.load %arg6[%c0_71, %c0_72, %c0_73, %c0_74] : memref<1x1x2x128xf32, #tpu.memory_space<vmem>>, vector<1x1x1x128xf32>
      %102 = vector.shape_cast %101 : vector<1x1x1x128xf32> to vector<1x128xf32>
      %103 = vector.shape_cast %100 : vector<1x128xf32> to vector<1x1x1x128xf32>
      tpu.vector_store %arg6[%c0_71, %c0_72, %c0_73, %c0_74], %103 {strides = array<i32>} : memref<1x1x2x128xf32, #tpu.memory_space<vmem>>, vector<1x1x1x128xf32>,
      %104 = arith.mulf %98, %71 : vector<96x128xf32>
      %cst_75 = arith.constant dense<0.000000e+00> : vector<128xf32>
      %105 = vector.multi_reduction <add>, %104, %cst_75 [0] : vector<96x128xf32> to vector<128xf32>
      %106 = vector.shape_cast %105 : vector<128xf32> to vector<1x128xf32>
      %c0_76 = arith.constant 0 : index
      %c0_77 = arith.constant 0 : index
      %c1_78 = arith.constant 1 : index
      %c0_79 = arith.constant 0 : index
      %107 = vector.load %arg6[%c0_76, %c0_77, %c1_78, %c0_79] : memref<1x1x2x128xf32, #tpu.memory_space<vmem>>, vector<1x1x1x128xf32>
      %108 = vector.shape_cast %107 : vector<1x1x1x128xf32> to vector<1x128xf32>
      %109 = vector.shape_cast %106 : vector<1x128xf32> to vector<1x1x1x128xf32>
      tpu.vector_store %arg6[%c0_76, %c0_77, %c1_78, %c0_79], %109 {strides = array<i32>} : memref<1x1x2x128xf32, #tpu.memory_space<vmem>>, vector<1x1x1x128xf32>,
    } else {
    }
    return
  }
  func.func @transform_0(%arg0: i32, %arg1: i32, %arg2: i32) -> (i32, i32, i32, i32) {
    %c1_i32 = arith.constant 1 : i32
    %0 = arith.muli %arg2, %c1_i32 : i32
    %1 = arith.addi %arg1, %0 : i32
    %c0_i32 = arith.constant 0 : i32
    %c0_i32_0 = arith.constant 0 : i32
    %c0_i32_1 = arith.constant 0 : i32
    return %arg0, %1, %c0_i32, %c0_i32_0 : i32, i32, i32, i32
  }
  func.func @transform_1(%arg0: i32, %arg1: i32, %arg2: i32) -> (i32, i32, i32, i32) {
    %c0_i32 = arith.constant 0 : i32
    %c0_i32_0 = arith.constant 0 : i32
    %c0_i32_1 = arith.constant 0 : i32
    %c0_i32_2 = arith.constant 0 : i32
    %c0_i32_3 = arith.constant 0 : i32
    return %c0_i32, %c0_i32_0, %c0_i32_1, %c0_i32_2 : i32, i32, i32, i32
  }
  func.func @transform_2(%arg0: i32, %arg1: i32, %arg2: i32) -> (i32, i32, i32, i32) {
    %c0_i32 = arith.constant 0 : i32
    %c0_i32_0 = arith.constant 0 : i32
    %c0_i32_1 = arith.constant 0 : i32
    return %arg0, %arg1, %c0_i32, %c0_i32_0 : i32, i32, i32, i32
  }
  func.func @transform_3(%arg0: i32, %arg1: i32, %arg2: i32) -> (i32, i32, i32, i32) {
    %c0_i32 = arith.constant 0 : i32
    %c0_i32_0 = arith.constant 0 : i32
    %c0_i32_1 = arith.constant 0 : i32
    return %arg0, %arg1, %c0_i32, %c0_i32_0 : i32, i32, i32, i32
  }
}

module attributes {stable_mosaic.version = 11 : i64} {
  func.func @_conv_tap_kernel(%arg0: i32, %arg1: i32, %arg2: i32, %arg3: memref<1x1x132x128xbf16, #tpu.memory_space<vmem>>, %arg4: memref<3x9x128x128xbf16, #tpu.memory_space<vmem>>, %arg5: memref<1x1x96x128xbf16, #tpu.memory_space<vmem>>, %arg6: memref<1x1x2x128xf32, #tpu.memory_space<vmem>>, %arg7: memref<96x128xf32, #tpu.memory_space<vmem>>) attributes {dimension_semantics = [#tpu.dimension_semantics<parallel>, #tpu.dimension_semantics<parallel>, #tpu.dimension_semantics<arbitrary>], iteration_bounds = array<i64: 2, 8, 3>, scalar_prefetch = 0 : i64, scratch_operands = 1 : i64, tpu.core_type = #tpu.core_type<tc>, window_params = [{transform_indices = @transform_0, window_bounds = array<i64: 1, 1, 132, 128>}, {pipeline_mode = #tpu.pipeline_mode<synchronous>, transform_indices = @transform_1, window_bounds = array<i64: 3, 9, 128, 128>}, {transform_indices = @transform_2, window_bounds = array<i64: 1, 1, 96, 128>}, {transform_indices = @transform_3, window_bounds = array<i64: 1, 1, 2, 128>}]} {
    %c0 = arith.constant 0 : index
    %c0_0 = arith.constant 0 : index
    %c0_1 = arith.constant 0 : index
    %c0_2 = arith.constant 0 : index
    %0 = vector.load %arg3[%c0, %c0_0, %c0_1, %c0_2] : memref<1x1x132x128xbf16, #tpu.memory_space<vmem>>, vector<1x1x96x128xbf16>
    %1 = vector.shape_cast %0 : vector<1x1x96x128xbf16> to vector<96x128xbf16>
    %2 = arith.index_cast %arg2 : i32 to index
    %c0_3 = arith.constant 0 : index
    %c0_4 = arith.constant 0 : index
    %c0_5 = arith.constant 0 : index
    %3 = vector.load %arg4[%2, %c0_3, %c0_4, %c0_5] : memref<3x9x128x128xbf16, #tpu.memory_space<vmem>>, vector<1x1x128x128xbf16>
    %4 = vector.shape_cast %3 : vector<1x1x128x128xbf16> to vector<128x128xbf16>
    %cst = arith.constant dense<0.000000e+00> : vector<96x128xf32>
    %5 = tpu.matmul %1, %4, %cst {dimension_numbers = #tpu.dot_dimension_numbers<[1], [0], [0], [1], [0, 0, 1, 1], [], []>} : vector<96x128xbf16>, vector<128x128xbf16>, vector<96x128xf32> -> vector<96x128xf32>
    %c0_6 = arith.constant 0 : index
    %c0_7 = arith.constant 0 : index
    %c1 = arith.constant 1 : index
    %c0_8 = arith.constant 0 : index
    %6 = vector.load %arg3[%c0_6, %c0_7, %c1, %c0_8] : memref<1x1x132x128xbf16, #tpu.memory_space<vmem>>, vector<1x1x96x128xbf16>
    %7 = vector.shape_cast %6 : vector<1x1x96x128xbf16> to vector<96x128xbf16>
    %8 = arith.index_cast %arg2 : i32 to index
    %c1_9 = arith.constant 1 : index
    %c0_10 = arith.constant 0 : index
    %c0_11 = arith.constant 0 : index
    %9 = vector.load %arg4[%8, %c1_9, %c0_10, %c0_11] : memref<3x9x128x128xbf16, #tpu.memory_space<vmem>>, vector<1x1x128x128xbf16>
    %10 = vector.shape_cast %9 : vector<1x1x128x128xbf16> to vector<128x128xbf16>
    %cst_12 = arith.constant dense<0.000000e+00> : vector<96x128xf32>
    %11 = tpu.matmul %7, %10, %cst_12 {dimension_numbers = #tpu.dot_dimension_numbers<[1], [0], [0], [1], [0, 0, 1, 1], [], []>} : vector<96x128xbf16>, vector<128x128xbf16>, vector<96x128xf32> -> vector<96x128xf32>
    %12 = arith.addf %5, %11 : vector<96x128xf32>
    %c0_13 = arith.constant 0 : index
    %c0_14 = arith.constant 0 : index
    %c2 = arith.constant 2 : index
    %c0_15 = arith.constant 0 : index
    %13 = vector.load %arg3[%c0_13, %c0_14, %c2, %c0_15] : memref<1x1x132x128xbf16, #tpu.memory_space<vmem>>, vector<1x1x96x128xbf16>
    %14 = vector.shape_cast %13 : vector<1x1x96x128xbf16> to vector<96x128xbf16>
    %15 = arith.index_cast %arg2 : i32 to index
    %c2_16 = arith.constant 2 : index
    %c0_17 = arith.constant 0 : index
    %c0_18 = arith.constant 0 : index
    %16 = vector.load %arg4[%15, %c2_16, %c0_17, %c0_18] : memref<3x9x128x128xbf16, #tpu.memory_space<vmem>>, vector<1x1x128x128xbf16>
    %17 = vector.shape_cast %16 : vector<1x1x128x128xbf16> to vector<128x128xbf16>
    %cst_19 = arith.constant dense<0.000000e+00> : vector<96x128xf32>
    %18 = tpu.matmul %14, %17, %cst_19 {dimension_numbers = #tpu.dot_dimension_numbers<[1], [0], [0], [1], [0, 0, 1, 1], [], []>} : vector<96x128xbf16>, vector<128x128xbf16>, vector<96x128xf32> -> vector<96x128xf32>
    %19 = arith.addf %12, %18 : vector<96x128xf32>
    %c0_20 = arith.constant 0 : index
    %c0_21 = arith.constant 0 : index
    %c12 = arith.constant 12 : index
    %c0_22 = arith.constant 0 : index
    %20 = vector.load %arg3[%c0_20, %c0_21, %c12, %c0_22] : memref<1x1x132x128xbf16, #tpu.memory_space<vmem>>, vector<1x1x96x128xbf16>
    %21 = vector.shape_cast %20 : vector<1x1x96x128xbf16> to vector<96x128xbf16>
    %22 = arith.index_cast %arg2 : i32 to index
    %c3 = arith.constant 3 : index
    %c0_23 = arith.constant 0 : index
    %c0_24 = arith.constant 0 : index
    %23 = vector.load %arg4[%22, %c3, %c0_23, %c0_24] : memref<3x9x128x128xbf16, #tpu.memory_space<vmem>>, vector<1x1x128x128xbf16>
    %24 = vector.shape_cast %23 : vector<1x1x128x128xbf16> to vector<128x128xbf16>
    %cst_25 = arith.constant dense<0.000000e+00> : vector<96x128xf32>
    %25 = tpu.matmul %21, %24, %cst_25 {dimension_numbers = #tpu.dot_dimension_numbers<[1], [0], [0], [1], [0, 0, 1, 1], [], []>} : vector<96x128xbf16>, vector<128x128xbf16>, vector<96x128xf32> -> vector<96x128xf32>
    %26 = arith.addf %19, %25 : vector<96x128xf32>
    %c0_26 = arith.constant 0 : index
    %c0_27 = arith.constant 0 : index
    %c13 = arith.constant 13 : index
    %c0_28 = arith.constant 0 : index
    %27 = vector.load %arg3[%c0_26, %c0_27, %c13, %c0_28] : memref<1x1x132x128xbf16, #tpu.memory_space<vmem>>, vector<1x1x96x128xbf16>
    %28 = vector.shape_cast %27 : vector<1x1x96x128xbf16> to vector<96x128xbf16>
    %29 = arith.index_cast %arg2 : i32 to index
    %c4 = arith.constant 4 : index
    %c0_29 = arith.constant 0 : index
    %c0_30 = arith.constant 0 : index
    %30 = vector.load %arg4[%29, %c4, %c0_29, %c0_30] : memref<3x9x128x128xbf16, #tpu.memory_space<vmem>>, vector<1x1x128x128xbf16>
    %31 = vector.shape_cast %30 : vector<1x1x128x128xbf16> to vector<128x128xbf16>
    %cst_31 = arith.constant dense<0.000000e+00> : vector<96x128xf32>
    %32 = tpu.matmul %28, %31, %cst_31 {dimension_numbers = #tpu.dot_dimension_numbers<[1], [0], [0], [1], [0, 0, 1, 1], [], []>} : vector<96x128xbf16>, vector<128x128xbf16>, vector<96x128xf32> -> vector<96x128xf32>
    %33 = arith.addf %26, %32 : vector<96x128xf32>
    %c0_32 = arith.constant 0 : index
    %c0_33 = arith.constant 0 : index
    %c14 = arith.constant 14 : index
    %c0_34 = arith.constant 0 : index
    %34 = vector.load %arg3[%c0_32, %c0_33, %c14, %c0_34] : memref<1x1x132x128xbf16, #tpu.memory_space<vmem>>, vector<1x1x96x128xbf16>
    %35 = vector.shape_cast %34 : vector<1x1x96x128xbf16> to vector<96x128xbf16>
    %36 = arith.index_cast %arg2 : i32 to index
    %c5 = arith.constant 5 : index
    %c0_35 = arith.constant 0 : index
    %c0_36 = arith.constant 0 : index
    %37 = vector.load %arg4[%36, %c5, %c0_35, %c0_36] : memref<3x9x128x128xbf16, #tpu.memory_space<vmem>>, vector<1x1x128x128xbf16>
    %38 = vector.shape_cast %37 : vector<1x1x128x128xbf16> to vector<128x128xbf16>
    %cst_37 = arith.constant dense<0.000000e+00> : vector<96x128xf32>
    %39 = tpu.matmul %35, %38, %cst_37 {dimension_numbers = #tpu.dot_dimension_numbers<[1], [0], [0], [1], [0, 0, 1, 1], [], []>} : vector<96x128xbf16>, vector<128x128xbf16>, vector<96x128xf32> -> vector<96x128xf32>
    %40 = arith.addf %33, %39 : vector<96x128xf32>
    %c0_38 = arith.constant 0 : index
    %c0_39 = arith.constant 0 : index
    %c24 = arith.constant 24 : index
    %c0_40 = arith.constant 0 : index
    %41 = vector.load %arg3[%c0_38, %c0_39, %c24, %c0_40] : memref<1x1x132x128xbf16, #tpu.memory_space<vmem>>, vector<1x1x96x128xbf16>
    %42 = vector.shape_cast %41 : vector<1x1x96x128xbf16> to vector<96x128xbf16>
    %43 = arith.index_cast %arg2 : i32 to index
    %c6 = arith.constant 6 : index
    %c0_41 = arith.constant 0 : index
    %c0_42 = arith.constant 0 : index
    %44 = vector.load %arg4[%43, %c6, %c0_41, %c0_42] : memref<3x9x128x128xbf16, #tpu.memory_space<vmem>>, vector<1x1x128x128xbf16>
    %45 = vector.shape_cast %44 : vector<1x1x128x128xbf16> to vector<128x128xbf16>
    %cst_43 = arith.constant dense<0.000000e+00> : vector<96x128xf32>
    %46 = tpu.matmul %42, %45, %cst_43 {dimension_numbers = #tpu.dot_dimension_numbers<[1], [0], [0], [1], [0, 0, 1, 1], [], []>} : vector<96x128xbf16>, vector<128x128xbf16>, vector<96x128xf32> -> vector<96x128xf32>
    %47 = arith.addf %40, %46 : vector<96x128xf32>
    %c0_44 = arith.constant 0 : index
    %c0_45 = arith.constant 0 : index
    %c25 = arith.constant 25 : index
    %c0_46 = arith.constant 0 : index
    %48 = vector.load %arg3[%c0_44, %c0_45, %c25, %c0_46] : memref<1x1x132x128xbf16, #tpu.memory_space<vmem>>, vector<1x1x96x128xbf16>
    %49 = vector.shape_cast %48 : vector<1x1x96x128xbf16> to vector<96x128xbf16>
    %50 = arith.index_cast %arg2 : i32 to index
    %c7 = arith.constant 7 : index
    %c0_47 = arith.constant 0 : index
    %c0_48 = arith.constant 0 : index
    %51 = vector.load %arg4[%50, %c7, %c0_47, %c0_48] : memref<3x9x128x128xbf16, #tpu.memory_space<vmem>>, vector<1x1x128x128xbf16>
    %52 = vector.shape_cast %51 : vector<1x1x128x128xbf16> to vector<128x128xbf16>
    %cst_49 = arith.constant dense<0.000000e+00> : vector<96x128xf32>
    %53 = tpu.matmul %49, %52, %cst_49 {dimension_numbers = #tpu.dot_dimension_numbers<[1], [0], [0], [1], [0, 0, 1, 1], [], []>} : vector<96x128xbf16>, vector<128x128xbf16>, vector<96x128xf32> -> vector<96x128xf32>
    %54 = arith.addf %47, %53 : vector<96x128xf32>
    %c0_50 = arith.constant 0 : index
    %c0_51 = arith.constant 0 : index
    %c26 = arith.constant 26 : index
    %c0_52 = arith.constant 0 : index
    %55 = vector.load %arg3[%c0_50, %c0_51, %c26, %c0_52] : memref<1x1x132x128xbf16, #tpu.memory_space<vmem>>, vector<1x1x96x128xbf16>
    %56 = vector.shape_cast %55 : vector<1x1x96x128xbf16> to vector<96x128xbf16>
    %57 = arith.index_cast %arg2 : i32 to index
    %c8 = arith.constant 8 : index
    %c0_53 = arith.constant 0 : index
    %c0_54 = arith.constant 0 : index
    %58 = vector.load %arg4[%57, %c8, %c0_53, %c0_54] : memref<3x9x128x128xbf16, #tpu.memory_space<vmem>>, vector<1x1x128x128xbf16>
    %59 = vector.shape_cast %58 : vector<1x1x128x128xbf16> to vector<128x128xbf16>
    %cst_55 = arith.constant dense<0.000000e+00> : vector<96x128xf32>
    %60 = tpu.matmul %56, %59, %cst_55 {dimension_numbers = #tpu.dot_dimension_numbers<[1], [0], [0], [1], [0, 0, 1, 1], [], []>} : vector<96x128xbf16>, vector<128x128xbf16>, vector<96x128xf32> -> vector<96x128xf32>
    %61 = arith.addf %54, %60 : vector<96x128xf32>
    %c0_i32 = arith.constant 0 : i32
    %62 = arith.cmpi eq, %arg2, %c0_i32 : i32
    %63 = arith.extui %62 : i1 to i32
    %c0_i32_56 = arith.constant 0 : i32
    %64 = arith.cmpi ne, %63, %c0_i32_56 : i32
    scf.if %64 {
      %c0_60 = arith.constant 0 : index
      %c0_61 = arith.constant 0 : index
      %71 = vector.load %arg7[%c0_60, %c0_61] : memref<96x128xf32, #tpu.memory_space<vmem>>, vector<96x128xf32>
      tpu.vector_store %arg7[%c0_60, %c0_61], %61 {strides = array<i32>} : memref<96x128xf32, #tpu.memory_space<vmem>>, vector<96x128xf32>,
    } else {
    }
    %c0_i32_57 = arith.constant 0 : i32
    %65 = arith.cmpi ne, %arg2, %c0_i32_57 : i32
    %66 = arith.extui %65 : i1 to i32
    %c0_i32_58 = arith.constant 0 : i32
    %67 = arith.cmpi ne, %66, %c0_i32_58 : i32
    scf.if %67 {
      %c0_60 = arith.constant 0 : index
      %c0_61 = arith.constant 0 : index
      %71 = vector.load %arg7[%c0_60, %c0_61] : memref<96x128xf32, #tpu.memory_space<vmem>>, vector<96x128xf32>
      %72 = arith.addf %71, %61 : vector<96x128xf32>
      %c0_62 = arith.constant 0 : index
      %c0_63 = arith.constant 0 : index
      %73 = vector.load %arg7[%c0_62, %c0_63] : memref<96x128xf32, #tpu.memory_space<vmem>>, vector<96x128xf32>
      tpu.vector_store %arg7[%c0_62, %c0_63], %72 {strides = array<i32>} : memref<96x128xf32, #tpu.memory_space<vmem>>, vector<96x128xf32>,
    } else {
    }
    %c2_i32 = arith.constant 2 : i32
    %68 = arith.cmpi eq, %arg2, %c2_i32 : i32
    %69 = arith.extui %68 : i1 to i32
    %c0_i32_59 = arith.constant 0 : i32
    %70 = arith.cmpi ne, %69, %c0_i32_59 : i32
    scf.if %70 {
      %c0_60 = arith.constant 0 : index
      %c0_61 = arith.constant 0 : index
      %71 = vector.load %arg7[%c0_60, %c0_61] : memref<96x128xf32, #tpu.memory_space<vmem>>, vector<96x128xf32>
      %72 = arith.truncf %71 : vector<96x128xf32> to vector<96x128xbf16>
      %c0_62 = arith.constant 0 : index
      %c0_63 = arith.constant 0 : index
      %c0_64 = arith.constant 0 : index
      %c0_65 = arith.constant 0 : index
      %73 = vector.load %arg5[%c0_62, %c0_63, %c0_64, %c0_65] : memref<1x1x96x128xbf16, #tpu.memory_space<vmem>>, vector<1x1x96x128xbf16>
      %74 = vector.shape_cast %73 : vector<1x1x96x128xbf16> to vector<96x128xbf16>
      %75 = vector.shape_cast %72 : vector<96x128xbf16> to vector<1x1x96x128xbf16>
      tpu.vector_store %arg5[%c0_62, %c0_63, %c0_64, %c0_65], %75 {strides = array<i32>} : memref<1x1x96x128xbf16, #tpu.memory_space<vmem>>, vector<1x1x96x128xbf16>,
      %76 = tpu.iota {dimensions = array<i32: 0>} : vector<96x1xi32>
      %c12_i32 = arith.constant 12 : i32
      %c0_i32_66 = arith.constant 0 : i32
      %77 = arith.cmpi eq, %c12_i32, %c0_i32_66 : i32
      %c1_i32 = arith.constant 1 : i32
      %78 = arith.select %77, %c1_i32, %c12_i32 : i32
      %79 = vector.broadcast %78 : i32 to vector<96x1xi32>
      %80 = arith.remsi %76, %79 : vector<96x1xi32>
      %c0_i32_67 = arith.constant 0 : i32
      %81 = vector.broadcast %c0_i32_67 : i32 to vector<96x1xi32>
      %82 = arith.cmpi ne, %80, %81 : vector<96x1xi32>
      %c0_i32_68 = arith.constant 0 : i32
      %83 = vector.broadcast %c0_i32_68 : i32 to vector<96x1xi32>
      %84 = arith.cmpi slt, %80, %83 : vector<96x1xi32>
      %c0_i32_69 = arith.constant 0 : i32
      %85 = arith.cmpi slt, %78, %c0_i32_69 : i32
      %86 = vector.broadcast %85 : i1 to vector<96x1xi1>
      %87 = vector.broadcast %86 : vector<96x1xi1> to vector<96x1xi1>
      %88 = arith.xori %84, %87 : vector<96x1xi1>
      %89 = arith.andi %88, %82 : vector<96x1xi1>
      %90 = vector.broadcast %78 : i32 to vector<96x1xi32>
      %91 = arith.addi %80, %90 : vector<96x1xi32>
      %92 = arith.select %89, %91, %80 : vector<96x1xi1>, vector<96x1xi32>
      %c8_i32 = arith.constant 8 : i32
      %93 = vector.broadcast %c8_i32 : i32 to vector<96x1xi32>
      %94 = arith.cmpi slt, %92, %93 : vector<96x1xi32>
      %95 = arith.extui %94 : vector<96x1xi1> to vector<96x1xi32>
      %96 = arith.sitofp %95 : vector<96x1xi32> to vector<96x1xf32>
      %97 = vector.broadcast %96 : vector<96x1xf32> to vector<96x128xf32>
      %98 = arith.mulf %71, %97 : vector<96x128xf32>
      %cst_70 = arith.constant dense<0.000000e+00> : vector<128xf32>
      %99 = vector.multi_reduction <add>, %98, %cst_70 [0] : vector<96x128xf32> to vector<128xf32>
      %100 = vector.shape_cast %99 : vector<128xf32> to vector<1x128xf32>
      %c0_71 = arith.constant 0 : index
      %c0_72 = arith.constant 0 : index
      %c0_73 = arith.constant 0 : index
      %c0_74 = arith.constant 0 : index
      %101 = vector.load %arg6[%c0_71, %c0_72, %c0_73, %c0_74] : memref<1x1x2x128xf32, #tpu.memory_space<vmem>>, vector<1x1x1x128xf32>
      %102 = vector.shape_cast %101 : vector<1x1x1x128xf32> to vector<1x128xf32>
      %103 = vector.shape_cast %100 : vector<1x128xf32> to vector<1x1x1x128xf32>
      tpu.vector_store %arg6[%c0_71, %c0_72, %c0_73, %c0_74], %103 {strides = array<i32>} : memref<1x1x2x128xf32, #tpu.memory_space<vmem>>, vector<1x1x1x128xf32>,
      %104 = arith.mulf %98, %71 : vector<96x128xf32>
      %cst_75 = arith.constant dense<0.000000e+00> : vector<128xf32>
      %105 = vector.multi_reduction <add>, %104, %cst_75 [0] : vector<96x128xf32> to vector<128xf32>
      %106 = vector.shape_cast %105 : vector<128xf32> to vector<1x128xf32>
      %c0_76 = arith.constant 0 : index
      %c0_77 = arith.constant 0 : index
      %c1_78 = arith.constant 1 : index
      %c0_79 = arith.constant 0 : index
      %107 = vector.load %arg6[%c0_76, %c0_77, %c1_78, %c0_79] : memref<1x1x2x128xf32, #tpu.memory_space<vmem>>, vector<1x1x1x128xf32>
      %108 = vector.shape_cast %107 : vector<1x1x1x128xf32> to vector<1x128xf32>
      %109 = vector.shape_cast %106 : vector<1x128xf32> to vector<1x1x1x128xf32>
      tpu.vector_store %arg6[%c0_76, %c0_77, %c1_78, %c0_79], %109 {strides = array<i32>} : memref<1x1x2x128xf32, #tpu.memory_space<vmem>>, vector<1x1x1x128xf32>,
    } else {
    }
    return
  }
  func.func @transform_0(%arg0: i32, %arg1: i32, %arg2: i32) -> (i32, i32, i32, i32) {
    %c1_i32 = arith.constant 1 : i32
    %0 = arith.muli %arg2, %c1_i32 : i32
    %1 = arith.addi %arg1, %0 : i32
    %c0_i32 = arith.constant 0 : i32
    %c0_i32_0 = arith.constant 0 : i32
    %c0_i32_1 = arith.constant 0 : i32
    return %arg0, %1, %c0_i32, %c0_i32_0 : i32, i32, i32, i32
  }
  func.func @transform_1(%arg0: i32, %arg1: i32, %arg2: i32) -> (i32, i32, i32, i32) {
    %c0_i32 = arith.constant 0 : i32
    %c0_i32_0 = arith.constant 0 : i32
    %c0_i32_1 = arith.constant 0 : i32
    %c0_i32_2 = arith.constant 0 : i32
    %c0_i32_3 = arith.constant 0 : i32
    return %c0_i32, %c0_i32_0, %c0_i32_1, %c0_i32_2 : i32, i32, i32, i32
  }
  func.func @transform_2(%arg0: i32, %arg1: i32, %arg2: i32) -> (i32, i32, i32, i32) {
    %c0_i32 = arith.constant 0 : i32
    %c0_i32_0 = arith.constant 0 : i32
    %c0_i32_1 = arith.constant 0 : i32
    return %arg0, %arg1, %c0_i32, %c0_i32_0 : i32, i32, i32, i32
  }
  func.func @transform_3(%arg0: i32, %arg1: i32, %arg2: i32) -> (i32, i32, i32, i32) {
    %c0_i32 = arith.constant 0 : i32
    %c0_i32_0 = arith.constant 0 : i32
    %c0_i32_1 = arith.constant 0 : i32
    return %arg0, %arg1, %c0_i32, %c0_i32_0 : i32, i32, i32, i32
  }
}

module attributes {stable_mosaic.version = 11 : i64} {
  func.func @_pointwise_conv_kernel(%arg0: i32, %arg1: i32, %arg2: memref<1x1x96x4xbf16, #tpu.memory_space<vmem>>, %arg3: memref<4x128xbf16, #tpu.memory_space<vmem>>, %arg4: memref<1x1x96x128xbf16, #tpu.memory_space<vmem>>, %arg5: memref<1x1x2x128xf32, #tpu.memory_space<vmem>>) attributes {dimension_semantics = [#tpu.dimension_semantics<parallel>, #tpu.dimension_semantics<parallel>], iteration_bounds = array<i64: 2, 8>, scalar_prefetch = 0 : i64, scratch_operands = 0 : i64, tpu.core_type = #tpu.core_type<tc>, window_params = [{transform_indices = @transform_0, window_bounds = array<i64: 1, 1, 96, 4>}, {pipeline_mode = #tpu.pipeline_mode<synchronous>, transform_indices = @transform_1, window_bounds = array<i64: 4, 128>}, {transform_indices = @transform_2, window_bounds = array<i64: 1, 1, 96, 128>}, {transform_indices = @transform_3, window_bounds = array<i64: 1, 1, 2, 128>}]} {
    %c0 = arith.constant 0 : index
    %c0_0 = arith.constant 0 : index
    %c0_1 = arith.constant 0 : index
    %c0_2 = arith.constant 0 : index
    %0 = vector.load %arg2[%c0, %c0_0, %c0_1, %c0_2] : memref<1x1x96x4xbf16, #tpu.memory_space<vmem>>, vector<1x1x96x4xbf16>
    %1 = vector.shape_cast %0 : vector<1x1x96x4xbf16> to vector<96x4xbf16>
    %c0_3 = arith.constant 0 : index
    %c0_4 = arith.constant 0 : index
    %2 = vector.load %arg3[%c0_3, %c0_4] : memref<4x128xbf16, #tpu.memory_space<vmem>>, vector<4x128xbf16>
    %cst = arith.constant dense<0.000000e+00> : vector<96x128xf32>
    %3 = tpu.matmul %1, %2, %cst {dimension_numbers = #tpu.dot_dimension_numbers<[1], [0], [0], [1], [0, 0, 1, 1], [], []>} : vector<96x4xbf16>, vector<4x128xbf16>, vector<96x128xf32> -> vector<96x128xf32>
    %4 = arith.truncf %3 : vector<96x128xf32> to vector<96x128xbf16>
    %c0_5 = arith.constant 0 : index
    %c0_6 = arith.constant 0 : index
    %c0_7 = arith.constant 0 : index
    %c0_8 = arith.constant 0 : index
    %5 = vector.load %arg4[%c0_5, %c0_6, %c0_7, %c0_8] : memref<1x1x96x128xbf16, #tpu.memory_space<vmem>>, vector<1x1x96x128xbf16>
    %6 = vector.shape_cast %5 : vector<1x1x96x128xbf16> to vector<96x128xbf16>
    %7 = vector.shape_cast %4 : vector<96x128xbf16> to vector<1x1x96x128xbf16>
    tpu.vector_store %arg4[%c0_5, %c0_6, %c0_7, %c0_8], %7 {strides = array<i32>} : memref<1x1x96x128xbf16, #tpu.memory_space<vmem>>, vector<1x1x96x128xbf16>,
    %8 = tpu.iota {dimensions = array<i32: 0>} : vector<96x1xi32>
    %c12_i32 = arith.constant 12 : i32
    %c0_i32 = arith.constant 0 : i32
    %9 = arith.cmpi eq, %c12_i32, %c0_i32 : i32
    %c1_i32 = arith.constant 1 : i32
    %10 = arith.select %9, %c1_i32, %c12_i32 : i32
    %11 = vector.broadcast %10 : i32 to vector<96x1xi32>
    %12 = arith.remsi %8, %11 : vector<96x1xi32>
    %c0_i32_9 = arith.constant 0 : i32
    %13 = vector.broadcast %c0_i32_9 : i32 to vector<96x1xi32>
    %14 = arith.cmpi ne, %12, %13 : vector<96x1xi32>
    %c0_i32_10 = arith.constant 0 : i32
    %15 = vector.broadcast %c0_i32_10 : i32 to vector<96x1xi32>
    %16 = arith.cmpi slt, %12, %15 : vector<96x1xi32>
    %c0_i32_11 = arith.constant 0 : i32
    %17 = arith.cmpi slt, %10, %c0_i32_11 : i32
    %18 = vector.broadcast %17 : i1 to vector<96x1xi1>
    %19 = vector.broadcast %18 : vector<96x1xi1> to vector<96x1xi1>
    %20 = arith.xori %16, %19 : vector<96x1xi1>
    %21 = arith.andi %20, %14 : vector<96x1xi1>
    %22 = vector.broadcast %10 : i32 to vector<96x1xi32>
    %23 = arith.addi %12, %22 : vector<96x1xi32>
    %24 = arith.select %21, %23, %12 : vector<96x1xi1>, vector<96x1xi32>
    %c8_i32 = arith.constant 8 : i32
    %25 = vector.broadcast %c8_i32 : i32 to vector<96x1xi32>
    %26 = arith.cmpi slt, %24, %25 : vector<96x1xi32>
    %27 = arith.extui %26 : vector<96x1xi1> to vector<96x1xi32>
    %28 = arith.sitofp %27 : vector<96x1xi32> to vector<96x1xf32>
    %29 = vector.broadcast %28 : vector<96x1xf32> to vector<96x128xf32>
    %30 = arith.mulf %3, %29 : vector<96x128xf32>
    %cst_12 = arith.constant dense<0.000000e+00> : vector<128xf32>
    %31 = vector.multi_reduction <add>, %30, %cst_12 [0] : vector<96x128xf32> to vector<128xf32>
    %32 = vector.shape_cast %31 : vector<128xf32> to vector<1x128xf32>
    %c0_13 = arith.constant 0 : index
    %c0_14 = arith.constant 0 : index
    %c0_15 = arith.constant 0 : index
    %c0_16 = arith.constant 0 : index
    %33 = vector.load %arg5[%c0_13, %c0_14, %c0_15, %c0_16] : memref<1x1x2x128xf32, #tpu.memory_space<vmem>>, vector<1x1x1x128xf32>
    %34 = vector.shape_cast %33 : vector<1x1x1x128xf32> to vector<1x128xf32>
    %35 = vector.shape_cast %32 : vector<1x128xf32> to vector<1x1x1x128xf32>
    tpu.vector_store %arg5[%c0_13, %c0_14, %c0_15, %c0_16], %35 {strides = array<i32>} : memref<1x1x2x128xf32, #tpu.memory_space<vmem>>, vector<1x1x1x128xf32>,
    %36 = arith.mulf %30, %3 : vector<96x128xf32>
    %cst_17 = arith.constant dense<0.000000e+00> : vector<128xf32>
    %37 = vector.multi_reduction <add>, %36, %cst_17 [0] : vector<96x128xf32> to vector<128xf32>
    %38 = vector.shape_cast %37 : vector<128xf32> to vector<1x128xf32>
    %c0_18 = arith.constant 0 : index
    %c0_19 = arith.constant 0 : index
    %c1 = arith.constant 1 : index
    %c0_20 = arith.constant 0 : index
    %39 = vector.load %arg5[%c0_18, %c0_19, %c1, %c0_20] : memref<1x1x2x128xf32, #tpu.memory_space<vmem>>, vector<1x1x1x128xf32>
    %40 = vector.shape_cast %39 : vector<1x1x1x128xf32> to vector<1x128xf32>
    %41 = vector.shape_cast %38 : vector<1x128xf32> to vector<1x1x1x128xf32>
    tpu.vector_store %arg5[%c0_18, %c0_19, %c1, %c0_20], %41 {strides = array<i32>} : memref<1x1x2x128xf32, #tpu.memory_space<vmem>>, vector<1x1x1x128xf32>,
    return
  }
  func.func @transform_0(%arg0: i32, %arg1: i32) -> (i32, i32, i32, i32) {
    %c0_i32 = arith.constant 0 : i32
    %c0_i32_0 = arith.constant 0 : i32
    %c0_i32_1 = arith.constant 0 : i32
    return %arg0, %arg1, %c0_i32, %c0_i32_0 : i32, i32, i32, i32
  }
  func.func @transform_1(%arg0: i32, %arg1: i32) -> (i32, i32) {
    %c0_i32 = arith.constant 0 : i32
    %c0_i32_0 = arith.constant 0 : i32
    %c0_i32_1 = arith.constant 0 : i32
    return %c0_i32, %c0_i32_0 : i32, i32
  }
  func.func @transform_2(%arg0: i32, %arg1: i32) -> (i32, i32, i32, i32) {
    %c0_i32 = arith.constant 0 : i32
    %c0_i32_0 = arith.constant 0 : i32
    %c0_i32_1 = arith.constant 0 : i32
    return %arg0, %arg1, %c0_i32, %c0_i32_0 : i32, i32, i32, i32
  }
  func.func @transform_3(%arg0: i32, %arg1: i32) -> (i32, i32, i32, i32) {
    %c0_i32 = arith.constant 0 : i32
    %c0_i32_0 = arith.constant 0 : i32
    %c0_i32_1 = arith.constant 0 : i32
    return %arg0, %arg1, %c0_i32, %c0_i32_0 : i32, i32, i32, i32
  }
}

module attributes {stable_mosaic.version = 11 : i64} {
  func.func @_bn_add_relu_kernel(%arg0: i32, %arg1: i32, %arg2: memref<1x1x96x128xbf16, #tpu.memory_space<vmem>>, %arg3: memref<1x1x96x128xbf16, #tpu.memory_space<vmem>>, %arg4: memref<1x128xf32, #tpu.memory_space<vmem>>, %arg5: memref<1x128xf32, #tpu.memory_space<vmem>>, %arg6: memref<1x128xf32, #tpu.memory_space<vmem>>, %arg7: memref<1x128xf32, #tpu.memory_space<vmem>>, %arg8: memref<1x1x96x128xf32, #tpu.memory_space<vmem>>) attributes {dimension_semantics = [#tpu.dimension_semantics<parallel>, #tpu.dimension_semantics<parallel>], iteration_bounds = array<i64: 2, 8>, scalar_prefetch = 0 : i64, scratch_operands = 0 : i64, tpu.core_type = #tpu.core_type<tc>, window_params = [{transform_indices = @transform_0, window_bounds = array<i64: 1, 1, 96, 128>}, {transform_indices = @transform_1, window_bounds = array<i64: 1, 1, 96, 128>}, {pipeline_mode = #tpu.pipeline_mode<synchronous>, transform_indices = @transform_2, window_bounds = array<i64: 1, 128>}, {pipeline_mode = #tpu.pipeline_mode<synchronous>, transform_indices = @transform_3, window_bounds = array<i64: 1, 128>}, {pipeline_mode = #tpu.pipeline_mode<synchronous>, transform_indices = @transform_4, window_bounds = array<i64: 1, 128>}, {pipeline_mode = #tpu.pipeline_mode<synchronous>, transform_indices = @transform_5, window_bounds = array<i64: 1, 128>}, {transform_indices = @transform_6, window_bounds = array<i64: 1, 1, 96, 128>}]} {
    %c0 = arith.constant 0 : index
    %c0_0 = arith.constant 0 : index
    %c0_1 = arith.constant 0 : index
    %c0_2 = arith.constant 0 : index
    %0 = vector.load %arg2[%c0, %c0_0, %c0_1, %c0_2] : memref<1x1x96x128xbf16, #tpu.memory_space<vmem>>, vector<1x1x96x128xbf16>
    %1 = vector.shape_cast %0 : vector<1x1x96x128xbf16> to vector<96x128xbf16>
    %2 = arith.extf %1 : vector<96x128xbf16> to vector<96x128xf32>
    %c0_3 = arith.constant 0 : index
    %c0_4 = arith.constant 0 : index
    %3 = vector.load %arg4[%c0_3, %c0_4] : memref<1x128xf32, #tpu.memory_space<vmem>>, vector<1x128xf32>
    %4 = vector.broadcast %3 : vector<1x128xf32> to vector<96x128xf32>
    %5 = arith.mulf %2, %4 : vector<96x128xf32>
    %c0_5 = arith.constant 0 : index
    %c0_6 = arith.constant 0 : index
    %6 = vector.load %arg5[%c0_5, %c0_6] : memref<1x128xf32, #tpu.memory_space<vmem>>, vector<1x128xf32>
    %7 = vector.broadcast %6 : vector<1x128xf32> to vector<96x128xf32>
    %8 = arith.addf %5, %7 : vector<96x128xf32>
    %c0_7 = arith.constant 0 : index
    %c0_8 = arith.constant 0 : index
    %c0_9 = arith.constant 0 : index
    %c0_10 = arith.constant 0 : index
    %9 = vector.load %arg3[%c0_7, %c0_8, %c0_9, %c0_10] : memref<1x1x96x128xbf16, #tpu.memory_space<vmem>>, vector<1x1x96x128xbf16>
    %10 = vector.shape_cast %9 : vector<1x1x96x128xbf16> to vector<96x128xbf16>
    %11 = arith.extf %10 : vector<96x128xbf16> to vector<96x128xf32>
    %c0_11 = arith.constant 0 : index
    %c0_12 = arith.constant 0 : index
    %12 = vector.load %arg6[%c0_11, %c0_12] : memref<1x128xf32, #tpu.memory_space<vmem>>, vector<1x128xf32>
    %13 = vector.broadcast %12 : vector<1x128xf32> to vector<96x128xf32>
    %14 = arith.mulf %11, %13 : vector<96x128xf32>
    %c0_13 = arith.constant 0 : index
    %c0_14 = arith.constant 0 : index
    %15 = vector.load %arg7[%c0_13, %c0_14] : memref<1x128xf32, #tpu.memory_space<vmem>>, vector<1x128xf32>
    %16 = vector.broadcast %15 : vector<1x128xf32> to vector<96x128xf32>
    %17 = arith.addf %14, %16 : vector<96x128xf32>
    %18 = arith.addf %8, %17 : vector<96x128xf32>
    %cst = arith.constant 0.000000e+00 : f32
    %19 = vector.broadcast %cst : f32 to vector<96x128xf32>
    %20 = arith.maximumf %18, %19 : vector<96x128xf32>
    %c0_15 = arith.constant 0 : index
    %c0_16 = arith.constant 0 : index
    %c0_17 = arith.constant 0 : index
    %c0_18 = arith.constant 0 : index
    %21 = vector.load %arg8[%c0_15, %c0_16, %c0_17, %c0_18] : memref<1x1x96x128xf32, #tpu.memory_space<vmem>>, vector<1x1x96x128xf32>
    %22 = vector.shape_cast %21 : vector<1x1x96x128xf32> to vector<96x128xf32>
    %23 = vector.shape_cast %20 : vector<96x128xf32> to vector<1x1x96x128xf32>
    tpu.vector_store %arg8[%c0_15, %c0_16, %c0_17, %c0_18], %23 {strides = array<i32>} : memref<1x1x96x128xf32, #tpu.memory_space<vmem>>, vector<1x1x96x128xf32>,
    return
  }
  func.func @transform_0(%arg0: i32, %arg1: i32) -> (i32, i32, i32, i32) {
    %c0_i32 = arith.constant 0 : i32
    %c0_i32_0 = arith.constant 0 : i32
    %c0_i32_1 = arith.constant 0 : i32
    return %arg0, %arg1, %c0_i32, %c0_i32_0 : i32, i32, i32, i32
  }
  func.func @transform_1(%arg0: i32, %arg1: i32) -> (i32, i32, i32, i32) {
    %c0_i32 = arith.constant 0 : i32
    %c0_i32_0 = arith.constant 0 : i32
    %c0_i32_1 = arith.constant 0 : i32
    return %arg0, %arg1, %c0_i32, %c0_i32_0 : i32, i32, i32, i32
  }
  func.func @transform_2(%arg0: i32, %arg1: i32) -> (i32, i32) {
    %c0_i32 = arith.constant 0 : i32
    %c0_i32_0 = arith.constant 0 : i32
    %c0_i32_1 = arith.constant 0 : i32
    return %c0_i32, %c0_i32_0 : i32, i32
  }
  func.func @transform_3(%arg0: i32, %arg1: i32) -> (i32, i32) {
    %c0_i32 = arith.constant 0 : i32
    %c0_i32_0 = arith.constant 0 : i32
    %c0_i32_1 = arith.constant 0 : i32
    return %c0_i32, %c0_i32_0 : i32, i32
  }
  func.func @transform_4(%arg0: i32, %arg1: i32) -> (i32, i32) {
    %c0_i32 = arith.constant 0 : i32
    %c0_i32_0 = arith.constant 0 : i32
    %c0_i32_1 = arith.constant 0 : i32
    return %c0_i32, %c0_i32_0 : i32, i32
  }
  func.func @transform_5(%arg0: i32, %arg1: i32) -> (i32, i32) {
    %c0_i32 = arith.constant 0 : i32
    %c0_i32_0 = arith.constant 0 : i32
    %c0_i32_1 = arith.constant 0 : i32
    return %c0_i32, %c0_i32_0 : i32, i32
  }
  func.func @transform_6(%arg0: i32, %arg1: i32) -> (i32, i32, i32, i32) {
    %c0_i32 = arith.constant 0 : i32
    %c0_i32_0 = arith.constant 0 : i32
    %c0_i32_1 = arith.constant 0 : i32
    return %arg0, %arg1, %c0_i32, %c0_i32_0 : i32, i32, i32, i32
  }
}

</mosaic_0001>

<bundles_post_ra>
// kernel: residual_block_forward.6
= control target key start
LH: loop header
LB: loop body
LE: loop exit
PB: predicated region body
PF: predicated region fallthrough
CT: control target
= control target key end

     0   :  { %s1106_s12 = smov 0   ;;  %s1108_s13 = smov 0   ;;  %s1537_s0 = inlined_call_operand.vmem [shape: bf16[2,8,96,128], index: 0, kind: input, shape index: {}]   ;;  %s1538_s1 = inlined_call_operand.vmem [shape: f32[1,128], index: 1, kind: input, shape index: {}]   ;;  %s1539_s2 = inlined_call_operand.vmem [shape: f32[1,128], index: 2, kind: input, shape index: {}]   ;;  %s1540_s3 = inlined_call_operand.vmem [shape: bf16[2,10,132,128], index: 3, kind: output, shape index: {}]  }
   0x1   :  { %s1110_s14 = smov 0   ;;  %s1112_s15 = smov 0  }
   0x2   :  { %s1114_s16 = smov 0  }
   0x3 LB: > { %s22_s17 = sadd.s32 1, %s1075_s14  ;;  %s25_s18 = sadd.s32 1, %s1079_s15  ;;  %s1083_s16 = sphi %s1114_s16, %s13_s16   ;;  %s1079_s15 = sphi %s1112_s15, %s1579_s15   ;;  %s1075_s14 = sphi %s1110_s14, %s1578_s14   ;;  %s1071_s13 = sphi %s1108_s13, %s1577_s13   ;;  %s1067_s12 = sphi %s1106_s12, %s1576_s12  }
   0x4   : > { %p23_p0 = scmp.ge.s32.totalorder %s22_s17, 10  ;;  %p903_p1 = scmp.ge.s32.totalorder %s1083_s16, 1 }
   0x5   : > { %p177_p2 = scmp.lt.s32.totalorder %s1083_s16, 21 }
   0x6   : > { %s1581_s17 = smov (%p23_p0, %s22_s17), 0  ;;  %s1583_s18 = smov (!%p23_p0, %s25_s18), %s1079_s15 }
   0x7   : > { %p178_p3 = pnand %p903_p1, %p177_p2  ;;  %p27_p4 = scmp.ge.s32.totalorder %s1583_s18, 2 }
   0x8   : > { %p219_p5 = scmp.lt.s32.totalorder (!%p178_p3), %s1071_s13, 1  ;;  %p235_p6 = scmp.lt.s32.totalorder (!%p178_p3), %s1067_s12, 9 }
   0x9   : > { %s1585_s18 = smov (%p27_p4, %s1583_s18), 0  ;;  %181 = sbr.rel (%p178_p3) target bundleno = 106 (0x6a), region = 32 }
   0xa   : > { %s1140_s19 = sadd.s32 (!%p178_p3), 4294967295, %s1067_s12  ;;  %p534_p7 = scmp.ge.s32.totalorder (!%p178_p3), %s1067_s12, 1 }
   0xb   : > { %p215_p8 = scmp.gt.s32.totalorder (!%p178_p3), %s1140_s19, 0  ;;  %p905_p9 = scmp.lt.s32.totalorder (!%p178_p3), %s1140_s19, 7 }
   0xc   : > { %p1193_p10 = pnand (!%p178_p3), %p534_p7, %p235_p6 }
   0xe   : > { %v317_v0 = vlaneseq  ;;  %s1587_s13 = smov (!%p219_p5, %s1071_s13), 1  ;;  %vm596_vm0 = vcmask 1042432   ;;  %vm597_vm1 = vsmask.f32 2304  ;;  %v1085_v24 = vmov 0  }
   0xf   : > { %s236_s20 = scalar_select %p235_p6, %s1067_s12, 9  ;;  %vm1185_vm2 = vmand %vm596_vm0, %vm597_vm1  ;;  %v1269_v57 = vld [vmem:[%s1538_s1] ss:$0 sm:$0xff] }
  0x10   : > { %v1145_v1 = vshrl.u32 %v317_v0, 7  ;;  %s979_s21 = smul.u32 170, %s1587_s13 }
  0x11   : > { %s978_s22 = smul.u32 17, %s236_s20 }
  0x12   : > { %v329_v2 = vadd.s32 88, %v1145_v1  ;;  %v1154_v3 = vmul.u32.u64.low 2863311531, %v1145_v1  ;;  %v1155_v4 = vmul.u32.u64.high 2863311531, %v1145_v1, %v1154_v3  ;;  %v319_v5 = vadd.s32 8, %v1145_v1  ;;  %s216_s23 = scalar_select %p215_p8, %s1140_s19, 0 }
  0x13   : > { %v320_v6 = vadd.s32 16, %v1145_v1  ;;  %v1161_v7 = vadd.s32 24, %v1145_v1  ;;  %v1164_v8 = vadd.s32 32, %v1145_v1  ;;  %v1167_v9 = vadd.s32 40, %v1145_v1  ;;  %s239_s24 = sadd.s32 %s979_s21, %s978_s22  ;;  %s977_s4 = smul.u32 96, %s1587_s13 }
  0x14   : > { %v1170_v10 = vmul.u32.u64.low 2863311531, %v329_v2  ;;  %v1171_v11 = vmul.u32.u64.high 2863311531, %v329_v2, %v1170_v10  ;;  %v1173_v12 = vmul.u32.u64.low 2863311531, %v319_v5  ;;  %v1174_v13 = vmul.u32.u64.high 2863311531, %v319_v5, %v1173_v12  ;;  %s911_s25 = sshll.u32 %s239_s24, 2  ;;  %s1589_s23 = smov (!%p905_p9, %s216_s23), 7 }
  0x15   : > { %v1176_v14 = vmul.u32.u64.low 2863311531, %v320_v6  ;;  %v1177_v15 = vmul.u32.u64.high 2863311531, %v320_v6, %v1176_v14  ;;  %v1180_v16 = vmul.u32.u64.low 2863311531, %v1161_v7  ;;  %v1181_v17 = vmul.u32.u64.high 2863311531, %v1161_v7, %v1180_v16  ;;  %s1205_s29 = scalar_lea.vmem %s1540_s3, %s911_s25  ;;  %p221_p11 = scmp.lt.s32.totalorder %s1589_s23, 7 }
  0x16   : > { %v336_v19 = vshrl.u32 %v1155_v4, 3  ;;  %v1199_v20 = vmul.u32.u64.low 2863311531, %v1164_v8  ;;  %v1200_v21 = vmul.u32.u64.high 2863311531, %v1164_v8, %v1199_v20  ;;  %v599_v22 = vld [vmem:[%s1205_s29 + $0x4] sm:$0x7]  ;;  %v457_v23 = vshrl.u32 %v1171_v11, 3 }
  0x17   : > { %595 = vst [vmem:[%s1205_s29] sm:$0xf] %v1085_v24  ;;  %789 = vst [vmem:[%s1205_s29 + $0x38] sm:$0xf] %v1085_v24  ;;  %v1216_v25 = vmul.u32.u64.low 2863311531, %v1167_v9  ;;  %v1217_v26 = vmul.u32.u64.high 2863311531, %v1167_v9, %v1216_v25  ;;  %v600_v27 = vsel %vm1185_vm2, 0, %v599_v22 }
  0x18   : > { %790 = vst [vmem:[%s1205_s29 + $0x3c] sm:$0xf] %v1085_v24  ;;  %791 = vst [vmem:[%s1205_s29 + $0x40] sm:$0x3] %v1085_v24  ;;  %s914_s30 = scalar_select %p1193_p10, 0, 1 }
  0x19   : > { %v337_v28 = vmul.u32 12, %v336_v19  ;;  %v347_v29 = vshrl.u32 %v1174_v13, 3  ;;  %v358_v30 = vshrl.u32 %v1177_v15, 3  ;;  %601 = vst [vmem:[%s1205_s29 + $0x4] sm:$0x7] %v600_v27  ;;  %v458_v31 = vmul.u32 12, %v457_v23 }
  0x1a   : > { %v369_v32 = vshrl.u32 %v1181_v17, 3  ;;  %v380_v33 = vshrl.u32 %v1200_v21, 3  ;;  %v1232_v37 = vadd.s32 48, %v1145_v1  ;;  %s1591_s23 = smov (!%p221_p11, %s1589_s23), 7  ;;  %v1234_v39 = vstv %s914_s30 }
  0x1b   : > { %v338_v34 = vsub.s32 %v1145_v1, %v337_v28  ;;  %v348_v35 = vmul.u32 12, %v347_v29  ;;  %v359_v36 = vmul.u32 12, %v358_v30  ;;  %v459_v38 = vsub.s32 %v329_v2, %v458_v31  ;;  %s976_s5 = smul.u32 12, %s1591_s23 }
  0x1c   : > { %v370_v40 = vmul.u32 12, %v369_v32  ;;  %v381_v41 = vmul.u32 12, %v380_v33  ;;  %v1253_v52 = vadd.s32 56, %v1145_v1  ;;  %v1256_v53 = vadd.s32 64, %v1145_v1 }
  0x1d   : > { %vm462_vm3 = vcmp.ne.s32.totalorder %v338_v34, 0  ;;  %vm474_vm4 = vcmp.lt.s32.totalorder %v338_v34, 0  ;;  %v498_v42 = vadd.s32 12, %v338_v34  ;;  %v349_v43 = vsub.s32 %v319_v5, %v348_v35  ;;  %s225_s6 = sadd.s32 %s977_s4, %s976_s5 }
  0x1e   : > { %vm473_vm5 = vcmp.ne.s32.totalorder %v459_v38, 0  ;;  %vm485_vm6 = vcmp.lt.s32.totalorder %v459_v38, 0  ;;  %v509_v44 = vadd.s32 12, %v459_v38  ;;  %vm1236_vm7 = vmand %vm474_vm4, %vm462_vm3  ;;  %v360_v46 = vsub.s32 %v320_v6, %v359_v36  ;;  %s910_s7 = sshll.u32 %s225_s6, 2 }
  0x1f   : > { %vm1240_vm8 = vmand %vm485_vm6, %vm473_vm5  ;;  %v510_v48 = vsel %vm1236_vm7, %v498_v42, %v338_v34  ;;  %vm463_vm9 = vcmp.ne.s32.totalorder %v349_v43, 0  ;;  %vm475_vm10 = vcmp.lt.s32.totalorder %v349_v43, 0  ;;  %v499_v49 = vadd.s32 12, %v349_v43  ;;  %s1264_s10 = scalar_lea.vmem %s1537_s0, %s910_s7 }
  0x20   : > { %v521_v50 = vsel %vm1240_vm8, %v509_v44, %v459_v38  ;;  %vm1248_vm11 = vmand %vm475_vm10, %vm463_vm9  ;;  %vm464_vm12 = vcmp.ne.s32.totalorder %v360_v46, 0  ;;  %vm476_vm13 = vcmp.lt.s32.totalorder %v360_v46, 0  ;;  %v500_v55 = vadd.s32 12, %v360_v46  ;;  %v1284_v61 = vld [vmem:[%s1264_s10 + $0x28] sm:$0xff]   ;;  %v948_v62 = vld [vmem:[%s1264_s10] sm:$0xff]  }
  0x21   : > { %v511_v54 = vsel %vm1248_vm11, %v499_v49, %v349_v43  ;;  %v371_v56 = vsub.s32 %v1161_v7, %v370_v40  ;;  %vm1271_vm14 = vcmp.lt.s32.totalorder %v521_v50, 8  ;;  %vm540_vm15 = vcmp.eq.s32.totalorder %v1234_v39, 1  ;;  %v971_v5 = vld [vmem:[%s1264_s10 + $0x8] sm:$0xff]   ;;  %vm488_vm6 = vmand %vm476_vm13, %vm464_vm12  ;;  %v1296_v6 = vld [vmem:[%s1264_s10 + $0x10] sm:$0xff]  }
  0x22   : > { %vm1276_vm0 = vcmp.lt.s32.totalorder %v510_v48, 8  ;;  %v1281_v60 = vsub.s32 %v1164_v8, %v381_v41  ;;  %vm1287_vm3 = vcmp.lt.s32.totalorder %v511_v54, 8  ;;  %v970_v2 = vunpack.c.h.bf16 %v1284_v61  ;;  %v1302_v7 = vld [vmem:[%s1539_s2] ss:$0 sm:$0xff]  ;;  %vm1328_vm11 = vmand %vm1271_vm14, %vm540_vm15  ;;  %v769_v12 = vld [vmem:[%s1205_s29 + $0x4] sm:$0xc] }
  0x23   : > { %vm465_vm4 = vcmp.ne.s32.totalorder %v371_v56, 0  ;;  %vm477_vm5 = vcmp.lt.s32.totalorder %v371_v56, 0  ;;  %v501_v0 = vadd.s32 12, %v371_v56  ;;  %v949_v3 = vunpack.c.l.bf16 %v948_v62  ;;  %vm1315_vm9 = vmand %vm1276_vm0, %vm540_vm15  ;;  %v973_v38 = vld [vmem:[%s1264_s10 + $0x18] sm:$0xff]  }
  0x24   : > { %v950_v4 = vunpack.c.h.bf16 %v948_v62  ;;  %vm466_vm7 = vcmp.ne.s32.totalorder %v1281_v60, 0  ;;  %v953_v8 = vunpack.c.l.bf16 %v971_v5  ;;  %v512_v10 = vsel %vm488_vm6, %v500_v55, %v360_v46  ;;  %vm1304_vm8 = vmand %vm477_vm5, %vm465_vm4 }
  0x25   : > { %v954_v11 = vunpack.c.h.bf16 %v971_v5  ;;  %v957_v13 = vunpack.c.l.bf16 %v1296_v6  ;;  %v285_v14 = vmul.f32 %v970_v2, %v1269_v57  ;;  %v274_v15 = vmul.f32 %v949_v3, %v1269_v57  ;;  %vm1344_vm14 = vmand %vm1287_vm3, %vm540_vm15 }
  0x26   : > { %v275_v17 = vmul.f32 %v950_v4, %v1269_v57  ;;  %vm1320_vm10 = vcmp.lt.s32.totalorder %v512_v10, 8  ;;  %vm766_vm12 = vcmask 1043458   ;;  %vm767_vm13 = vsmask.f32 7946 }
  0x27   : > { %v276_v21 = vmul.f32 %v953_v8, %v1269_v57  ;;  %v277_v22 = vmul.f32 %v954_v11, %v1269_v57  ;;  %v513_v23 = vsel %vm1304_vm8, %v501_v0, %v371_v56  ;;  %v278_v24 = vmul.f32 %v957_v13, %v1269_v57  ;;  %vm1353_vm5 = vmand %vm1320_vm10, %vm540_vm15 }
  0x28   : > { %v304_v25 = vadd.f32 %v1302_v7, %v285_v14  ;;  %v293_v27 = vadd.f32 %v1302_v7, %v274_v15  ;;  %v294_v28 = vadd.f32 %v1302_v7, %v275_v17  ;;  %vm525_vm0 = vcmp.lt.s32.totalorder %v513_v23, 8  ;;  %vm1388_vm10 = vmand %vm766_vm12, %vm767_vm13  ;;  %v783_v23 = vld [vmem:[%s1205_s29 + $0x34] sm:$0x7] }
  0x29   : > { %vm632_vm4 = vsmask.f32 6416  ;;  %v295_v30 = vadd.f32 %v1302_v7, %v276_v21  ;;  %v296_v32 = vadd.f32 %v1302_v7, %v277_v22  ;;  %v297_v33 = vadd.f32 %v1302_v7, %v278_v24  ;;  %vm544_vm8 = vmand %vm525_vm0, %vm540_vm15 }
  0x2a   : > { %vm478_vm3 = vcmp.lt.s32.totalorder %v1281_v60, 0  ;;  %v316_v34 = vmax.f32 %v304_v25, 0.0  ;;  %v305_v35 = vmax.f32 %v293_v27, 0.0  ;;  %v306_v36 = vmax.f32 %v294_v28, 0.0 }
  0x2b   : > { %vm1362_vm6 = vmand %vm478_vm3, %vm466_vm7  ;;  %v502_v40 = vadd.s32 12, %v1281_v60  ;;  %v307_v41 = vmax.f32 %v295_v30, 0.0  ;;  %v308_v42 = vmax.f32 %v296_v32, 0.0  ;;  %v309_v43 = vmax.f32 %v297_v33, 0.0 }
  0x2c   : > { %v1370_v44 = vadd.s32 72, %v1145_v1  ;;  %v588_v45 = vsel %vm1328_vm11, %v316_v34, 0.0  ;;  %v577_v46 = vsel %vm1315_vm9, %v305_v35, 0.0  ;;  %v578_v47 = vsel %vm1344_vm14, %v306_v36, 0.0  ;;  %vm1397_vm11 = vmor %vm597_vm1, %vm632_vm4 }
  0x2d   : > { %v514_v48 = vsel %vm1362_vm6, %v502_v40, %v1281_v60  ;;  %v946_v49 = vpack.c.bf16 %v588_v45, %v588_v45  ;;  %v935_v50 = vpack.c.bf16 %v577_v46, %v577_v46  ;;  %v936_v51 = vpack.c.bf16 %v578_v47, %v578_v47 }
  0x2e   : > { %v579_v54 = vsel %vm1353_vm5, %v307_v41, 0.0  ;;  %v580_v56 = vsel %vm544_vm8, %v308_v42, 0.0  ;;  %vm526_vm7 = vcmp.lt.s32.totalorder %v514_v48, 8  ;;  %v958_v58 = vunpack.c.h.bf16 %v1296_v6  ;;  %v974_v48 = vld [vmem:[%s1264_s10 + $0x20] sm:$0xff]  }
  0x2f   : > { %v937_v55 = vpack.c.bf16 %v579_v54, %v579_v54  ;;  %v744_v59 = vshrl.u32 %v946_v49, 16  ;;  %v747_v62 = vshll.u32 %v946_v49, 16  ;;  %v635_v63 = vshrl.u32 %v935_v50, 16  ;;  %vm545_vm9 = vmand %vm526_vm7, %vm540_vm15 }
  0x30   : > { %v638_v0 = vshll.u32 %v935_v50, 16  ;;  %v644_v2 = vshrl.u32 %v936_v51, 16  ;;  %v647_v3 = vshll.u32 %v936_v51, 16  ;;  %v938_v20 = vpack.c.bf16 %v580_v56, %v580_v56 }
  0x31   : > { %v654_v4 = vshrl.u32 %v937_v55, 16  ;;  %v657_v60 = vshll.u32 %v937_v55, 16  ;;  %v746_v5 = vrot.slane %v744_v59, 5  ;;  %v749_v8 = vrot.slane %v747_v62, 6 }
  0x32   : > { %v637_v10 = vrot.slane %v635_v63, 5  ;;  %v640_v11 = vrot.slane %v638_v0, 6  ;;  %v646_v13 = vrot.slane %v644_v2, 5  ;;  %v649_v14 = vrot.slane %v647_v3, 6 }
  0x33   : > { %v656_v15 = vrot.slane %v654_v4, 5  ;;  %v659_v16 = vrot.slane %v657_v60, 6  ;;  %v1393_v17 = vor.u32 %v749_v8, %v746_v5  ;;  %v581_v21 = vsel %vm545_vm9, %v309_v43, 0.0 }
  0x34   : > { %v641_v19 = vor.u32 %v640_v11, %v637_v10  ;;  %v650_v24 = vor.u32 %v649_v14, %v646_v13  ;;  %v939_v27 = vpack.c.bf16 %v581_v21, %v581_v21  ;;  %v391_v28 = vshrl.u32 %v1217_v26, 3 }
  0x35   : > { %v660_v25 = vor.u32 %v659_v16, %v656_v15  ;;  %v752_v29 = vrot.slane %v1393_v17, 4  ;;  %v664_v32 = vshrl.u32 %v938_v20, 16  ;;  %v667_v34 = vshll.u32 %v938_v20, 16 }
  0x36   : > { %v770_v30 = vsel %vm1388_vm10, %v641_v19, %v769_v12  ;;  %v642_v31 = vrot.slane %v641_v19, 4  ;;  %v652_v33 = vrot.slane %v650_v24, 4  ;;  %v674_v35 = vshrl.u32 %v939_v27, 16 }
  0x37   : > { %771 = vst [vmem:[%s1205_s29 + $0x4] sm:$0xc] %v770_v30  ;;  %v279_v36 = vmul.f32 %v958_v58, %v1269_v57  ;;  %v784_v26 = vsel %vm1185_vm2, %v752_v29, %v783_v23  ;;  %v666_v41 = vrot.slane %v664_v32, 5  ;;  %v677_v42 = vshll.u32 %v939_v27, 16 }
  0x38   : > { %v651_v40 = vsel %vm1397_vm11, %v642_v31, %v650_v24  ;;  %785 = vst [vmem:[%s1205_s29 + $0x34] sm:$0x7] %v784_v26  ;;  %v661_v43 = vsel %vm1397_vm11, %v652_v33, %v660_v25  ;;  %v662_v45 = vrot.slane %v660_v25, 4  ;;  %v669_v46 = vrot.slane %v667_v34, 6 }
  0x39   : > { %772 = vst [vmem:[%s1205_s29 + $0x8] sm:$0xf] %v651_v40  ;;  %v676_v47 = vrot.slane %v674_v35, 5  ;;  %773 = vst [vmem:[%s1205_s29 + $0xc] sm:$0xf] %v661_v43  ;;  %v679_v49 = vrot.slane %v677_v42, 6  ;;  %v961_v18 = vunpack.c.l.bf16 %v973_v38  ;;  %v962_v51 = vunpack.c.h.bf16 %v973_v38 }
  0x3a   : > { %v392_v50 = vmul.u32 12, %v391_v28  ;;  %v670_v54 = vor.u32 %v669_v46, %v666_v41  ;;  %v298_v55 = vadd.f32 %v1302_v7, %v279_v36  ;;  %v965_v0 = vunpack.c.l.bf16 %v974_v48 }
  0x3b   : > { %v1421_v56 = vmul.u32.u64.low 2863311531, %v1232_v37  ;;  %v1422_v58 = vmul.u32.u64.high 2863311531, %v1232_v37, %v1421_v56  ;;  %v1424_v59 = vor.u32 %v679_v49, %v676_v47  ;;  %v280_v63 = vmul.f32 %v961_v18, %v1269_v57 }
  0x3c   : > { %v393_v62 = vsub.s32 %v1167_v9, %v392_v50  ;;  %v671_v2 = vsel %vm1397_vm11, %v662_v45, %v670_v54  ;;  %v672_v3 = vrot.slane %v670_v54, 4  ;;  %v281_v8 = vmul.f32 %v962_v51, %v1269_v57 }
  0x3d   : > { %v1431_v4 = vmul.u32.u64.low 2863311531, %v1253_v52  ;;  %v1432_v60 = vmul.u32.u64.high 2863311531, %v1253_v52, %v1431_v4  ;;  %774 = vst [vmem:[%s1205_s29 + $0x10] sm:$0xf] %v671_v2  ;;  %v310_v10 = vmax.f32 %v298_v55, 0.0  ;;  %v299_v11 = vadd.f32 %v1302_v7, %v280_v63 }
  0x3e   : > { %vm467_vm1 = vcmp.ne.s32.totalorder %v393_v62, 0  ;;  %vm479_vm2 = vcmp.lt.s32.totalorder %v393_v62, 0  ;;  %v503_v5 = vadd.s32 12, %v393_v62  ;;  %v681_v9 = vsel %vm1397_vm11, %v672_v3, %v1424_v59 }
  0x3f   : > { %vm491_vm12 = vmand %vm479_vm2, %vm467_vm1  ;;  %v402_v12 = vshrl.u32 %v1422_v58, 3  ;;  %775 = vst [vmem:[%s1205_s29 + $0x14] sm:$0xf] %v681_v9  ;;  %v282_v14 = vmul.f32 %v965_v0, %v1269_v57  ;;  %v1444_v15 = vmul.u32.u64.low 2863311531, %v1256_v53  ;;  %v1445_v16 = vmul.u32.u64.high 2863311531, %v1256_v53, %v1444_v15 }
  0x40   : > { %v515_v13 = vsel %vm491_vm12, %v503_v5, %v393_v62  ;;  %v682_v19 = vrot.slane %v1424_v59, 4  ;;  %v1449_v21 = vadd.s32 80, %v1145_v1  ;;  %v311_v23 = vmax.f32 %v299_v11, 0.0  ;;  %v786_v3 = vld [vmem:[%s1205_s29 + $0x34] sm:$0xc] }
  0x41   : > { %vm527_vm13 = vcmp.lt.s32.totalorder %v515_v13, 8  ;;  %v403_v20 = vmul.u32 12, %v402_v12  ;;  %v300_v24 = vadd.f32 %v1302_v7, %v281_v8  ;;  %v413_v25 = vshrl.u32 %v1432_v60, 3 }
  0x42   : > { %vm546_vm14 = vmand %vm527_vm13, %vm540_vm15  ;;  %v966_v27 = vunpack.c.h.bf16 %v974_v48  ;;  %v1457_v30 = vmul.u32.u64.low 2863311531, %v1370_v44  ;;  %v1458_v31 = vmul.u32.u64.high 2863311531, %v1370_v44, %v1457_v30  ;;  %v1461_v1 = vadd.f32 %v1302_v7, %v282_v14 }
  0x43   : > { %v582_v28 = vsel %vm546_vm14, %v310_v10, 0.0  ;;  %v404_v29 = vsub.s32 %v1232_v37, %v403_v20  ;;  %v414_v33 = vmul.u32 12, %v413_v25  ;;  %v424_v34 = vshrl.u32 %v1445_v16, 3 }
  0x44   : > { %v940_v32 = vpack.c.bf16 %v582_v28, %v582_v28  ;;  %v283_v36 = vmul.f32 %v966_v27, %v1269_v57  ;;  %v312_v42 = vmax.f32 %v300_v24, 0.0  ;;  %v435_v43 = vshrl.u32 %v1458_v31, 3 }
  0x45   : > { %vm468_vm0 = vcmp.ne.s32.totalorder %v404_v29, 0  ;;  %vm480_vm4 = vcmp.lt.s32.totalorder %v404_v29, 0  ;;  %v504_v35 = vadd.s32 12, %v404_v29  ;;  %v415_v37 = vsub.s32 %v1253_v52, %v414_v33 }
  0x46   : > { %v684_v38 = vshrl.u32 %v940_v32, 16  ;;  %v687_v26 = vshll.u32 %v940_v32, 16  ;;  %vm492_vm5 = vmand %vm480_vm4, %vm468_vm0  ;;  %v425_v40 = vmul.u32 12, %v424_v34  ;;  %v969_v45 = vunpack.c.l.bf16 %v1284_v61 }
  0x47   : > { %v516_v41 = vsel %vm492_vm5, %v504_v35, %v404_v29  ;;  %vm469_vm6 = vcmp.ne.s32.totalorder %v415_v37, 0  ;;  %vm481_vm7 = vcmp.lt.s32.totalorder %v415_v37, 0  ;;  %v505_v48 = vadd.s32 12, %v415_v37 }
  0x48   : > { %v686_v46 = vrot.slane %v684_v38, 5  ;;  %v689_v47 = vrot.slane %v687_v26, 6  ;;  %vm528_vm3 = vcmp.lt.s32.totalorder %v516_v41, 8  ;;  %v313_v49 = vmax.f32 %v1461_v1, 0.0  ;;  %vm493_vm9 = vmand %vm481_vm7, %vm469_vm6 }
  0x49   : > { %vm547_vm8 = vmand %vm528_vm3, %vm540_vm15  ;;  %v426_v52 = vsub.s32 %v1256_v53, %v425_v40  ;;  %v302_v51 = vadd.f32 %v1302_v7, %v283_v36  ;;  %v436_v61 = vmul.u32 12, %v435_v43  ;;  %v517_v55 = vsel %vm493_vm9, %v505_v48, %v415_v37 }
  0x4a   : > { %v690_v50 = vor.u32 %v689_v47, %v686_v46  ;;  %v583_v18 = vsel %vm547_vm8, %v311_v23, 0.0  ;;  %vm529_vm12 = vcmp.lt.s32.totalorder %v517_v55, 8  ;;  %v284_v59 = vmul.f32 %v969_v45, %v1269_v57 }
  0x4b   : > { %v941_v54 = vpack.c.bf16 %v583_v18, %v583_v18  ;;  %vm470_vm1 = vcmp.ne.s32.totalorder %v426_v52, 0  ;;  %vm482_vm2 = vcmp.lt.s32.totalorder %v426_v52, 0  ;;  %v506_v53 = vadd.s32 12, %v426_v52  ;;  %vm548_vm14 = vmand %vm529_vm12, %vm540_vm15 }
  0x4c   : > { %v691_v56 = vsel %vm1397_vm11, %v682_v19, %v690_v50  ;;  %vm1475_vm13 = vmand %vm482_vm2, %vm470_vm1  ;;  %v692_v62 = vrot.slane %v690_v50, 4  ;;  %v437_v2 = vsub.s32 %v1370_v44, %v436_v61  ;;  %v584_v4 = vsel %vm548_vm14, %v312_v42, 0.0 }
  0x4d   : > { %776 = vst [vmem:[%s1205_s29 + $0x18] sm:$0xf] %v691_v56  ;;  %v694_v63 = vshrl.u32 %v941_v54, 16  ;;  %v697_v0 = vshll.u32 %v941_v54, 16  ;;  %v518_v60 = vsel %vm1475_vm13, %v506_v53, %v426_v52  ;;  %v942_v10 = vpack.c.bf16 %v584_v4, %v584_v4 }
  0x4e   : > { %v1488_v5 = vmul.u32.u64.low 2863311531, %v1449_v21  ;;  %v1489_v8 = vmul.u32.u64.high 2863311531, %v1449_v21, %v1488_v5  ;;  %vm530_vm0 = vcmp.lt.s32.totalorder %v518_v60, 8  ;;  %vm471_vm5 = vcmp.ne.s32.totalorder %v437_v2, 0 }
  0x4f   : > { %v696_v57 = vrot.slane %v694_v63, 5  ;;  %v699_v9 = vrot.slane %v697_v0, 6  ;;  %vm549_vm4 = vmand %vm530_vm0, %vm540_vm15  ;;  %vm483_vm3 = vcmp.lt.s32.totalorder %v437_v2, 0  ;;  %v507_v44 = vadd.s32 12, %v437_v2 }
  0x50   : > { %v787_v11 = vsel %vm1388_vm10, 0, %v786_v3  ;;  %v704_v13 = vshrl.u32 %v942_v10, 16  ;;  %v707_v14 = vshll.u32 %v942_v10, 16  ;;  %v585_v15 = vsel %vm549_vm4, %v313_v49, 0.0  ;;  %vm495_vm6 = vmand %vm483_vm3, %vm471_vm5 }
  0x51   : > { %v700_v12 = vor.u32 %v699_v9, %v696_v57  ;;  %788 = vst [vmem:[%s1205_s29 + $0x34] sm:$0xc] %v787_v11  ;;  %v943_v16 = vpack.c.bf16 %v585_v15, %v585_v15  ;;  %v314_v19 = vmax.f32 %v302_v51, 0.0  ;;  %v519_v20 = vsel %vm495_vm6, %v507_v44, %v437_v2 }
  0x52   : > { %v446_v23 = vshrl.u32 %v1489_v8, 3  ;;  %v706_v27 = vrot.slane %v704_v13, 5  ;;  %v709_v28 = vrot.slane %v707_v14, 6  ;;  %vm531_vm10 = vcmp.lt.s32.totalorder %v519_v20, 8 }
  0x53   : > { %v701_v24 = vsel %vm1397_vm11, %v692_v62, %v700_v12  ;;  %v702_v25 = vrot.slane %v700_v12, 4  ;;  %v714_v6 = vshrl.u32 %v943_v16, 16  ;;  %v717_v29 = vshll.u32 %v943_v16, 16  ;;  %vm550_vm8 = vmand %vm531_vm10, %vm540_vm15 }
  0x54   : > { %777 = vst [vmem:[%s1205_s29 + $0x1c] sm:$0xf] %v701_v24  ;;  %v447_v30 = vmul.u32 12, %v446_v23  ;;  %v710_v31 = vor.u32 %v709_v28, %v706_v27  ;;  %v303_v32 = vadd.f32 %v1302_v7, %v284_v59  ;;  %v586_v34 = vsel %vm550_vm8, %v314_v19, 0.0 }
  0x55   : > { %v716_v33 = vrot.slane %v714_v6, 5  ;;  %v719_v1 = vrot.slane %v717_v29, 6  ;;  %v944_v26 = vpack.c.bf16 %v586_v34, %v586_v34 }
  0x56   : > { %v448_v35 = vsub.s32 %v1449_v21, %v447_v30  ;;  %v711_v36 = vsel %vm1397_vm11, %v702_v25, %v710_v31  ;;  %v712_v38 = vrot.slane %v710_v31, 4  ;;  %v315_v7 = vmax.f32 %v303_v32, 0.0 }
  0x57   : > { %778 = vst [vmem:[%s1205_s29 + $0x20] sm:$0xf] %v711_v36  ;;  %v720_v37 = vor.u32 %v719_v1, %v716_v33  ;;  %v724_v41 = vshrl.u32 %v944_v26, 16  ;;  %v727_v42 = vshll.u32 %v944_v26, 16 }
  0x58   : > { %vm472_vm7 = vcmp.ne.s32.totalorder %v448_v35, 0  ;;  %vm484_vm9 = vcmp.lt.s32.totalorder %v448_v35, 0  ;;  %v508_v40 = vadd.s32 12, %v448_v35 }
  0x59   : > { %vm496_vm1 = vmand %vm484_vm9, %vm472_vm7  ;;  %v721_v43 = vsel %vm1397_vm11, %v712_v38, %v720_v37  ;;  %v722_v21 = vrot.slane %v720_v37, 4  ;;  %v726_v46 = vrot.slane %v724_v41, 5  ;;  %v729_v47 = vrot.slane %v727_v42, 6 }
  0x5a   : > { %v520_v45 = vsel %vm496_vm1, %v508_v40, %v448_v35  ;;  %779 = vst [vmem:[%s1205_s29 + $0x24] sm:$0xf] %v721_v43 }
  0x5b   : > { %vm532_vm2 = vcmp.lt.s32.totalorder %v520_v45, 8  ;;  %v730_v48 = vor.u32 %v729_v47, %v726_v46 }
  0x5c   : > { %vm551_vm12 = vmand %vm532_vm2, %vm540_vm15 }
  0x5d   : > { %v587_v49 = vsel %vm551_vm12, %v315_v7, 0.0  ;;  %v731_v50 = vsel %vm1397_vm11, %v722_v21, %v730_v48  ;;  %v732_v61 = vrot.slane %v730_v48, 4 }
  0x5e   : > { %v945_v52 = vpack.c.bf16 %v587_v49, %v587_v49  ;;  %780 = vst [vmem:[%s1205_s29 + $0x28] sm:$0xf] %v731_v50 }
  0x60   : > { %v734_v18 = vshrl.u32 %v945_v52, 16  ;;  %v737_v51 = vshll.u32 %v945_v52, 16 }
  0x62   : > { %v736_v54 = vrot.slane %v734_v18, 5  ;;  %v739_v55 = vrot.slane %v737_v51, 6 }
  0x64   : > { %v740_v56 = vor.u32 %v739_v55, %v736_v54 }
  0x66   : > { %v741_v58 = vsel %vm1397_vm11, %v732_v61, %v740_v56  ;;  %v742_v53 = vrot.slane %v740_v56, 4 }
  0x67   : > { %781 = vst [vmem:[%s1205_s29 + $0x2c] sm:$0xf] %v741_v58 }
  0x68   : > { %v751_v39 = vsel %vm1397_vm11, %v742_v53, %v1393_v17 }
  0x69   : > { %782 = vst [vmem:[%s1205_s29 + $0x30] sm:$0xf] %v751_v39 }
  0x6a PF: > { %s13_s16 = sadd.s32 1, %s1083_s16   ;;  %s1576_s12 = smov %s1075_s14 }
  0x6b   : > { %p10_p12 = scmp.ge.s32.totalorder %s13_s16, 22   ;;  %s1577_s13 = smov %s1079_s15 }
  0x6c   : > { %s1578_s14 = smov %s1581_s17  ;;  %s1579_s15 = smov %s1585_s18 }
  0x6d   :  { %12 = sbr.rel (!%p10_p12) target bundleno = 3 (0x3), region = 62 }

// kernel: residual_block_forward.5
= control target key start
LH: loop header
LB: loop body
LE: loop exit
PB: predicated region body
PF: predicated region fallthrough
CT: control target
= control target key end

     0   :  { %s2893_s12 = smov 0   ;;  %s2895_s13 = smov 0   ;;  %s3606_s0 = inlined_call_operand.vmem [shape: bf16[2,10,132,4], index: 0, kind: input, shape index: {}]   ;;  %s3607_s1 = inlined_call_operand.vmem [shape: bf16[3,9,4,128], index: 1, kind: input, shape index: {}]   ;;  %s3608_s2 = inlined_call_operand.vmem [shape: bf16[2,8,96,128], index: 2, kind: output, shape index: {0}]   ;;  %s3609_s3 = inlined_call_operand.vmem [shape: f32[2,8,2,128], index: 3, kind: output, shape index: {1}]  }
   0x1   :  { %s2897_s14 = smov 0   ;;  %s2899_s15 = smov 0  }
   0x2   :  { %s2901_s16 = smov 0   ;;  %s2903_s17 = smov 0  }
   0x3   :  { %s2905_s18 = smov 0  }
   0x4 LB: > { %s26_s19 = sadd.s32 1, %s2858_s15  ;;  %s29_s20 = sadd.s32 1, %s2862_s16  ;;  %s2870_s18 = sphi %s2905_s18, %s14_s18   ;;  %s2866_s17 = sphi %s2903_s17, %s3637_s17   ;;  %s2862_s16 = sphi %s2901_s16, %s3636_s16   ;;  %s2858_s15 = sphi %s2899_s15, %s3635_s15   ;;  %s2854_s14 = sphi %s2897_s14, %s3634_s14   ;;  %s2850_s13 = sphi %s2895_s13, %s3633_s13   ;;  %s2846_s12 = sphi %s2893_s12, %s3632_s12  }
   0x5   : > { %p27_p0 = scmp.ge.s32.totalorder %s26_s19, 3  ;;  %p2315_p1 = scmp.ge.s32.totalorder %s2870_s18, 1 }
   0x6   : > { %p173_p2 = scmp.lt.s32.totalorder %s2870_s18, 49  ;;  %s33_s21 = sadd.s32 1, %s2866_s17 }
   0x7   : > { %s3639_s19 = smov (%p27_p0, %s26_s19), 0  ;;  %s3641_s20 = smov (!%p27_p0, %s29_s20), %s2862_s16 }
   0x8   : > { %p174_p3 = pnand %p2315_p1, %p173_p2  ;;  %p31_p4 = scmp.ge.s32.totalorder %s3641_s20, 8 }
   0xa   : > { %s3643_s20 = smov (%p31_p4, %s3641_s20), 0  ;;  %s3645_s21 = smov (!%p31_p4, %s33_s21), %s2866_s17 }
   0xb   : > { %p35_p5 = scmp.ge.s32.totalorder %s3645_s21, 2  ;;  %177 = sbr.rel (%p174_p3) target bundleno = 444 (0x1bc), region = 28 }
   0xd   : > { %s3647_s21 = smov (%p35_p5, %s3645_s21), 0 }
  0x10   : > { %s2451_s22 = smul.u32 18, %s2846_s12  ;;  %s214_s23 = sadd.s32 %s2846_s12, %s2850_s13  ;;  %vm369_vm0 = vcmask 1041408   ;;  %vm297_vm1 = vsmask.f32 7424  ;;  %vm350_vm2 = vcmask 31744   ;;  %vm558_vm3 = vcmask 1046528  }
  0x11   : > { %p215_p6 = scmp.lt.s32.totalorder %s2854_s14, 1  ;;  %p217_p7 = scmp.lt.s32.totalorder %s214_s23, 9  ;;  %vm872_vm4 = vsmask.f32 5376  ;;  %vm736_vm5 = vcmask 1045504   ;;  %vm1057_vm6 = vcmask 1044480  }
  0x12   : > { %s2945_s26 = scalar_lea.vmem %s3607_s1, %s2451_s22  ;;  %p227_p8 = scmp.lt.s32.totalorder %s2850_s13, 7 }
  0x13   : > { %v2322_v0 = vld [vmem:[%s2945_s26 + $0x2] sm:$0x3]  ;;  %s3649_s14 = smov (!%p215_p6, %s2854_s14), 1  ;;  %v258_v1 = vld [vmem:[%s2945_s26] sm:$0x3]  ;;  %s3651_s23 = smov (!%p217_p7, %s214_s23), 9 }
  0x14   : > { %2691 = vmatprep.subr.msk.bf16.mxu1 %vm369_vm0, %v2322_v0  ;;  %v371_v2 = vsel %vm369_vm0, %v2322_v0, 0  ;;  %2690 = vmatprep.subr.msk.bf16.mxu0 %vm369_vm0, %v2322_v0  ;;  %v2954_v3 = vld [vmem:[%s2945_s26 + $0x4] sm:$0x3]  ;;  %s2701_s27 = smul.u32 170, %s3649_s14  ;;  %s2318_s29 = sshll.u32 %s3649_s14, 3  ;;  %v467_v4 = vsel %vm369_vm0, %v258_v1, 0 }
  0x15   : > { %2689 = vmatpush3.bf16.msra.mxu1 %v371_v2  ;;  %2563 = vmatpush3.bf16.msra.mxu0 %v371_v2  ;;  %s2700_s28 = smul.u32 17, %s3651_s23  ;;  %s3653_s13 = smov (!%p227_p8, %s2850_s13), 7  ;;  %v2352_v38 = vld [vmem:[%s2945_s26 + $0x6] sm:$0x3]  ;;  %v591_v51 = vsel %vm369_vm0, %v2954_v3, 0 }
  0x16   : > { %2692 = vmatprep.subr.msk.bf16.mxu1 %vm369_vm0, %v258_v1  ;;  %2693 = vmatprep.subr.msk.bf16.mxu0 %vm369_vm0, %v2954_v3  ;;  %s2703_s4 = smul.u32 96, %s3649_s14  ;;  %s239_s10 = sadd.s32 %s2318_s29, %s3653_s13  ;;  %v2367_v53 = vld [vmem:[%s2945_s26 + $0x8] sm:$0x3] }
  0x17   : > { %s221_s30 = sadd.s32 %s2701_s27, %s2700_s28  ;;  %s2702_s6 = smul.u32 12, %s3653_s13  ;;  %v954_v3 = vsel %vm369_vm0, %v2367_v53, 0 }
  0x18   : > { %s2316_s5 = sshll.u32 %s221_s30, 2  ;;  %s2319_s14 = sshll.u32 %s239_s10, 1 }
  0x19   : > { %s2965_s9 = scalar_lea.vmem %s3606_s0, %s2316_s5  ;;  %s231_s11 = sadd.s32 %s2703_s4, %s2702_s6 }
  0x1a   : > { %v2969_v5 = vld [vmem:[%s2965_s9 + $0x10] sm:$0xff]   ;;  %s2317_s22 = sshll.u32 %s231_s11, 2  ;;  %s2974_s25 = scalar_lea.vmem %s3609_s3, %s2319_s14  ;;  %v2977_v6 = vld [vmem:[%s2965_s9 + $0x18] sm:$0xff]   ;;  %v2989_v11 = vld [vmem:[%s2965_s9 + $0x20] sm:$0xff]  }
  0x1b   : > { %s2982_s28 = scalar_lea.vmem %s3608_s2, %s2317_s22  ;;  %v314_v7 = vshll.u32 %v2969_v5, 16  ;;  %v318_v8 = vshrl.u32 %v2969_v5, 16  ;;  %v322_v9 = vshll.u32 %v2977_v6, 16  ;;  %v326_v10 = vshrl.u32 %v2977_v6, 16  ;;  %v243_v12 = vld [vmem:[%s2965_s9] sm:$0xf] }
  0x1c   : > { %v2993_v13 = vld [vmem:[%s2965_s9 + $0x8] sm:$0xff]   ;;  %v244_v15 = vld [vmem:[%s2965_s9 + $0x4] sm:$0xf]  ;;  %v330_v18 = vshll.u32 %v2989_v11, 16  ;;  %v334_v23 = vshrl.u32 %v2989_v11, 16  ;;  %v562_v58 = vrot.slane %v2969_v5, 1 }
  0x1d   : > { %v316_v14 = vrot.slane %v314_v7, 1  ;;  %v2997_v16 = vld [vmem:[%s2965_s9 + $0x28] sm:$0xff]   ;;  %v324_v17 = vrot.slane %v322_v9, 1  ;;  %v2323_v19 = vcombine.low %v243_v12, %v244_v15  ;;  %v306_v20 = vshll.u32 %v2993_v13, 16  ;;  %v550_v36 = vld [vmem:[%s2965_s9] sm:$0xe] }
  0x1e   : > { %v310_v22 = vshrl.u32 %v2993_v13, 16  ;;  %v332_v25 = vrot.slane %v330_v18, 1  ;;  %v338_v30 = vshll.u32 %v2997_v16, 16  ;;  %v3006_v31 = vld [vmem:[%s2965_s9 + $0x30] ss:$0 sps:$4 sm:$0x11]   ;;  %v2344_v42 = vcombine.low %v550_v36, %v244_v15 }
  0x1f   : > { %v320_v21 = vor.u32 %v318_v8, %v316_v14  ;;  %v328_v24 = vor.u32 %v326_v10, %v324_v17  ;;  %v299_v26 = vshrl.u32 %v2323_v19, 16  ;;  %v301_v27 = vshll.u32 %v2323_v19, 16  ;;  %v686_v44 = vld [vmem:[%s2965_s9 + $0x4] sm:$0xc]  ;;  %v3018_v45 = vld [vmem:[%s2965_s9 + $0x8] sm:$0xf] }
  0x20   : > { %v308_v29 = vrot.slane %v306_v20, 1  ;;  %v342_v32 = vshrl.u32 %v2997_v16, 16  ;;  %v336_v35 = vor.u32 %v334_v23, %v332_v25  ;;  %v560_v37 = vrot.slane %v2993_v13, 1  ;;  %v3036_v57 = vld [vmem:[%s2965_s9 + $0xc] sm:$0xff]   ;;  %v3044_v60 = vld [vmem:[%s2965_s9 + $0x14] sm:$0xff]   ;;  %v3053_v2 = vld [vmem:[%s2965_s9 + $0x1c] sm:$0xff]  }
  0x21   : > { %v325_v28 = vsel %vm297_vm1, %v320_v21, %v324_v17  ;;  %v333_v33 = vsel %vm297_vm1, %v328_v24, %v332_v25  ;;  %v303_v34 = vrot.slane %v301_v27, 1  ;;  %v340_v40 = vrot.slane %v338_v30, 1  ;;  %v3061_v10 = vld [vmem:[%s2945_s26 + $0xc] sm:$0x3]  ;;  %v3069_v21 = vld [vmem:[%s2945_s26 + $0xa] sm:$0x3] }
  0x22   : > { %2568 = vmatprep.mubr.msk.bf16.mxu1 %vm350_vm2, %v325_v28  ;;  %v312_v39 = vor.u32 %v310_v22, %v308_v29  ;;  %v346_v41 = vshll.u32 %v3006_v31, 16  ;;  %v559_v52 = vrot.slane %v2344_v42, 1  ;;  %v3033_v56 = vcombine.low %v686_v44, %v3018_v45  ;;  %v3078_v25 = vld [vmem:[%s2965_s9 + $0x24] sm:$0xff]   ;;  %v1345_v36 = vld [vmem:[%s2965_s9 + $0xc] sm:$0xf]  ;;  %p2422_p9 = scmp.ne.s32.totalorder %s2846_s12, 0 }
  0x23   : > { %2569 = vmatmul.mubr.msk.bf16.vlgmr.msra.gmra.mxu1 %vm350_vm2, %v333_v33  ;;  %v304_v43 = vor.u32 %v303_v34, %v299_v26  ;;  %v341_v47 = vsel %vm297_vm1, %v336_v35, %v340_v40  ;;  %v344_v48 = vor.u32 %v342_v32, %v340_v40  ;;  %v564_v59 = vrot.slane %v2977_v6, 1  ;;  %v3081_v26 = vld [vmem:[%s2965_s9 + $0x2c] sm:$0xff]   ;;  %v2812_v42 = vld [vmem:[%s2965_s9 + $0x24] sm:$0xff]  }
  0x24   : > { %2577 = vmatpush3.bf16.msra.mxu1 %v467_v4  ;;  %v317_v46 = vsel %vm297_vm1, %v312_v39, %v316_v14  ;;  %v348_v49 = vrot.slane %v346_v41, 1  ;;  %2572 = vmatprep.mubr.msk.bf16.mxu1 %vm350_vm2, %v341_v47  ;;  %v561_v55 = vsel %vm558_vm3, %v559_v52, %v560_v37  ;;  %v874_v61 = vshrl.u32 %v3033_v56, 16  ;;  %v2813_v47 = vld [vmem:[%s2965_s9 + $0x2c] sm:$0xff]  }
  0x25   : > { %2694 = vmatprep.subr.msk.bf16.mxu1 %vm369_vm0, %v2352_v38  ;;  %v309_v50 = vsel %vm297_vm1, %v304_v43, %v308_v29  ;;  %v882_v62 = vshrl.u32 %v3036_v57, 16  ;;  %v885_v63 = vshll.u32 %v3036_v57, 16  ;;  %v563_v0 = vsel %vm558_vm3, %v560_v37, %v562_v58  ;;  %v1346_v37 = vld [vmem:[%s2965_s9 + $0x10] sm:$0xf] }
  0x26   : > { %2564 = vmatprep.mubr.msk.bf16.mxu0 %vm350_vm2, %v309_v50  ;;  %v349_v54 = vsel %vm297_vm1, %v344_v48, %v348_v49  ;;  %v877_v1 = vshll.u32 %v3033_v56, 16  ;;  %v565_v4 = vsel %vm558_vm3, %v562_v58, %v564_v59  ;;  %v769_v7 = vsel %vm369_vm0, %v2352_v38, 0  ;;  %v2811_v38 = vld [vmem:[%s2965_s9 + $0x1c] sm:$0xff]  }
  0x27   : > { %2565 = vmatmul.mubr.msk.bf16.vlgmr.msra.gmra.mxu0 %vm350_vm2, %v317_v46  ;;  %v566_v8 = vrot.slane %v2989_v11, 1  ;;  %v891_v9 = vshrl.u32 %v3044_v60, 16  ;;  %v876_v12 = vrot.slane %v874_v61, 2  ;;  %v884_v14 = vrot.slane %v882_v62, 2  ;;  %v1561_v46 = vld [vmem:[%s2965_s9 + $0xc] sm:$0xe] }
  0x28   : > { %2591 = vmatpush3.bf16.msra.mxu0 %v591_v51  ;;  %2592 = vmatprep.mubr.msk.bf16.mxu0 %vm350_vm2, %v561_v55  ;;  %v887_v15 = vrot.slane %v885_v63, 3  ;;  %v894_v17 = vshll.u32 %v3044_v60, 16  ;;  %v879_v18 = vrot.slane %v877_v1, 3  ;;  %v568_v20 = vrot.slane %v2997_v16, 1 }
  0x29   : > { %2695 = vmatprep.subr.msk.bf16.mxu0 %vm369_vm0, %v2367_v53  ;;  %v903_v22 = vshll.u32 %v3053_v2, 16  ;;  %v570_v23 = vrot.slane %v3006_v31, 1  ;;  %v893_v24 = vrot.slane %v891_v9, 2  ;;  %v737_v28 = vrot.slane %v3033_v56, 2 }
  0x2a   : > { %v896_v27 = vrot.slane %v894_v17, 3  ;;  %v740_v29 = vrot.slane %v3044_v60, 2  ;;  %v567_v30 = vsel %vm558_vm3, %v564_v59, %v566_v8  ;;  %v880_v31 = vor.u32 %v879_v18, %v876_v12 }
  0x2b   : > { %2573 = vmatmul.mubr.msk.bf16.gmra.mxu1 %vm350_vm2, %v349_v54  ;;  %v3089_v32 = vor.u32 %v887_v15, %v884_v14  ;;  %v569_v34 = vsel %vm558_vm3, %v566_v8, %v568_v20  ;;  %v905_v35 = vrot.slane %v903_v22, 3  ;;  %v909_v39 = vshrl.u32 %v3078_v25, 16 }
  0x2c   : > { %2578 = vmatprep.mubr.msk.bf16.mxu1 %vm350_vm2, %v2323_v19  ;;  %v900_v19 = vshrl.u32 %v3053_v2, 16  ;;  %v912_v40 = vshll.u32 %v3078_v25, 16  ;;  %v918_v41 = vshrl.u32 %v3081_v26, 16  ;;  %v571_v43 = vsel %vm558_vm3, %v568_v20, %v570_v23  ;;  %v2815_v20 = vld [vmem:[%s2965_s9 + $0x3c] ss:$0 sps:$4 sm:$0x11]  }
  0x2d   : > { %v921_v44 = vshll.u32 %v3081_v26, 16  ;;  %v889_v48 = vsel %vm872_vm4, %v880_v31, %v3089_v32  ;;  %v897_v49 = vor.u32 %v896_v27, %v893_v24  ;;  %v2400_v51 = vcombine.low %v1345_v36, %v1346_v37 }
  0x2e   : > { %v902_v33 = vrot.slane %v900_v19, 2  ;;  %v2415_v53 = vcombine.low %v1561_v46, %v1346_v37  ;;  %v1572_v55 = vrot.slane %v2811_v38, 1  ;;  %v1574_v1 = vrot.slane %v2812_v42, 1 }
  0x2f   : > { %2593 = vmatmul.mubr.msk.bf16.vlgmr.msra.gmra.mxu0 %vm350_vm2, %v563_v0  ;;  %v1396_v56 = vshrl.u32 %v2400_v51, 16  ;;  %v1398_v58 = vshll.u32 %v2400_v51, 16  ;;  %v1411_v0 = vshll.u32 %v2811_v38, 16  ;;  %v1576_v8 = vrot.slane %v2813_v47, 1 }
  0x30   : > { %2619 = vmatpush3.bf16.msra.mxu0 %v954_v3  ;;  %2596 = vmatprep.mubr.msk.bf16.mxu0 %vm350_vm2, %v565_v4  ;;  %v3113_v52 = vor.u32 %v905_v35, %v902_v33  ;;  %v1569_v62 = vrot.slane %v2415_v53, 1  ;;  %v2814_v3 = vld [vmem:[%s2965_s9 + $0x34] sm:$0xff]   ;;  %v1415_v9 = vshrl.u32 %v2811_v38, 16  ;;  %v3127_v14 = vsel %vm558_vm3, %v1572_v55, %v1574_v1 }
  0x31   : > { %2697 = vmatprep.subr.msk.bf16.mxu0 %vm369_vm0, %v3061_v10  ;;  %v1400_v4 = vrot.slane %v1398_v58, 1  ;;  %v1413_v12 = vrot.slane %v1411_v0, 1  ;;  %v3130_v18 = vsel %vm558_vm3, %v1574_v1, %v1576_v8  ;;  %v1423_v19 = vshrl.u32 %v2812_v42, 16 }
  0x32   : > { %v1427_v24 = vshll.u32 %v2813_v47, 16  ;;  %v1578_v27 = vrot.slane %v2814_v3, 1  ;;  %v1580_v31 = vrot.slane %v2815_v20, 1  ;;  %v1431_v33 = vshrl.u32 %v2813_v47, 16 }
  0x33   : > { %2579 = vmatmul.mubr.msk.bf16.vlgmr.msra.gmra.mxu1 %vm350_vm2, %v2993_v13  ;;  %v738_v13 = vrot.slane %v3036_v57, 2  ;;  %v1401_v15 = vor.u32 %v1400_v4, %v1396_v56  ;;  %v1417_v22 = vor.u32 %v1415_v9, %v1413_v12  ;;  %v1435_v38 = vshll.u32 %v2814_v3, 16 }
  0x34   : > { %2605 = vmatpush3.bf16.msra.mxu1 %v769_v7  ;;  %2582 = vmatprep.mubr.msk.bf16.mxu1 %vm350_vm2, %v2969_v5  ;;  %v2809_v5 = vld [vmem:[%s2965_s9 + $0x14] sm:$0xff]   ;;  %v1429_v35 = vrot.slane %v1427_v24, 1  ;;  %v3145_v36 = vsel %vm558_vm3, %v1576_v8, %v1578_v27  ;;  %v3150_v37 = vsel %vm558_vm3, %v1578_v27, %v1580_v31  ;;  %v898_v46 = vsel %vm872_vm4, %v3089_v32, %v897_v49 }
  0x35   : > { %2696 = vmatprep.subr.msk.bf16.mxu1 %vm369_vm0, %v3069_v21  ;;  %v739_v50 = vsel %vm736_vm5, %v737_v28, %v738_v13  ;;  %v1570_v54 = vrot.slane %v2809_v5, 1  ;;  %v1403_v59 = vshll.u32 %v2809_v5, 16  ;;  %v1407_v61 = vshrl.u32 %v2809_v5, 16 }
  0x36   : > { %v742_v47 = vrot.slane %v3053_v2, 2  ;;  %v911_v53 = vrot.slane %v909_v39, 2  ;;  %v1250_v32 = vsel %vm369_vm0, %v3061_v10, 0  ;;  %v920_v58 = vrot.slane %v918_v41, 2 }
  0x37   : > { %2597 = vmatmul.mubr.msk.bf16.gmra.mxu0 %vm350_vm2, %v567_v30  ;;  %v3120_v63 = vsel %vm558_vm3, %v1570_v54, %v1572_v55  ;;  %v1405_v7 = vrot.slane %v1403_v59, 1  ;;  %v1437_v55 = vrot.slane %v1435_v38, 1  ;;  %v923_v59 = vrot.slane %v921_v44, 3 }
  0x38   : > { %2600 = vmatprep.mubr.msk.bf16.mxu0 %vm350_vm2, %v569_v34  ;;  %v741_v10 = vsel %vm736_vm5, %v738_v13, %v740_v29  ;;  %v1090_v41 = vsel %vm369_vm0, %v3069_v21, 0  ;;  %v743_v44 = vsel %vm736_vm5, %v740_v29, %v742_v47  ;;  %v744_v21 = vrot.slane %v3078_v25, 2 }
  0x39   : > { %v1409_v17 = vor.u32 %v1407_v61, %v1405_v7  ;;  %v3136_v28 = vsel %vm297_vm1, %v1401_v15, %v1405_v7  ;;  %v2414_v61 = vld [vmem:[%s2945_s26 + $0x10] sm:$0x3]  ;;  %v924_v13 = vor.u32 %v923_v59, %v920_v58  ;;  %v746_v8 = vrot.slane %v3081_v26, 2  ;;  %v2800_v15 = vld [vmem:[%s2965_s9 + $0x34] ss:$0 sps:$4 sm:$0x33]  }
  0x3a   : > { %v1059_v27 = vrot.slane %v3036_v57, 3  ;;  %v1063_v57 = vrot.slane %v3053_v2, 3  ;;  %v1601_v38 = vsel %vm369_vm0, %v2414_v61, 0  ;;  %v1065_v2 = vrot.slane %v3078_v25, 3 }
  0x3b   : > { %2583 = vmatmul.mubr.msk.bf16.gmra.mxu1 %vm350_vm2, %v2977_v6  ;;  %v3124_v6 = vsel %vm558_vm3, %v1569_v62, %v1570_v54  ;;  %v3139_v30 = vsel %vm297_vm1, %v1409_v17, %v1413_v12  ;;  %v914_v54 = vrot.slane %v912_v40, 3  ;;  %v1049_v12 = vld [vmem:[%s2965_s9 + $0x4] sm:$0x8] }
  0x3c   : > { %2586 = vmatprep.mubr.msk.bf16.mxu1 %vm350_vm2, %v2989_v11  ;;  %v1419_v11 = vshll.u32 %v2812_v42, 16  ;;  %v1439_v42 = vshrl.u32 %v2814_v3, 16  ;;  %v2399_v3 = vld [vmem:[%s2945_s26 + $0xe] sm:$0x3] }
  0x3e   : > { %v1421_v23 = vrot.slane %v1419_v11, 1  ;;  %v1441_v40 = vor.u32 %v1439_v42, %v1437_v55  ;;  %v745_v11 = vsel %vm736_vm5, %v742_v47, %v744_v21  ;;  %v2806_v47 = vld [vmem:[%s2965_s9 + $0x2c] sm:$0xff]  }
  0x3f   : > { %2601 = vmatmul.mubr.msk.bf16.gmra.mxu0 %vm350_vm2, %v571_v43  ;;  %v1443_v43 = vshll.u32 %v2815_v20, 16  ;;  %v748_v20 = vrot.slane %v2800_v15, 2 }
  0x40   : > { %2620 = vmatprep.mubr.msk.bf16.mxu0 %vm350_vm2, %v889_v48  ;;  %v3142_v5 = vsel %vm297_vm1, %v1417_v22, %v1421_v23  ;;  %v1425_v34 = vor.u32 %v1423_v19, %v1421_v23  ;;  %v3157_v48 = vld [vmem:[%s2965_s9 + $0x34] ss:$0 sps:$4 sm:$0x77]   ;;  %v2377_v19 = vcombine.low %v1049_v12, %v3018_v45  ;;  %v2801_v23 = vld [vmem:[%s2965_s9 + $0xc] sm:$0xff]  }
  0x41   : > { %v1445_v56 = vrot.slane %v1443_v43, 1  ;;  %v927_v62 = vshrl.u32 %v3157_v48, 16  ;;  %v930_v0 = vshll.u32 %v3157_v48, 16  ;;  %v749_v31 = vsel %vm736_vm5, %v746_v8, %v748_v20 }
  0x42   : > { %v3160_v51 = vsel %vm297_vm1, %v1425_v34, %v1429_v35  ;;  %v1058_v24 = vrot.slane %v2377_v19, 3  ;;  %v1061_v34 = vrot.slane %v3044_v60, 3  ;;  %v1466_v43 = vsel %vm369_vm0, %v2399_v3, 0  ;;  %v2805_v60 = vld [vmem:[%s2965_s9 + $0x24] sm:$0xff]  }
  0x43   : > { %2587 = vmatmul.mubr.msk.bf16.gmra.mxu1 %vm350_vm2, %v2997_v16  ;;  %v1433_v16 = vor.u32 %v1431_v33, %v1429_v35  ;;  %v3193_v1 = vsel %vm297_vm1, %v1441_v40, %v1445_v56  ;;  %v929_v4 = vrot.slane %v927_v62, 2  ;;  %v932_v7 = vrot.slane %v930_v0, 3  ;;  %v2802_v33 = vld [vmem:[%s2965_s9 + $0x14] sm:$0xff]   ;;  %v2804_v35 = vld [vmem:[%s2965_s9 + $0x1c] sm:$0xff]  }
  0x44   : > { %2606 = vmatprep.mubr.msk.bf16.mxu1 %vm350_vm2, %v739_v50  ;;  %v907_v50 = vsel %vm872_vm4, %v897_v49, %v3113_v52  ;;  %v915_v49 = vor.u32 %v914_v54, %v911_v53  ;;  %v1060_v45 = vsel %vm1057_vm6, %v1058_v24, %v1059_v27  ;;  %v1062_v42 = vsel %vm1057_vm6, %v1059_v27, %v1061_v34 }
  0x45   : > { %v3176_v39 = vsel %vm297_vm1, %v1433_v16, %v1437_v55  ;;  %v933_v17 = vor.u32 %v932_v7, %v929_v4  ;;  %v1067_v16 = vrot.slane %v3081_v26, 3  ;;  %v1066_v53 = vsel %vm1057_vm6, %v1063_v57, %v1065_v2  ;;  %v2807_v55 = vld [vmem:[%s2965_s9 + $0x34] sm:$0xff]  }
  0x46   : > { %v916_v29 = vsel %vm872_vm4, %v3113_v52, %v915_v49  ;;  %v925_v9 = vsel %vm872_vm4, %v915_v49, %v924_v13  ;;  %v747_v52 = vsel %vm736_vm5, %v744_v21, %v746_v8  ;;  %v1069_v56 = vrot.slane %v3157_v48, 3 }
  0x47   : > { %2621 = vmatmul.mubr.msk.bf16.vlgmr.msra.gmra.mxu0 %vm350_vm2, %v898_v46  ;;  %v934_v22 = vsel %vm872_vm4, %v924_v13, %v933_v17  ;;  %v1064_v46 = vsel %vm1057_vm6, %v1061_v34, %v1063_v57  ;;  %v1068_v54 = vsel %vm1057_vm6, %v1065_v2, %v1067_v16 }
  0x48   : > { %2647 = vmatpush3.bf16.msra.mxu0 %v1250_v32  ;;  %2624 = vmatprep.mubr.msk.bf16.mxu0 %vm350_vm2, %v907_v50  ;;  %v1070_v25 = vsel %vm1057_vm6, %v1067_v16, %v1069_v56 }
  0x49   : > { %2699 = vmatprep.subr.msk.bf16.mxu0 %vm369_vm0, %v2414_v61 }
  0x4b   : > { %2607 = vmatmul.mubr.msk.bf16.vlgmr.msra.gmra.mxu1 %vm350_vm2, %v741_v10 }
  0x4c   : > { %2633 = vmatpush3.bf16.msra.mxu1 %v1090_v41  ;;  %2610 = vmatprep.mubr.msk.bf16.mxu1 %vm350_vm2, %v743_v44 }
  0x4d   : > { %2698 = vmatprep.subr.msk.bf16.mxu1 %vm369_vm0, %v2399_v3 }
  0x4f   : > { %2625 = vmatmul.mubr.msk.bf16.gmra.mxu0 %vm350_vm2, %v916_v29 }
  0x50   : > { %2628 = vmatprep.mubr.msk.bf16.mxu0 %vm350_vm2, %v925_v9 }
  0x53   : > { %2611 = vmatmul.mubr.msk.bf16.gmra.mxu1 %vm350_vm2, %v745_v11 }
  0x54   : > { %2614 = vmatprep.mubr.msk.bf16.mxu1 %vm350_vm2, %v747_v52 }
  0x57   : > { %2629 = vmatmul.mubr.msk.bf16.gmra.mxu0 %vm350_vm2, %v934_v22 }
  0x58   : > { %2648 = vmatprep.mubr.msk.bf16.mxu0 %vm350_vm2, %v2801_v23 }
  0x5b   : > { %2615 = vmatmul.mubr.msk.bf16.gmra.mxu1 %vm350_vm2, %v749_v31 }
  0x5c   : > { %2634 = vmatprep.mubr.msk.bf16.mxu1 %vm350_vm2, %v1060_v45 }
  0x5f   : > { %2649 = vmatmul.mubr.msk.bf16.vlgmr.msra.gmra.mxu0 %vm350_vm2, %v2802_v33 }
  0x60   : > { %2675 = vmatpush3.bf16.msra.mxu0 %v1601_v38  ;;  %2652 = vmatprep.mubr.msk.bf16.mxu0 %vm350_vm2, %v2804_v35 }
  0x63   : > { %2635 = vmatmul.mubr.msk.bf16.vlgmr.msra.gmra.mxu1 %vm350_vm2, %v1062_v42 }
  0x64   : > { %2661 = vmatpush3.bf16.msra.mxu1 %v1466_v43  ;;  %2638 = vmatprep.mubr.msk.bf16.mxu1 %vm350_vm2, %v1064_v46 }
  0x67   : > { %2653 = vmatmul.mubr.msk.bf16.gmra.mxu0 %vm350_vm2, %v2805_v60 }
  0x68   : > { %2656 = vmatprep.mubr.msk.bf16.mxu0 %vm350_vm2, %v2806_v47 }
  0x6b   : > { %2639 = vmatmul.mubr.msk.bf16.gmra.mxu1 %vm350_vm2, %v1066_v53 }
  0x6c   : > { %2642 = vmatprep.mubr.msk.bf16.mxu1 %vm350_vm2, %v1068_v54 }
  0x6f   : > { %2657 = vmatmul.mubr.msk.bf16.gmra.mxu0 %vm350_vm2, %v2807_v55 }
  0x70   : > { %2676 = vmatprep.mubr.msk.bf16.mxu0 %vm350_vm2, %v3124_v6 }
  0x73   : > { %2643 = vmatmul.mubr.msk.bf16.gmra.mxu1 %vm350_vm2, %v1070_v25 }
  0x74   : > { %2662 = vmatprep.mubr.msk.bf16.mxu1 %vm350_vm2, %v3136_v28 }
  0x77   : > { %2677 = vmatmul.mubr.msk.bf16.vlgmr.msra.gmra.mxu0 %vm350_vm2, %v3120_v63 }
  0x78   : > { %2680 = vmatprep.mubr.msk.bf16.mxu0 %vm350_vm2, %v3127_v14 }
  0x7b   : > { %2663 = vmatmul.mubr.msk.bf16.vlgmr.msra.gmra.mxu1 %vm350_vm2, %v3139_v30 }
  0x7c   : > { %2666 = vmatprep.mubr.msk.bf16.mxu1 %vm350_vm2, %v3142_v5 }
  0x7f   : > { %2681 = vmatmul.mubr.msk.bf16.gmra.mxu0 %vm350_vm2, %v3130_v18 }
  0x80   : > { %2684 = vmatprep.mubr.msk.bf16.mxu0 %vm350_vm2, %v3145_v36 }
  0x83   : > { %2667 = vmatmul.mubr.msk.bf16.gmra.mxu1 %vm350_vm2, %v3160_v51 }
  0x84   : > { %2670 = vmatprep.mubr.msk.bf16.mxu1 %vm350_vm2, %v3176_v39 }
  0x87   : > { %2685 = vmatmul.mubr.msk.bf16.gmra.mxu0 %vm350_vm2, %v3150_v37 }
  0x8b   : > { %2671 = vmatmul.mubr.msk.bf16.gmra.mxu1 %vm350_vm2, %v3193_v1 }
  0xe3   : > { %v2570_v26 = vpop.f32.mrf.mxu1 }
  0xe5   : > { %v423_v63 = vpop.f32.mrf.mxu1 }
  0xe7   : > { %v2571_v6 = vpop.f32.mrf.mxu1  ;;  %v2566_v14 = vpop.f32.mrf.mxu0 }
  0xe9   : > { %v426_v18 = vpop.f32.mrf.mxu1  ;;  %v407_v28 = vpop.f32.mrf.mxu0 }
  0xeb   : > { %v2574_v30 = vpop.f32.mrf.mxu1  ;;  %v2567_v5 = vpop.f32.mrf.mxu0 }
  0xed   : > { %v439_v36 = vpop.f32.mrf.mxu1  ;;  %v410_v48 = vpop.f32.mrf.mxu0 }
  0xef   : > { %v3274_v51 = vpop.f32.mrf.mxu1  ;;  %v2594_v32 = vpop.f32.mrf.mxu0 }
  0xf1   : > { %v3276_v50 = vpop.f32.mrf.mxu1  ;;  %v627_v58 = vpop.f32.mrf.mxu0 }
  0xf3   : > { %v2580_v37 = vpop.f32.mrf.mxu1  ;;  %v2595_v61 = vpop.f32.mrf.mxu0 }
  0xf4   : > { %v512_v59 = vadd.f32 %v2580_v37, %v2566_v14 }
  0xf5   : > { %v503_v39 = vpop.f32.mrf.mxu1  ;;  %v630_v10 = vpop.f32.mrf.mxu0 }
  0xf6   : > { %v504_v40 = vadd.f32 %v503_v39, %v407_v28  ;;  %v3278_v41 = vadd.f32 %v2594_v32, %v512_v59 }
  0xf7   : > { %v2581_v44 = vpop.f32.mrf.mxu1  ;;  %v2598_v62 = vpop.f32.mrf.mxu0 }
  0xf8   : > { %v515_v49 = vadd.f32 %v2581_v44, %v2567_v5  ;;  %v3280_v0 = vadd.f32 %v627_v58, %v504_v40 }
  0xf9   : > { %v506_v1 = vpop.f32.mrf.mxu1  ;;  %v643_v3 = vpop.f32.mrf.mxu0 }
  0xfa   : > { %v507_v13 = vadd.f32 %v506_v1, %v410_v48  ;;  %v3282_v21 = vadd.f32 %v2595_v61, %v515_v49 }
  0xfb   : > { %v2584_v29 = vpop.f32.mrf.mxu1  ;;  %v2599_v7 = vpop.f32.mrf.mxu0 }
  0xfc   : > { %v528_v4 = vadd.f32 %v2584_v29, %v2570_v26  ;;  %v3284_v8 = vadd.f32 %v630_v10, %v507_v13 }
  0xfd   : > { %v519_v9 = vpop.f32.mrf.mxu1  ;;  %v646_v11 = vpop.f32.mrf.mxu0 }
  0xfe   : > { %v520_v12 = vadd.f32 %v519_v9, %v423_v63  ;;  %v3286_v15 = vadd.f32 %v2598_v62, %v528_v4 }
  0xff   : > { %v2585_v17 = vpop.f32.mrf.mxu1  ;;  %v2602_v19 = vpop.f32.mrf.mxu0 }
 0x100   : > { %v531_v52 = vadd.f32 %v2585_v17, %v2571_v6  ;;  %v3288_v20 = vadd.f32 %v643_v3, %v520_v12 }
 0x101   : > { %v522_v22 = vpop.f32.mrf.mxu1  ;;  %v659_v24 = vpop.f32.mrf.mxu0 }
 0x102   : > { %v523_v23 = vadd.f32 %v522_v22, %v426_v18  ;;  %v3290_v27 = vadd.f32 %v2599_v7, %v531_v52 }
 0x103   : > { %v2588_v31 = vpop.f32.mrf.mxu1  ;;  %v3292_v33 = vpop.f32.mrf.mxu0 }
 0x104   : > { %v544_v45 = vadd.f32 %v2588_v31, %v2574_v30  ;;  %v3294_v34 = vadd.f32 %v646_v11, %v523_v23 }
 0x105   : > { %v535_v35 = vpop.f32.mrf.mxu1  ;;  %v3296_v38 = vpop.f32.mrf.mxu0 }
 0x106   : > { %v536_v57 = vadd.f32 %v535_v35, %v439_v36  ;;  %v3298_v42 = vadd.f32 %v2602_v19, %v544_v45 }
 0x107   : > { %v3300_v43 = vpop.f32.mrf.mxu1  ;;  %v2622_v46 = vpop.f32.mrf.mxu0 }
 0x108   : > { %v3302_v60 = vadd.f32 %v659_v24, %v536_v57 }
 0x109   : > { %v3304_v2 = vpop.f32.mrf.mxu1  ;;  %v990_v47 = vpop.f32.mrf.mxu0 }
 0x10b   : > { %v2608_v16 = vpop.f32.mrf.mxu1  ;;  %v2623_v53 = vpop.f32.mrf.mxu0 }
 0x10c   : > { %v854_v52 = vadd.f32 %v2608_v16, %v3278_v41 }
 0x10d   : > { %v805_v54 = vpop.f32.mrf.mxu1  ;;  %v993_v55 = vpop.f32.mrf.mxu0 }
 0x10e   : > { %v852_v23 = vadd.f32 %v805_v54, %v3280_v0  ;;  %v1039_v35 = vadd.f32 %v2622_v46, %v854_v52 }
 0x10f   : > { %v2609_v56 = vpop.f32.mrf.mxu1  ;;  %v2626_v25 = vpop.f32.mrf.mxu0 }
 0x110   : > { %v855_v45 = vadd.f32 %v2609_v56, %v3282_v21  ;;  %v1037_v41 = vadd.f32 %v990_v47, %v852_v23 }
 0x111   : > { %v808_v26 = vpop.f32.mrf.mxu1  ;;  %v3306_v63 = vpop.f32.mrf.mxu0 }
 0x113   : > { %v2612_v6 = vpop.f32.mrf.mxu1  ;;  %v3308_v14 = vpop.f32.mrf.mxu0 }
 0x114   : > { %v858_v0 = vadd.f32 %v2612_v6, %v3286_v15  ;;  %v547_v15 = vadd.f32 %v3300_v43, %v3274_v51 }
 0x115   : > { %v821_v18 = vpop.f32.mrf.mxu1  ;;  %v3310_v28 = vpop.f32.mrf.mxu0 }
 0x116   : > { %v856_v21 = vadd.f32 %v821_v18, %v3288_v20 }
 0x117   : > { %v2613_v30 = vpop.f32.mrf.mxu1  ;;  %v3312_v5 = vpop.f32.mrf.mxu0 }
 0x118   : > { %v1041_v20 = vadd.f32 %v3306_v63, %v856_v21 }
 0x119   : > { %v824_v36 = vpop.f32.mrf.mxu1  ;;  %v3314_v48 = vpop.f32.mrf.mxu0 }
 0x11b   : > { %v3316_v32 = vpop.f32.mrf.mxu1  ;;  %v3318_v58 = vpop.f32.mrf.mxu0 }
 0x11c   : > { %3610 = vst [vmem:[#allocation3_spill] sm:$0xff] %v3318_v58 }
 0x11d   : > { %v3320_v37 = vpop.f32.mrf.mxu1  ;;  %v3322_v59 = vpop.f32.mrf.mxu0 }
 0x11e   : > { %3611 = vst [vmem:[#allocation4_spill] sm:$0xff] %v3322_v59 }
 0x11f   : > { %v3324_v61 = vpop.f32.mrf.mxu1  ;;  %v2650_v39 = vpop.f32.mrf.mxu0 }
 0x121   : > { %v3326_v40 = vpop.f32.mrf.mxu1  ;;  %v1286_v10 = vpop.f32.mrf.mxu0 }
 0x123   : > { %v2636_v44 = vpop.f32.mrf.mxu1  ;;  %v2651_v49 = vpop.f32.mrf.mxu0 }
 0x124   : > { %v1175_v58 = vadd.f32 %v2636_v44, %v1039_v35  ;;  %v1043_v44 = vadd.f32 %v2626_v25, %v858_v0  ;;  %v539_v25 = vadd.f32 %v3304_v2, %v3276_v50 }
 0x125   : > { %v1126_v62 = vpop.f32.mrf.mxu1  ;;  %v1289_v1 = vpop.f32.mrf.mxu0 }
 0x126   : > { %v1173_v54 = vadd.f32 %v1126_v62, %v1037_v41  ;;  %v860_v62 = vadd.f32 %v3320_v37, %v3302_v60 }
 0x127   : > { %v2637_v13 = vpop.f32.mrf.mxu1  ;;  %v3328_v3 = vpop.f32.mrf.mxu0 }
 0x129   : > { %v1129_v29 = vpop.f32.mrf.mxu1  ;;  %v3330_v4 = vpop.f32.mrf.mxu0 }
 0x12b   : > { %v2640_v7 = vpop.f32.mrf.mxu1  ;;  %v3332_v9 = vpop.f32.mrf.mxu0 }
 0x12c   : > { %3612 = vst [vmem:[#allocation5_spill] sm:$0xff] %v3332_v9  ;;  %v1179_v18 = vadd.f32 %v2640_v7, %v1043_v44 }
 0x12d   : > { %v1142_v12 = vpop.f32.mrf.mxu1  ;;  %v3334_v11 = vpop.f32.mrf.mxu0 }
 0x12e   : > { %3613 = vst [vmem:[#allocation6_spill] sm:$0xff] %v3334_v11  ;;  %v853_v11 = vadd.f32 %v808_v26, %v3284_v8  ;;  %v859_v8 = vadd.f32 %v2613_v30, %v3290_v27  ;;  %v862_v30 = vadd.f32 %v3316_v32, %v3298_v42  ;;  %v1177_v43 = vadd.f32 %v1142_v12, %v1041_v20 }
 0x12f   : > { %v2641_v17 = vpop.f32.mrf.mxu1  ;;  %v3337_v19 = vpop.f32.mrf.mxu0  ;;  %v1339_v32 = vadd.f32 %v3328_v3, %v1179_v18 }
 0x130   : > { %3614 = vst [vmem:[#allocation7_spill] sm:$0xff] %v3337_v19  ;;  %v1038_v52 = vadd.f32 %v993_v55, %v853_v11  ;;  %v1337_v11 = vadd.f32 %v3330_v4, %v1177_v43 }
 0x131   : > { %v1145_v22 = vpop.f32.mrf.mxu1  ;;  %v3340_v24 = vpop.f32.mrf.mxu0 }
 0x132   : > { %3615 = vst [vmem:[#allocation8_spill] sm:$0xff] %v3340_v24  ;;  %v1040_v24 = vadd.f32 %v2623_v53, %v855_v45  ;;  %v1174_v26 = vadd.f32 %v1129_v29, %v1038_v52  ;;  %v857_v53 = vadd.f32 %v824_v36, %v3294_v34 }
 0x133   : > { %v3342_v31 = vpop.f32.mrf.mxu1  ;;  %v3345_v57 = vpop.f32.mrf.mxu0 }
 0x134   : > { %3616 = vst [vmem:[#allocation9_spill] sm:$0xff] %v3345_v57  ;;  %v1176_v56 = vadd.f32 %v2637_v13, %v1040_v24  ;;  %v1042_v13 = vadd.f32 %v3310_v28, %v857_v53  ;;  %v1045_v24 = vadd.f32 %v3314_v48, %v860_v62  ;;  %v3623_v48 = vld [vmem:[#allocation4_spill] sm:$0xff] }
 0x135   : > { %v3347_v59 = vpop.f32.mrf.mxu1  ;;  %v3350_v16 = vpop.f32.mrf.mxu0 }
 0x136   : > { %3617 = vst [vmem:[#allocation10_spill] sm:$0xff] %v3347_v59  ;;  %3618 = vst [vmem:[#allocation11_spill] sm:$0xff] %v3350_v16  ;;  %v1335_v59 = vadd.f32 %v2650_v39, %v1175_v58  ;;  %v1333_v16 = vadd.f32 %v1286_v10, %v1173_v54  ;;  %v1336_v27 = vadd.f32 %v2651_v49, %v1176_v56 }
 0x137   : > { %v3352_v19 = vpop.f32.mrf.mxu1  ;;  %v2678_v9 = vpop.f32.mrf.mxu0  ;;  %v1334_v10 = vadd.f32 %v1289_v1, %v1174_v26  ;;  %v685_v49 = vadd.f32 %v3292_v33, %v547_v15  ;;  %v1047_v1 = vadd.f32 %v3312_v5, %v862_v30  ;;  %v1178_v60 = vadd.f32 %v1145_v22, %v1042_v13  ;;  %v3619_v5 = vld [vmem:[#allocation5_spill] sm:$0xff]  ;;  %v3620_v22 = vld [vmem:[#allocation3_spill] sm:$0xff] }
 0x139   : > { %v3356_v46 = vpop.f32.mrf.mxu1  ;;  %v1637_v57 = vpop.f32.mrf.mxu0  ;;  %v863_v7 = vadd.f32 %v3324_v61, %v685_v49  ;;  %v1183_v3 = vadd.f32 %v3342_v31, %v1047_v1 }
 0x13b   : > { %v2664_v47 = vpop.f32.mrf.mxu1  ;;  %v2679_v35 = vpop.f32.mrf.mxu0 }
 0x13c   : > { %v1551_v23 = vadd.f32 %v2664_v47, %v1335_v59  ;;  %v1044_v59 = vadd.f32 %v3308_v14, %v859_v8 }
 0x13d   : > { %v1502_v6 = vpop.f32.mrf.mxu1  ;;  %v1640_v39 = vpop.f32.mrf.mxu0  ;;  %v3621_v54 = vld [vmem:[#allocation10_spill] sm:$0xff]  ;;  %v3627_v62 = vld [vmem:[#allocation11_spill] sm:$0xff] }
 0x13e   : > { %v3363_v55 = vadd.f32 %v2678_v9, %v1551_v23  ;;  %v1549_v58 = vadd.f32 %v1502_v6, %v1333_v16  ;;  %v1180_v2 = vadd.f32 %v2641_v17, %v1044_v59  ;;  %v683_v9 = vadd.f32 %v3296_v38, %v539_v25 }
 0x13f   : > { %v2665_v51 = vpop.f32.mrf.mxu1  ;;  %v2682_v36 = vpop.f32.mrf.mxu0  ;;  %v1048_v16 = vadd.f32 %v3620_v22, %v863_v7  ;;  %v1181_v21 = vadd.f32 %v3621_v54, %v1045_v24 }
 0x140   : > { %v3370_v34 = vadd.f32 %v1637_v57, %v1549_v58  ;;  %v1552_v63 = vadd.f32 %v2665_v51, %v1336_v27  ;;  %v861_v17 = vadd.f32 %v3326_v40, %v683_v9  ;;  %v1340_v41 = vadd.f32 %v3619_v5, %v1180_v2  ;;  %v3622_v40 = vld [vmem:[#allocation6_spill] sm:$0xff]  ;;  %v3626_v51 = vld [vmem:[#allocation9_spill] sm:$0xff] }
 0x141   : > { %v1505_v50 = vpop.f32.mrf.mxu1  ;;  %v1653_v14 = vpop.f32.mrf.mxu0  ;;  %v1338_v8 = vadd.f32 %v3622_v40, %v1178_v60  ;;  %v1184_v31 = vadd.f32 %v3352_v19, %v1048_v16 }
 0x142   : > { %v3376_v29 = vadd.f32 %v2679_v35, %v1552_v63  ;;  %v1550_v42 = vadd.f32 %v1505_v50, %v1334_v10  ;;  %v1046_v47 = vadd.f32 %v3623_v48, %v861_v17  ;;  %v3624_v35 = vld [vmem:[#allocation7_spill] sm:$0xff] }
 0x143   : > { %v2668_v12 = vpop.f32.mrf.mxu1  ;;  %v2683_v28 = vpop.f32.mrf.mxu0  ;;  %v1343_v15 = vadd.f32 %v3624_v35, %v1183_v3  ;;  %v1344_v43 = vadd.f32 %v3626_v51, %v1184_v31 }
 0x144   : > { %v3382_v37 = vadd.f32 %v1640_v39, %v1550_v42  ;;  %v1555_v33 = vadd.f32 %v2668_v12, %v1339_v32  ;;  %v1182_v6 = vadd.f32 %v3356_v46, %v1046_v47  ;;  %v3625_v39 = vld [vmem:[#allocation8_spill] sm:$0xff] }
 0x145   : > { %v1518_v45 = vpop.f32.mrf.mxu1  ;;  %v1656_v57 = vpop.f32.mrf.mxu0  ;;  %v1341_v27 = vadd.f32 %v3625_v39, %v1181_v21 }
 0x146   : > { %v3388_v61 = vadd.f32 %v2682_v36, %v1555_v33  ;;  %v1553_v38 = vadd.f32 %v1518_v45, %v1337_v11  ;;  %v1342_v49 = vadd.f32 %v3627_v62, %v1182_v6 }
 0x147   : > { %v2669_v0 = vpop.f32.mrf.mxu1  ;;  %v2686_v52 = vpop.f32.mrf.mxu0 }
 0x148   : > { %v1688_v56 = vadd.f32 %v1653_v14, %v1553_v38  ;;  %v1556_v4 = vadd.f32 %v2669_v0, %v1340_v41 }
 0x149   : > { %v1521_v26 = vpop.f32.mrf.mxu1  ;;  %v1669_v53 = vpop.f32.mrf.mxu0 }
 0x14a   : > { %v1691_v44 = vadd.f32 %v2683_v28, %v1556_v4  ;;  %v1554_v23 = vadd.f32 %v1521_v26, %v1338_v8 }
 0x14b   : > { %v2672_v20 = vpop.f32.mrf.mxu1  ;;  %v2687_v63 = vpop.f32.mrf.mxu0 }
 0x14c   : > { %v1689_v18 = vadd.f32 %v1656_v57, %v1554_v23  ;;  %v1559_v58 = vadd.f32 %v2672_v20, %v1343_v15 }
 0x14d   : > { %v1534_v25 = vpop.f32.mrf.mxu1  ;;  %v1672_v42 = vpop.f32.mrf.mxu0 }
 0x14e   : > { %v1694_v30 = vadd.f32 %v2686_v52, %v1559_v58  ;;  %v1557_v59 = vadd.f32 %v1534_v25, %v1341_v27 }
 0x14f   : > { %v2673_v36 = vpop.f32.mrf.mxu1 }
 0x150   : > { %v1692_v19 = vadd.f32 %v1669_v53, %v1557_v59  ;;  %v1560_v10 = vadd.f32 %v2673_v36, %v1344_v43  ;;  %1699 = sbr.rel (%p2422_p9) target bundleno = 347 (0x15b), region = 32 }
 0x151   : > { %v1537_v13 = vpop.f32.mrf.mxu1 }
 0x152   : > { %v1695_v50 = vadd.f32 %v2687_v63, %v1560_v10  ;;  %v1558_v2 = vadd.f32 %v1537_v13, %v1342_v49 }
 0x154   : > { %v1693_v46 = vadd.f32 %v1672_v42, %v1558_v2 }
 0x155   : > { %1700 = vst [vmem:[#allocation2 + $0x30] sm:$0xff] %v3370_v34  ;;  %1701 = vst [vmem:[#allocation2] sm:$0xff] %v3382_v37 }
 0x156   : > { %1702 = vst [vmem:[#allocation2 + $0x58] sm:$0xff] %v3363_v55  ;;  %1703 = vst [vmem:[#allocation2 + $0x18] sm:$0xff] %v3376_v29 }
 0x157   : > { %1704 = vst [vmem:[#allocation2 + $0x50] sm:$0xff] %v1688_v56  ;;  %1705 = vst [vmem:[#allocation2 + $0x20] sm:$0xff] %v1689_v18 }
 0x158   : > { %1706 = vst [vmem:[#allocation2 + $0x8] sm:$0xff] %v3388_v61  ;;  %1707 = vst [vmem:[#allocation2 + $0x38] sm:$0xff] %v1691_v44 }
 0x159   : > { %1708 = vst [vmem:[#allocation2 + $0x28] sm:$0xff] %v1692_v19  ;;  %1709 = vst [vmem:[#allocation2 + $0x48] sm:$0xff] %v1693_v46 }
 0x15a   : > { %1710 = vst [vmem:[#allocation2 + $0x10] sm:$0xff] %v1694_v30  ;;  %1711 = vst [vmem:[#allocation2 + $0x40] sm:$0xff] %v1695_v50 }
 0x15b PF: > { %p2423_p10 = scmp.eq.s32.totalorder %s2846_s12, 0 }
 0x15d   : > { %1715 = sbr.rel (%p2423_p10) target bundleno = 363 (0x16b), region = 36 }
 0x162   : > { %v1716_v14 = vld [vmem:[#allocation2 + $0x30] sm:$0xff]  ;;  %v1717_v32 = vld [vmem:[#allocation2] sm:$0xff]  ;;  %v1718_v7 = vld [vmem:[#allocation2 + $0x58] sm:$0xff] }
 0x163   : > { %v1728_v9 = vadd.f32 %v1716_v14, %v3370_v34  ;;  %v1729_v1 = vadd.f32 %v1717_v32, %v3382_v37  ;;  %v1730_v12 = vadd.f32 %v1718_v7, %v3363_v55  ;;  %v1719_v60 = vld [vmem:[#allocation2 + $0x18] sm:$0xff]  ;;  %v1720_v33 = vld [vmem:[#allocation2 + $0x50] sm:$0xff]  ;;  %v1721_v28 = vld [vmem:[#allocation2 + $0x20] sm:$0xff] }
 0x164   : > { %v1731_v11 = vadd.f32 %v1719_v60, %v3376_v29  ;;  %v1732_v17 = vadd.f32 %v1720_v33, %v1688_v56  ;;  %v1733_v24 = vadd.f32 %v1721_v28, %v1689_v18  ;;  %v1722_v45 = vld [vmem:[#allocation2 + $0x8] sm:$0xff]  ;;  %v1723_v3 = vld [vmem:[#allocation2 + $0x38] sm:$0xff]  ;;  %v1726_v41 = vld [vmem:[#allocation2 + $0x10] sm:$0xff] }
 0x165   : > { %v1724_v38 = vld [vmem:[#allocation2 + $0x28] sm:$0xff]  ;;  %1740 = vst [vmem:[#allocation2 + $0x30] sm:$0xff] %v1728_v9  ;;  %1741 = vst [vmem:[#allocation2] sm:$0xff] %v1729_v1  ;;  %v1734_v57 = vadd.f32 %v1722_v45, %v3388_v61  ;;  %v1735_v34 = vadd.f32 %v1723_v3, %v1691_v44  ;;  %v1727_v55 = vld [vmem:[#allocation2 + $0x40] sm:$0xff]  ;;  %v1738_v29 = vadd.f32 %v1726_v41, %v1694_v30 }
 0x166   : > { %1742 = vst [vmem:[#allocation2 + $0x58] sm:$0xff] %v1730_v12  ;;  %v1736_v5 = vadd.f32 %v1724_v38, %v1692_v19  ;;  %v1725_v37 = vld [vmem:[#allocation2 + $0x48] sm:$0xff]  ;;  %1743 = vst [vmem:[#allocation2 + $0x18] sm:$0xff] %v1731_v11  ;;  %v1739_v16 = vadd.f32 %v1727_v55, %v1695_v50 }
 0x167   : > { %1744 = vst [vmem:[#allocation2 + $0x50] sm:$0xff] %v1732_v17  ;;  %1745 = vst [vmem:[#allocation2 + $0x20] sm:$0xff] %v1733_v24  ;;  %v1737_v22 = vadd.f32 %v1725_v37, %v1693_v46 }
 0x168   : > { %1746 = vst [vmem:[#allocation2 + $0x8] sm:$0xff] %v1734_v57  ;;  %1747 = vst [vmem:[#allocation2 + $0x38] sm:$0xff] %v1735_v34 }
 0x169   : > { %1748 = vst [vmem:[#allocation2 + $0x28] sm:$0xff] %v1736_v5  ;;  %1749 = vst [vmem:[#allocation2 + $0x48] sm:$0xff] %v1737_v22 }
 0x16a   : > { %1750 = vst [vmem:[#allocation2 + $0x10] sm:$0xff] %v1738_v29  ;;  %1751 = vst [vmem:[#allocation2 + $0x40] sm:$0xff] %v1739_v16 }
 0x16b PF: > { %p2424_p11 = scmp.ne.s32.totalorder %s2846_s12, 2 }
 0x16d   : > { %1755 = sbr.rel (%p2424_p11) target bundleno = 444 (0x1bc), region = 40 }
 0x172   : > { %v3414_v61 = vld [vmem:[#allocation2 + $0x30] sm:$0xff]  ;;  %v3416_v0 = vld [vmem:[#allocation2] sm:$0xff]  ;;  %v1828_v54 = vlaneseq  ;;  %v3418_v21 = vld [vmem:[#allocation2 + $0x58] sm:$0xff] }
 0x173   : > { %v2467_v56 = vpack.c.bf16 %v3416_v0, %v3414_v61  ;;  %v3422_v4 = vld [vmem:[#allocation2 + $0x18] sm:$0xff]  ;;  %v3424_v52 = vld [vmem:[#allocation2 + $0x50] sm:$0xff]  ;;  %v3426_v40 = vld [vmem:[#allocation2 + $0x20] sm:$0xff] }
 0x174   : > { %v3428_v8 = vshrl.u32 %v1828_v54, 7  ;;  %v2472_v48 = vpack.c.bf16 %v3422_v4, %v3418_v21  ;;  %v2477_v47 = vpack.c.bf16 %v3426_v40, %v3424_v52  ;;  %v3434_v26 = vld [vmem:[#allocation2 + $0x8] sm:$0xff]  ;;  %v3436_v31 = vld [vmem:[#allocation2 + $0x38] sm:$0xff]  ;;  %v3502_v24 = vld [vmem:[#allocation2 + $0x10] sm:$0xff] }
 0x175   : > { %2468 = vst [vmem:[%s2982_s28] sm:$0xff] %v2467_v56   ;;  %v2482_v44 = vpack.c.bf16 %v3436_v31, %v3434_v26  ;;  %v3478_v49 = vld [vmem:[#allocation2 + $0x28] sm:$0xff]  ;;  %v3504_v45 = vld [vmem:[#allocation2 + $0x40] sm:$0xff] }
 0x176   : > { %v1830_v23 = vadd.s32 8, %v3428_v8  ;;  %v3443_v35 = vmul.u32.u64.low 2863311531, %v3428_v8  ;;  %v3444_v15 = vmul.u32.u64.high 2863311531, %v3428_v8, %v3443_v35  ;;  %2494 = vst [vmem:[%s2982_s28 + $0x8] sm:$0xff] %v2472_v48   ;;  %v1831_v53 = vadd.s32 16, %v3428_v8  ;;  %2495 = vst [vmem:[%s2982_s28 + $0x10] sm:$0xff] %v2477_v47  }
 0x177   : > { %v1832_v20 = vadd.s32 24, %v3428_v8  ;;  %v1833_v6 = vadd.s32 32, %v3428_v8  ;;  %v3452_v18 = vadd.s32 40, %v3428_v8  ;;  %2496 = vst [vmem:[%s2982_s28 + $0x18] sm:$0xff] %v2482_v44   ;;  %v3456_v58 = vadd.s32 48, %v3428_v8  ;;  %v3480_v13 = vld [vmem:[#allocation2 + $0x48] sm:$0xff] }
 0x178   : > { %v3458_v39 = vmul.u32.u64.low 2863311531, %v1830_v23  ;;  %v3459_v27 = vmul.u32.u64.high 2863311531, %v1830_v23, %v3458_v39  ;;  %v3461_v25 = vmul.u32.u64.low 2863311531, %v1831_v53  ;;  %v3462_v30 = vmul.u32.u64.high 2863311531, %v1831_v53, %v3461_v25 }
 0x179   : > { %v3464_v59 = vmul.u32.u64.low 2863311531, %v1832_v20  ;;  %v3465_v51 = vmul.u32.u64.high 2863311531, %v1832_v20, %v3464_v59  ;;  %v3467_v43 = vmul.u32.u64.low 2863311531, %v1833_v6  ;;  %v3468_v63 = vmul.u32.u64.high 2863311531, %v1833_v6, %v3467_v43 }
 0x17a   : > { %v1847_v36 = vshrl.u32 %v3444_v15, 3  ;;  %v3472_v19 = vmul.u32.u64.low 2863311531, %v3452_v18  ;;  %v3473_v10 = vmul.u32.u64.high 2863311531, %v3452_v18, %v3472_v19  ;;  %v3476_v62 = vadd.s32 56, %v3428_v8 }
 0x17b   : > { %v3483_v50 = vmul.u32.u64.low 2863311531, %v3456_v58  ;;  %v3484_v2 = vmul.u32.u64.high 2863311531, %v3456_v58, %v3483_v50  ;;  %v2487_v42 = vpack.c.bf16 %v3480_v13, %v3478_v49  ;;  %v1858_v14 = vshrl.u32 %v3459_v27, 3 }
 0x17c   : > { %v1848_v46 = vmul.u32 12, %v1847_v36  ;;  %v1869_v32 = vshrl.u32 %v3462_v30, 3  ;;  %v3491_v7 = vadd.s32 64, %v3428_v8  ;;  %v1880_v9 = vshrl.u32 %v3465_v51, 3 }
 0x17d   : > { %v1891_v1 = vshrl.u32 %v3468_v63, 3  ;;  %v3496_v12 = vmul.u32.u64.low 2863311531, %v3476_v62  ;;  %v3497_v60 = vmul.u32.u64.high 2863311531, %v3476_v62, %v3496_v12  ;;  %2497 = vst [vmem:[%s2982_s28 + $0x20] sm:$0xff] %v2487_v42   ;;  %v1859_v28 = vmul.u32 12, %v1858_v14 }
 0x17e   : > { %v1849_v33 = vsub.s32 %v3428_v8, %v1848_v46  ;;  %v1870_v11 = vmul.u32 12, %v1869_v32  ;;  %v1902_v17 = vshrl.u32 %v3473_v10, 3  ;;  %v1881_v3 = vmul.u32 12, %v1880_v9 }
 0x17f   : > { %v1892_v38 = vmul.u32 12, %v1891_v1  ;;  %v1913_v57 = vshrl.u32 %v3484_v2, 3  ;;  %v2492_v34 = vpack.c.bf16 %v3504_v45, %v3502_v24  ;;  %v1860_v5 = vsub.s32 %v1830_v23, %v1859_v28 }
 0x180   : > { %vm1973_vm7 = vcmp.ne.s32.totalorder %v1849_v33, 0  ;;  %vm1985_vm8 = vcmp.lt.s32.totalorder %v1849_v33, 0  ;;  %v2009_v37 = vadd.s32 12, %v1849_v33  ;;  %v1871_v41 = vsub.s32 %v1831_v53, %v1870_v11 }
 0x181   : > { %vm1997_vm9 = vmand %vm1985_vm8, %vm1973_vm7  ;;  %v1882_v55 = vsub.s32 %v1832_v20, %v1881_v3  ;;  %v1893_v22 = vsub.s32 %v1833_v6, %v1892_v38  ;;  %v1903_v29 = vmul.u32 12, %v1902_v17  ;;  %2498 = vst [vmem:[%s2982_s28 + $0x28] sm:$0xff] %v2492_v34   ;;  %vm1974_vm10 = vcmp.ne.s32.totalorder %v1860_v5, 0 }
 0x182   : > { %vm1986_vm11 = vcmp.lt.s32.totalorder %v1860_v5, 0  ;;  %v2010_v16 = vadd.s32 12, %v1860_v5  ;;  %v2021_v54 = vsel %vm1997_vm9, %v2009_v37, %v1849_v33  ;;  %vm1975_vm14 = vcmp.ne.s32.totalorder %v1871_v41, 0 }
 0x183   : > { %vm1998_vm12 = vmand %vm1986_vm11, %vm1974_vm10  ;;  %vm2033_vm13 = vcmp.lt.s32.totalorder %v2021_v54, 8  ;;  %vm1976_vm15 = vcmp.ne.s32.totalorder %v1882_v55, 0  ;;  %vm1987_vm0 = vcmp.lt.s32.totalorder %v1871_v41, 0  ;;  %v2872_v48 = vmov 0.0  }
 0x184   : > { %v2022_v56 = vsel %vm1998_vm12, %v2010_v16, %v1860_v5  ;;  %v2437_v47 = vsel %vm2033_vm13, 1.0, %v2872_v48  ;;  %vm1988_vm1 = vcmp.lt.s32.totalorder %v1882_v55, 0  ;;  %vm1999_vm2 = vmand %vm1987_vm0, %vm1975_vm14  ;;  %v2011_v44 = vadd.s32 12, %v1871_v41 }
 0x185   : > { %vm2034_vm3 = vcmp.lt.s32.totalorder %v2022_v56, 8  ;;  %v2069_v23 = vmul.f32 %v2437_v47, %v3414_v61  ;;  %vm2000_vm4 = vmand %vm1988_vm1, %vm1976_vm15  ;;  %v2012_v35 = vadd.s32 12, %v1882_v55  ;;  %v1904_v15 = vsub.s32 %v3452_v18, %v1903_v29 }
 0x186   : > { %v2438_v53 = vsel %vm2034_vm3, 1.0, %v2872_v48  ;;  %v2023_v20 = vsel %vm1999_vm2, %v2011_v44, %v1871_v41  ;;  %vm1977_vm5 = vcmp.ne.s32.totalorder %v1893_v22, 0  ;;  %vm1989_vm6 = vcmp.lt.s32.totalorder %v1893_v22, 0 }
 0x187   : > { %v2070_v6 = vmul.f32 %v2438_v53, %v3416_v0  ;;  %v2099_v39 = vmul.f32 %v2069_v23, %v3414_v61  ;;  %v2024_v27 = vsel %vm2000_vm4, %v2012_v35, %v1882_v55  ;;  %vm2035_vm7 = vcmp.lt.s32.totalorder %v2023_v20, 8  ;;  %vm3517_vm11 = vmand %vm1989_vm6, %vm1977_vm5 }
 0x188   : > { %vm2036_vm8 = vcmp.lt.s32.totalorder %v2024_v27, 8  ;;  %v2439_v25 = vsel %vm2035_vm7, 1.0, %v2872_v48  ;;  %vm1978_vm9 = vcmp.ne.s32.totalorder %v1904_v15, 0  ;;  %vm1990_vm10 = vcmp.lt.s32.totalorder %v1904_v15, 0 }
 0x189   : > { %v2081_v18 = vadd.f32 %v2070_v6, %v2069_v23  ;;  %v2100_v59 = vmul.f32 %v2070_v6, %v3416_v0  ;;  %v2440_v51 = vsel %vm2036_vm8, 1.0, %v2872_v48  ;;  %v2071_v43 = vmul.f32 %v2439_v25, %v3418_v21  ;;  %vm3524_vm12 = vmand %vm1990_vm10, %vm1978_vm9 }
 0x18a   : > { %v2072_v63 = vmul.f32 %v2440_v51, %v3422_v4  ;;  %v2013_v36 = vadd.s32 12, %v1893_v22  ;;  %v2014_v19 = vadd.s32 12, %v1904_v15  ;;  %v1914_v10 = vmul.u32 12, %v1913_v57 }
 0x18b   : > { %v2111_v50 = vadd.f32 %v2100_v59, %v2099_v39  ;;  %v2082_v2 = vadd.f32 %v2081_v18, %v2071_v43  ;;  %v2101_v42 = vmul.f32 %v2071_v43, %v3418_v21  ;;  %v1924_v46 = vshrl.u32 %v3497_v60, 3 }
 0x18c   : > { %v2102_v0 = vmul.f32 %v2072_v63, %v3422_v4  ;;  %v2025_v14 = vsel %vm3517_vm11, %v2013_v36, %v1893_v22  ;;  %v2026_v32 = vsel %vm3524_vm12, %v2014_v19, %v1904_v15  ;;  %v1915_v9 = vsub.s32 %v3456_v58, %v1914_v10 }
 0x18d   : > { %v2083_v1 = vadd.f32 %v2082_v2, %v2072_v63  ;;  %v2112_v12 = vadd.f32 %v2111_v50, %v2101_v42  ;;  %vm2037_vm13 = vcmp.lt.s32.totalorder %v2025_v14, 8  ;;  %vm2038_vm14 = vcmp.lt.s32.totalorder %v2026_v32, 8 }
 0x18e   : > { %v2441_v33 = vsel %vm2037_vm13, 1.0, %v2872_v48  ;;  %v2442_v21 = vsel %vm2038_vm14, 1.0, %v2872_v48  ;;  %v1925_v28 = vmul.u32 12, %v1924_v46  ;;  %vm1979_vm15 = vcmp.ne.s32.totalorder %v1915_v9, 0 }
 0x18f   : > { %v2113_v60 = vadd.f32 %v2112_v12, %v2102_v0  ;;  %v2073_v4 = vmul.f32 %v2441_v33, %v3424_v52  ;;  %v2074_v11 = vmul.f32 %v2442_v21, %v3426_v40  ;;  %vm1991_vm0 = vcmp.lt.s32.totalorder %v1915_v9, 0 }
 0x190   : > { %v1926_v17 = vsub.s32 %v3476_v62, %v1925_v28  ;;  %vm2003_vm1 = vmand %vm1991_vm0, %vm1979_vm15  ;;  %v2015_v58 = vadd.s32 12, %v1915_v9  ;;  %v3543_v3 = vmul.u32.u64.low 2863311531, %v3491_v7  ;;  %v3544_v38 = vmul.u32.u64.high 2863311531, %v3491_v7, %v3543_v3 }
 0x191   : > { %v2084_v57 = vadd.f32 %v2083_v1, %v2073_v4  ;;  %v2103_v34 = vmul.f32 %v2073_v4, %v3424_v52  ;;  %v1838_v5 = vadd.s32 72, %v3428_v8  ;;  %v2104_v55 = vmul.f32 %v2074_v11, %v3426_v40 }
 0x192   : > { %vm1980_vm2 = vcmp.ne.s32.totalorder %v1926_v17, 0  ;;  %vm1992_vm3 = vcmp.lt.s32.totalorder %v1926_v17, 0  ;;  %v2016_v37 = vadd.s32 12, %v1926_v17  ;;  %v2027_v41 = vsel %vm2003_vm1, %v2015_v58, %v1915_v9 }
 0x193   : > { %v2114_v22 = vadd.f32 %v2113_v60, %v2103_v34  ;;  %vm2004_vm4 = vmand %vm1992_vm3, %vm1980_vm2  ;;  %vm2039_vm5 = vcmp.lt.s32.totalorder %v2027_v41, 8  ;;  %v1935_v16 = vshrl.u32 %v3544_v38, 3  ;;  %v1839_v54 = vadd.s32 80, %v3428_v8 }
 0x194   : > { %v2028_v62 = vsel %vm2004_vm4, %v2016_v37, %v1926_v17  ;;  %v2443_v29 = vsel %vm2039_vm5, 1.0, %v2872_v48  ;;  %v2085_v56 = vadd.f32 %v2084_v57, %v2074_v11  ;;  %v1840_v20 = vadd.s32 88, %v3428_v8 }
 0x195   : > { %vm2040_vm6 = vcmp.lt.s32.totalorder %v2028_v62, 8  ;;  %v2075_v52 = vmul.f32 %v2443_v29, %v3434_v26  ;;  %v1936_v44 = vmul.u32 12, %v1935_v16  ;;  %v2115_v40 = vadd.f32 %v2114_v22, %v2104_v55 }
 0x196   : > { %v2444_v47 = vsel %vm2040_vm6, 1.0, %v2872_v48  ;;  %v3554_v23 = vmul.u32.u64.low 2863311531, %v1838_v5  ;;  %v3555_v35 = vmul.u32.u64.high 2863311531, %v1838_v5, %v3554_v23 }
 0x197   : > { %v2076_v15 = vmul.f32 %v2444_v47, %v3436_v31  ;;  %v2105_v53 = vmul.f32 %v2075_v52, %v3434_v26  ;;  %v1937_v6 = vsub.s32 %v3491_v7, %v1936_v44  ;;  %v2086_v25 = vadd.f32 %v2085_v56, %v2075_v52 }
 0x198   : > { %v3561_v39 = vmul.u32.u64.low 2863311531, %v1839_v54  ;;  %v3562_v27 = vmul.u32.u64.high 2863311531, %v1839_v54, %v3561_v39  ;;  %v1946_v30 = vshrl.u32 %v3555_v35, 3 }
 0x199   : > { %vm1981_vm7 = vcmp.ne.s32.totalorder %v1937_v6, 0  ;;  %vm1993_vm8 = vcmp.lt.s32.totalorder %v1937_v6, 0  ;;  %v2017_v18 = vadd.s32 12, %v1937_v6  ;;  %v2106_v59 = vmul.f32 %v2076_v15, %v3436_v31 }
 0x19a   : > { %v2116_v51 = vadd.f32 %v2115_v40, %v2105_v53  ;;  %vm2005_vm9 = vmand %vm1993_vm8, %vm1981_vm7  ;;  %v3566_v43 = vmul.u32.u64.low 2863311531, %v1840_v20  ;;  %v3567_v61 = vmul.u32.u64.high 2863311531, %v1840_v20, %v3566_v43  ;;  %v1947_v26 = vmul.u32 12, %v1946_v30 }
 0x19b   : > { %v2029_v8 = vsel %vm2005_vm9, %v2017_v18, %v1937_v6  ;;  %v1957_v7 = vshrl.u32 %v3562_v27, 3  ;;  %v2087_v10 = vadd.f32 %v2086_v25, %v2076_v15 }
 0x19c   : > { %vm2041_vm10 = vcmp.lt.s32.totalorder %v2029_v8, 8  ;;  %v1948_v63 = vsub.s32 %v1838_v5, %v1947_v26  ;;  %v2117_v50 = vadd.f32 %v2116_v51, %v2106_v59  ;;  %v1968_v31 = vshrl.u32 %v3567_v61, 3 }
 0x19d   : > { %v2445_v36 = vsel %vm2041_vm10, 1.0, %v2872_v48  ;;  %v1958_v19 = vmul.u32 12, %v1957_v7 }
 0x19e   : > { %v2077_v2 = vmul.f32 %v2445_v36, %v3478_v49  ;;  %vm1982_vm11 = vcmp.ne.s32.totalorder %v1948_v63, 0  ;;  %vm1994_vm12 = vcmp.lt.s32.totalorder %v1948_v63, 0  ;;  %v2018_v42 = vadd.s32 12, %v1948_v63 }
 0x19f   : > { %v1959_v46 = vsub.s32 %v1839_v54, %v1958_v19  ;;  %vm2006_vm13 = vmand %vm1994_vm12, %vm1982_vm11  ;;  %v1969_v14 = vmul.u32 12, %v1968_v31 }
 0x1a0   : > { %v2107_v0 = vmul.f32 %v2077_v2, %v3478_v49  ;;  %v2030_v32 = vsel %vm2006_vm13, %v2018_v42, %v1948_v63  ;;  %v2088_v1 = vadd.f32 %v2087_v10, %v2077_v2 }
 0x1a1   : > { %vm1983_vm14 = vcmp.ne.s32.totalorder %v1959_v46, 0  ;;  %vm1995_vm15 = vcmp.lt.s32.totalorder %v1959_v46, 0  ;;  %v2019_v9 = vadd.s32 12, %v1959_v46  ;;  %vm2042_vm0 = vcmp.lt.s32.totalorder %v2030_v32, 8 }
 0x1a2   : > { %v1970_v12 = vsub.s32 %v1840_v20, %v1969_v14  ;;  %vm2007_vm1 = vmand %vm1995_vm15, %vm1983_vm14  ;;  %v2446_v33 = vsel %vm2042_vm0, 1.0, %v2872_v48  ;;  %v2118_v21 = vadd.f32 %v2117_v50, %v2107_v0 }
 0x1a3   : > { %v2031_v28 = vsel %vm2007_vm1, %v2019_v9, %v1959_v46  ;;  %v2078_v60 = vmul.f32 %v2446_v33, %v3480_v13 }
 0x1a4   : > { %vm1984_vm2 = vcmp.ne.s32.totalorder %v1970_v12, 0  ;;  %vm1996_vm3 = vcmp.lt.s32.totalorder %v1970_v12, 0  ;;  %v2020_v4 = vadd.s32 12, %v1970_v12  ;;  %vm2043_vm5 = vcmp.lt.s32.totalorder %v2031_v28, 8 }
 0x1a5   : > { %vm2008_vm4 = vmand %vm1996_vm3, %vm1984_vm2  ;;  %v2089_v49 = vadd.f32 %v2088_v1, %v2078_v60  ;;  %v2108_v11 = vmul.f32 %v2078_v60, %v3480_v13  ;;  %v2447_v58 = vsel %vm2043_vm5, 1.0, %v2872_v48 }
 0x1a6   : > { %v2032_v17 = vsel %vm2008_vm4, %v2020_v4, %v1970_v12  ;;  %v2079_v3 = vmul.f32 %v2447_v58, %v3502_v24 }
 0x1a7   : > { %vm2044_vm6 = vcmp.lt.s32.totalorder %v2032_v17, 8  ;;  %v2119_v38 = vadd.f32 %v2118_v21, %v2108_v11 }
 0x1a8   : > { %v2448_v57 = vsel %vm2044_vm6, 1.0, %v2872_v48  ;;  %v2090_v5 = vadd.f32 %v2089_v49, %v2079_v3  ;;  %v2109_v37 = vmul.f32 %v2079_v3, %v3502_v24 }
 0x1a9   : > { %v2080_v34 = vmul.f32 %v2448_v57, %v3504_v45 }
 0x1aa   : > { %v2120_v55 = vadd.f32 %v2119_v38, %v2109_v37 }
 0x1ab   : > { %v2110_v41 = vmul.f32 %v2080_v34, %v3504_v45  ;;  %v2091_v13 = vadd.f32 %v2090_v5, %v2080_v34 }
 0x1ad   : > { %v2092_v22 = vrot.slane %v2091_v13, 4  ;;  %v2121_v62 = vadd.f32 %v2120_v55, %v2110_v41 }
 0x1af   : > { %v2093_v29 = vadd.f32 %v2092_v22, %v2091_v13  ;;  %v2122_v16 = vrot.slane %v2121_v62, 4 }
 0x1b1   : > { %v2094_v54 = vrot.slane %v2093_v29, 2  ;;  %v2123_v56 = vadd.f32 %v2122_v16, %v2121_v62 }
 0x1b3   : > { %v2095_v52 = vadd.f32 %v2094_v54, %v2093_v29  ;;  %v2124_v47 = vrot.slane %v2123_v56, 2 }
 0x1b5   : > { %v2096_v48 = vrot.slane %v2095_v52, 1  ;;  %v2125_v44 = vadd.f32 %v2124_v47, %v2123_v56 }
 0x1b7   : > { %v2097_v23 = vadd.f32 %v2096_v48, %v2095_v52  ;;  %v2126_v35 = vrot.slane %v2125_v44, 1 }
 0x1b9   : > { %2098 = vst [vmem:[%s2974_s25] sm:$0x1] %v2097_v23  ;;  %v2127_v24 = vadd.f32 %v2126_v35, %v2125_v44 }
 0x1bb   : > { %2128 = vst [vmem:[%s2974_s25 + $0x1] sm:$0x1] %v2127_v24 }
 0x1bc PF: > { %s14_s18 = sadd.s32 1, %s2870_s18   ;;  %s3632_s12 = smov %s2858_s15 }
 0x1bd   : > { %p11_p12 = scmp.ge.s32.totalorder %s14_s18, 50   ;;  %s3633_s13 = smov %s2862_s16 }
 0x1be   : > { %s3634_s14 = smov %s2866_s17  ;;  %s3635_s15 = smov %s3639_s19 }
 0x1bf   : > { %s3636_s16 = smov %s3643_s20  ;;  %s3637_s17 = smov %s3647_s21 }
 0x1c0   :  { %13 = sbr.rel (!%p11_p12) target bundleno = 4 (0x4), region = 91 }

// kernel: residual_block_forward.9
= control target key start
LH: loop header
LB: loop body
LE: loop exit
PB: predicated region body
PF: predicated region fallthrough
CT: control target
= control target key end

     0   :  { %s787_s21 = smov 0   ;;  %s789_s22 = smov 0   ;;  %s943_s0 = inlined_call_operand.vmem [shape: bf16[2,8,96,128], index: 0, kind: input, shape index: {}]   ;;  %s944_s1 = inlined_call_operand.vmem [shape: bf16[2,8,96,128], index: 1, kind: input, shape index: {}]   ;;  %s945_s2 = inlined_call_operand.vmem [shape: f32[1,128], index: 2, kind: input, shape index: {}]   ;;  %s946_s3 = inlined_call_operand.vmem [shape: f32[1,128], index: 3, kind: input, shape index: {}]   ;;  %s947_s4 = inlined_call_operand.vmem [shape: f32[1,128], index: 4, kind: input, shape index: {}]   ;;  %s948_s5 = inlined_call_operand.vmem [shape: f32[1,128], index: 5, kind: input, shape index: {}]   ;;  %s949_s6 = inlined_call_operand.vmem [shape: f32[2,8,96,128], index: 6, kind: output, shape index: {}]  }
   0x1   :  { %s791_s23 = smov 0   ;;  %s793_s24 = smov 0  }
   0x2   :  { %s795_s25 = smov 0  }
   0x3 LB: > { %s25_s26 = sadd.s32 1, %s742_s23  ;;  %s28_s27 = sadd.s32 1, %s746_s24  ;;  %s750_s25 = sphi %s795_s25, %s16_s25   ;;  %s746_s24 = sphi %s793_s24, %s953_s24   ;;  %s742_s23 = sphi %s791_s23, %s952_s23   ;;  %s738_s22 = sphi %s789_s22, %s951_s22   ;;  %s734_s21 = sphi %s787_s21, %s950_s21  }
   0x4   : > { %p26_p0 = scmp.ge.s32.totalorder %s25_s26, 8  ;;  %p602_p1 = scmp.ge.s32.totalorder %s750_s25, 1 }
   0x5   : > { %p248_p2 = scmp.lt.s32.totalorder %s750_s25, 17 }
   0x6   : > { %s955_s26 = smov (%p26_p0, %s25_s26), 0  ;;  %s957_s27 = smov (!%p26_p0, %s28_s27), %s746_s24 }
   0x7   : > { %p249_p3 = pnand %p602_p1, %p248_p2  ;;  %p30_p4 = scmp.ge.s32.totalorder %s957_s27, 2 }
   0x8   : > { %p295_p5 = scmp.lt.s32.totalorder (!%p249_p3), %s738_s22, 1  ;;  %p297_p6 = scmp.lt.s32.totalorder (!%p249_p3), %s734_s21, 7 }
   0x9   : > { %s959_s27 = smov (%p30_p4, %s957_s27), 0  ;;  %252 = sbr.rel (%p249_p3) target bundleno = 53 (0x35), region = 44 }
   0xe   : > { %s961_s22 = smov (!%p295_p5, %s738_s22), 1  ;;  %s963_s21 = smov (!%p297_p6, %s734_s21), 7  ;;  %v833_v0 = vld [vmem:[%s945_s2] ss:$0 sm:$0xff] }
   0xf   : > { %s671_s28 = smul.u32 96, %s961_s22  ;;  %v838_v1 = vld [vmem:[%s947_s4] ss:$0 sm:$0xff] }
  0x10   : > { %s670_s29 = smul.u32 12, %s963_s21  ;;  %v847_v10 = vld [vmem:[%s946_s3] ss:$0 sm:$0xff] }
  0x11   : > { %v852_v11 = vld [vmem:[%s948_s5] ss:$0 sm:$0xff] }
  0x12   : > { %s817_s30 = sadd.s32 %s671_s28, %s670_s29 }
  0x13   : > { %s603_s7 = sshll.u32 %s817_s30, 2  ;;  %s605_s22 = sshll.u32 %s817_s30, 3 }
  0x14   : > { %s823_s10 = scalar_lea.vmem %s943_s0, %s603_s7  ;;  %s828_s13 = scalar_lea.vmem %s944_s1, %s603_s7 }
  0x15   : > { %v613_v2 = vld [vmem:[%s823_s10] sm:$0xff]   ;;  %v660_v4 = vld [vmem:[%s823_s10 + $0x8] sm:$0xff]   ;;  %v661_v24 = vld [vmem:[%s823_s10 + $0x10] sm:$0xff]   ;;  %s876_s30 = scalar_lea.vmem %s949_s6, %s605_s22 }
  0x16   : > { %v637_v3 = vld [vmem:[%s828_s13] sm:$0xff]   ;;  %v614_v5 = vunpack.c.l.bf16 %v613_v2  ;;  %v615_v7 = vunpack.c.h.bf16 %v613_v2  ;;  %v665_v9 = vld [vmem:[%s828_s13 + $0x8] sm:$0xff]   ;;  %v618_v12 = vunpack.c.l.bf16 %v660_v4  ;;  %v619_v14 = vunpack.c.h.bf16 %v660_v4  ;;  %v666_v25 = vld [vmem:[%s828_s13 + $0x10] sm:$0xff]  }
  0x17   : > { %v638_v6 = vunpack.c.l.bf16 %v637_v3  ;;  %v639_v8 = vunpack.c.h.bf16 %v637_v3  ;;  %v642_v13 = vunpack.c.l.bf16 %v665_v9  ;;  %v643_v15 = vunpack.c.h.bf16 %v665_v9  ;;  %v662_v42 = vld [vmem:[%s823_s10 + $0x18] sm:$0xff]   ;;  %v663_v52 = vld [vmem:[%s823_s10 + $0x20] sm:$0xff]  }
  0x18   : > { %v353_v16 = vmul.f32 %v614_v5, %v833_v0  ;;  %v354_v18 = vmul.f32 %v615_v7, %v833_v0  ;;  %v355_v20 = vmul.f32 %v618_v12, %v833_v0  ;;  %v356_v22 = vmul.f32 %v619_v14, %v833_v0  ;;  %v667_v43 = vld [vmem:[%s828_s13 + $0x18] sm:$0xff]   ;;  %v668_v57 = vld [vmem:[%s828_s13 + $0x20] sm:$0xff]   ;;  %v664_v14 = vld [vmem:[%s823_s10 + $0x28] sm:$0xff]  }
  0x19   : > { %v415_v17 = vmul.f32 %v638_v6, %v838_v1  ;;  %v416_v19 = vmul.f32 %v639_v8, %v838_v1  ;;  %v417_v21 = vmul.f32 %v642_v13, %v838_v1  ;;  %v418_v23 = vmul.f32 %v643_v15, %v838_v1  ;;  %v669_v15 = vld [vmem:[%s828_s13 + $0x28] sm:$0xff]  }
  0x1a   : > { %v372_v26 = vadd.f32 %v847_v10, %v353_v16  ;;  %v373_v28 = vadd.f32 %v847_v10, %v354_v18  ;;  %v374_v30 = vadd.f32 %v847_v10, %v355_v20  ;;  %v375_v32 = vadd.f32 %v847_v10, %v356_v22 }
  0x1b   : > { %v434_v27 = vadd.f32 %v852_v11, %v415_v17  ;;  %v435_v29 = vadd.f32 %v852_v11, %v416_v19  ;;  %v436_v31 = vadd.f32 %v852_v11, %v417_v21  ;;  %v437_v33 = vadd.f32 %v852_v11, %v418_v23 }
  0x1c   : > { %v622_v36 = vunpack.c.l.bf16 %v661_v24  ;;  %v646_v37 = vunpack.c.l.bf16 %v666_v25  ;;  %v623_v40 = vunpack.c.h.bf16 %v661_v24  ;;  %v647_v41 = vunpack.c.h.bf16 %v666_v25 }
  0x1d   : > { %v446_v34 = vadd.f32 %v434_v27, %v372_v26  ;;  %v447_v35 = vadd.f32 %v435_v29, %v373_v28  ;;  %v448_v38 = vadd.f32 %v436_v31, %v374_v30  ;;  %v449_v39 = vadd.f32 %v437_v33, %v375_v32 }
  0x1e   : > { %v357_v46 = vmul.f32 %v622_v36, %v833_v0  ;;  %v419_v47 = vmul.f32 %v646_v37, %v838_v1  ;;  %v358_v50 = vmul.f32 %v623_v40, %v833_v0  ;;  %v420_v51 = vmul.f32 %v647_v41, %v838_v1 }
  0x1f   : > { %v458_v44 = vmax.f32 %v446_v34, 0.0  ;;  %v459_v45 = vmax.f32 %v447_v35, 0.0  ;;  %v460_v48 = vmax.f32 %v448_v38, 0.0  ;;  %v461_v49 = vmax.f32 %v449_v39, 0.0 }
  0x20   : > { %v376_v53 = vadd.f32 %v847_v10, %v357_v46  ;;  %v438_v54 = vadd.f32 %v852_v11, %v419_v47  ;;  %v626_v55 = vunpack.c.l.bf16 %v662_v42  ;;  %v650_v56 = vunpack.c.l.bf16 %v667_v43 }
  0x21   : > { %470 = vst [vmem:[%s876_s30] sm:$0xff] %v458_v44  ;;  %471 = vst [vmem:[%s876_s30 + $0x8] sm:$0xff] %v459_v45  ;;  %v377_v58 = vadd.f32 %v847_v10, %v358_v50  ;;  %v439_v59 = vadd.f32 %v852_v11, %v420_v51  ;;  %v627_v60 = vunpack.c.h.bf16 %v662_v42  ;;  %v651_v61 = vunpack.c.h.bf16 %v667_v43 }
  0x22   : > { %472 = vst [vmem:[%s876_s30 + $0x10] sm:$0xff] %v460_v48  ;;  %473 = vst [vmem:[%s876_s30 + $0x18] sm:$0xff] %v461_v49  ;;  %v450_v62 = vadd.f32 %v438_v54, %v376_v53  ;;  %v359_v63 = vmul.f32 %v626_v55, %v833_v0  ;;  %v421_v2 = vmul.f32 %v650_v56, %v838_v1  ;;  %v630_v3 = vunpack.c.l.bf16 %v663_v52 }
  0x23   : > { %v451_v4 = vadd.f32 %v439_v59, %v377_v58  ;;  %v360_v5 = vmul.f32 %v627_v60, %v833_v0  ;;  %v422_v6 = vmul.f32 %v651_v61, %v838_v1  ;;  %v654_v7 = vunpack.c.l.bf16 %v668_v57 }
  0x24   : > { %v462_v8 = vmax.f32 %v450_v62, 0.0  ;;  %v378_v9 = vadd.f32 %v847_v10, %v359_v63  ;;  %v440_v12 = vadd.f32 %v852_v11, %v421_v2  ;;  %v361_v13 = vmul.f32 %v630_v3, %v833_v0 }
  0x25   : > { %v463_v16 = vmax.f32 %v451_v4, 0.0  ;;  %v379_v17 = vadd.f32 %v847_v10, %v360_v5  ;;  %v441_v18 = vadd.f32 %v852_v11, %v422_v6  ;;  %v423_v19 = vmul.f32 %v654_v7, %v838_v1 }
  0x26   : > { %474 = vst [vmem:[%s876_s30 + $0x20] sm:$0xff] %v462_v8  ;;  %v452_v20 = vadd.f32 %v440_v12, %v378_v9  ;;  %v380_v21 = vadd.f32 %v847_v10, %v361_v13  ;;  %v631_v22 = vunpack.c.h.bf16 %v663_v52  ;;  %v655_v23 = vunpack.c.h.bf16 %v668_v57 }
  0x27   : > { %475 = vst [vmem:[%s876_s30 + $0x28] sm:$0xff] %v463_v16  ;;  %v453_v24 = vadd.f32 %v441_v18, %v379_v17  ;;  %v442_v25 = vadd.f32 %v852_v11, %v423_v19  ;;  %v634_v26 = vunpack.c.l.bf16 %v664_v14  ;;  %v658_v27 = vunpack.c.l.bf16 %v669_v15 }
  0x28   : > { %v464_v28 = vmax.f32 %v452_v20, 0.0  ;;  %v362_v29 = vmul.f32 %v631_v22, %v833_v0  ;;  %v424_v30 = vmul.f32 %v655_v23, %v838_v1  ;;  %v635_v31 = vunpack.c.h.bf16 %v664_v14 }
  0x29   : > { %v465_v32 = vmax.f32 %v453_v24, 0.0  ;;  %v454_v33 = vadd.f32 %v442_v25, %v380_v21  ;;  %v363_v34 = vmul.f32 %v634_v26, %v833_v0  ;;  %v425_v35 = vmul.f32 %v658_v27, %v838_v1 }
  0x2a   : > { %476 = vst [vmem:[%s876_s30 + $0x30] sm:$0xff] %v464_v28  ;;  %v381_v36 = vadd.f32 %v847_v10, %v362_v29  ;;  %v443_v37 = vadd.f32 %v852_v11, %v424_v30  ;;  %v364_v38 = vmul.f32 %v635_v31, %v833_v0  ;;  %v659_v39 = vunpack.c.h.bf16 %v669_v15 }
  0x2b   : > { %477 = vst [vmem:[%s876_s30 + $0x38] sm:$0xff] %v465_v32  ;;  %v466_v40 = vmax.f32 %v454_v33, 0.0  ;;  %v382_v41 = vadd.f32 %v847_v10, %v363_v34  ;;  %v444_v42 = vadd.f32 %v852_v11, %v425_v35 }
  0x2c   : > { %v455_v43 = vadd.f32 %v443_v37, %v381_v36  ;;  %v383_v44 = vadd.f32 %v847_v10, %v364_v38  ;;  %v426_v45 = vmul.f32 %v659_v39, %v838_v1 }
  0x2d   : > { %478 = vst [vmem:[%s876_s30 + $0x40] sm:$0xff] %v466_v40  ;;  %v456_v46 = vadd.f32 %v444_v42, %v382_v41 }
  0x2e   : > { %v467_v47 = vmax.f32 %v455_v43, 0.0  ;;  %v445_v48 = vadd.f32 %v852_v11, %v426_v45 }
  0x2f   : > { %v468_v0 = vmax.f32 %v456_v46, 0.0 }
  0x30   : > { %479 = vst [vmem:[%s876_s30 + $0x48] sm:$0xff] %v467_v47  ;;  %v457_v49 = vadd.f32 %v445_v48, %v383_v44 }
  0x31   : > { %480 = vst [vmem:[%s876_s30 + $0x50] sm:$0xff] %v468_v0 }
  0x32   : > { %v469_v50 = vmax.f32 %v457_v49, 0.0 }
  0x34   : > { %481 = vst [vmem:[%s876_s30 + $0x58] sm:$0xff] %v469_v50 }
  0x35 PF: > { %s16_s25 = sadd.s32 1, %s750_s25   ;;  %s950_s21 = smov %s742_s23 }
  0x36   : > { %p13_p7 = scmp.ge.s32.totalorder %s16_s25, 18   ;;  %s951_s22 = smov %s746_s24 }
  0x37   : > { %s952_s23 = smov %s955_s26  ;;  %s953_s24 = smov %s959_s27 }
  0x38   :  { %15 = sbr.rel (!%p13_p7) target bundleno = 3 (0x3), region = 77 }

// kernel: residual_block_forward.8
= control target key start
LH: loop header
LB: loop body
LE: loop exit
PB: predicated region body
PF: predicated region fallthrough
CT: control target
= control target key end

     0   :  { %s1132_s12 = smov 0   ;;  %s1134_s13 = smov 0   ;;  %s1514_s0 = inlined_call_operand.vmem [shape: bf16[2,8,96,4], index: 0, kind: input, shape index: {}]   ;;  %s1515_s1 = inlined_call_operand.vmem [shape: bf16[4,128], index: 1, kind: input, shape index: {}]   ;;  %s1516_s2 = inlined_call_operand.vmem [shape: bf16[2,8,96,128], index: 2, kind: output, shape index: {0}]   ;;  %s1517_s3 = inlined_call_operand.vmem [shape: f32[2,8,2,128], index: 3, kind: output, shape index: {1}]  }
   0x1   :  { %s1136_s14 = smov 0   ;;  %s1138_s15 = smov 0  }
   0x2   :  { %s1140_s16 = smov 0  }
   0x3 LB: > { %s23_s17 = sadd.s32 1, %s1101_s14  ;;  %s26_s18 = sadd.s32 1, %s1105_s15  ;;  %s1109_s16 = sphi %s1140_s16, %s14_s16   ;;  %s1105_s15 = sphi %s1138_s15, %s1565_s15   ;;  %s1101_s14 = sphi %s1136_s14, %s1564_s14   ;;  %s1097_s13 = sphi %s1134_s13, %s1563_s13   ;;  %s1093_s12 = sphi %s1132_s12, %s1562_s12  }
   0x4   : > { %p24_p0 = scmp.ge.s32.totalorder %s23_s17, 8  ;;  %p883_p1 = scmp.ge.s32.totalorder %s1109_s16, 1 }
   0x5   : > { %p162_p2 = scmp.lt.s32.totalorder %s1109_s16, 17 }
   0x6   : > { %s1567_s17 = smov (%p24_p0, %s23_s17), 0  ;;  %s1569_s18 = smov (!%p24_p0, %s26_s18), %s1105_s15 }
   0x7   : > { %p163_p3 = pnand %p883_p1, %p162_p2  ;;  %p28_p4 = scmp.ge.s32.totalorder %s1569_s18, 2 }
   0x8   : > { %p202_p5 = scmp.lt.s32.totalorder (!%p163_p3), %s1097_s13, 1  ;;  %p204_p6 = scmp.lt.s32.totalorder (!%p163_p3), %s1093_s12, 7 }
   0x9   : > { %s1571_s18 = smov (%p28_p4, %s1569_s18), 0  ;;  %166 = sbr.rel (%p163_p3) target bundleno = 261 (0x105), region = 28 }
   0xe   : > { %v241_v0 = vld [vmem:[%s1515_s1] sm:$0x3]  ;;  %vm291_vm0 = vcmask 1041408   ;;  %s1573_s13 = smov (!%p202_p5, %s1097_s13), 1  ;;  %s1575_s12 = smov (!%p204_p6, %s1093_s12), 7  ;;  %vm272_vm1 = vcmask 31744   ;;  %v436_v8 = vlaneseq }
   0xf   : > { %996 = vmatprep.subr.msk.bf16.mxu0 %vm291_vm0, %v241_v0  ;;  %997 = vmatprep.subr.msk.bf16.mxu1 %vm291_vm0, %v241_v0  ;;  %v293_v1 = vsel %vm291_vm0, %v241_v0, 0  ;;  %s999_s21 = smul.u32 96, %s1573_s13  ;;  %s886_s4 = sshll.u32 %s1573_s13, 3 }
  0x10   : > { %981 = vmatpush3.bf16.msra.mxu0 %v293_v1  ;;  %995 = vmatpush3.bf16.msra.mxu1 %v293_v1  ;;  %s998_s22 = smul.u32 12, %s1575_s12  ;;  %v437_v9 = vshrl.u32 %v436_v8, 7  ;;  %s225_s5 = sadd.s32 %s886_s4, %s1575_s12 }
  0x11   : > { %s887_s6 = sshll.u32 %s225_s5, 1 }
  0x12   : > { %s1171_s23 = sadd.s32 %s999_s21, %s998_s22  ;;  %v439_v10 = vadd.s32 16, %v437_v9  ;;  %v440_v13 = vadd.s32 24, %v437_v9  ;;  %v441_v14 = vadd.s32 32, %v437_v9  ;;  %v438_v17 = vadd.s32 8, %v437_v9  ;;  %s227_s9 = scalar_lea.vmem %s1517_s3, %s887_s6 }
  0x13   : > { %s884_s24 = sshll.u32 %s1171_s23, 2  ;;  %v1182_v15 = vmul.u32.u64.low 2863311531, %v437_v9  ;;  %v1183_v16 = vmul.u32.u64.high 2863311531, %v437_v9, %v1182_v15  ;;  %v443_v18 = vadd.s32 48, %v437_v9  ;;  %v442_v25 = vadd.s32 40, %v437_v9 }
  0x14   : > { %s210_s27 = scalar_lea.vmem %s1514_s0, %s884_s24  ;;  %v1179_v11 = vmul.u32.u64.low 2863311531, %v439_v10  ;;  %v1180_v12 = vmul.u32.u64.high 2863311531, %v439_v10, %v1179_v11  ;;  %v1185_v19 = vmul.u32.u64.low 2863311531, %v440_v13  ;;  %v1186_v20 = vmul.u32.u64.high 2863311531, %v440_v13, %v1185_v19  ;;  %s1379_s30 = scalar_lea.vmem %s1516_s2, %s884_s24 }
  0x15   : > { %v1065_v2 = vld [vmem:[%s210_s27] sm:$0xff]   ;;  %v1066_v3 = vld [vmem:[%s210_s27 + $0x10] sm:$0xff]   ;;  %v1067_v4 = vld [vmem:[%s210_s27 + $0x8] sm:$0xff]   ;;  %v1188_v21 = vmul.u32.u64.low 2863311531, %v441_v14  ;;  %v1189_v22 = vmul.u32.u64.high 2863311531, %v441_v14, %v1188_v21  ;;  %v455_v29 = vshrl.u32 %v1183_v16, 3 }
  0x16   : > { %982 = vmatprep.mubr.msk.bf16.mxu0 %vm272_vm1, %v1065_v2  ;;  %986 = vmatprep.mubr.msk.bf16.mxu1 %vm272_vm1, %v1066_v3  ;;  %v1068_v5 = vld [vmem:[%s210_s27 + $0x18] sm:$0xff]   ;;  %v1069_v6 = vld [vmem:[%s210_s27 + $0x20] sm:$0xff]   ;;  %v1070_v7 = vld [vmem:[%s210_s27 + $0x28] sm:$0xff]   ;;  %v1191_v23 = vmul.u32.u64.low 2863311531, %v438_v17  ;;  %v1192_v24 = vmul.u32.u64.high 2863311531, %v438_v17, %v1191_v23  ;;  %v477_v26 = vshrl.u32 %v1180_v12, 3 }
  0x17   : > { %983 = vmatmul.mubr.msk.bf16.vlgmr.msra.gmra.mxu0 %vm272_vm1, %v1067_v4  ;;  %987 = vmatmul.mubr.msk.bf16.vlgmr.msra.gmra.mxu1 %vm272_vm1, %v1068_v5  ;;  %v1195_v27 = vmul.u32.u64.low 2863311531, %v443_v18  ;;  %v1196_v28 = vmul.u32.u64.high 2863311531, %v443_v18, %v1195_v27  ;;  %v1199_v30 = vadd.s32 56, %v437_v9  ;;  %v488_v34 = vshrl.u32 %v1186_v20, 3 }
  0x18   : > { %990 = vmatprep.mubr.msk.bf16.mxu1 %vm272_vm1, %v1069_v6  ;;  %v1201_v31 = vmul.u32.u64.low 2863311531, %v442_v25  ;;  %v1202_v32 = vmul.u32.u64.high 2863311531, %v442_v25, %v1201_v31  ;;  %v478_v33 = vmul.u32 12, %v477_v26  ;;  %v499_v35 = vshrl.u32 %v1189_v22, 3 }
  0x19   : > { %v1206_v36 = vadd.s32 64, %v437_v9  ;;  %v456_v37 = vmul.u32 12, %v455_v29  ;;  %v1209_v38 = vmul.u32.u64.low 2863311531, %v1199_v30  ;;  %v1210_v39 = vmul.u32.u64.high 2863311531, %v1199_v30, %v1209_v38 }
  0x1a   : > { %v466_v40 = vshrl.u32 %v1192_v24, 3  ;;  %v1213_v41 = vadd.s32 72, %v437_v9  ;;  %v1215_v42 = vsub.s32 %v439_v10, %v478_v33  ;;  %v521_v43 = vshrl.u32 %v1196_v28, 3 }
  0x1b   : > { %v489_v44 = vmul.u32 12, %v488_v34  ;;  %v500_v45 = vmul.u32 12, %v499_v35  ;;  %v1218_v46 = vadd.s32 80, %v437_v9  ;;  %v457_v49 = vsub.s32 %v437_v9, %v456_v37 }
  0x1c   : > { %v1221_v47 = vmul.u32.u64.low 2863311531, %v1206_v36  ;;  %v1222_v48 = vmul.u32.u64.high 2863311531, %v1206_v36, %v1221_v47  ;;  %v467_v50 = vmul.u32 12, %v466_v40  ;;  %v510_v51 = vshrl.u32 %v1202_v32, 3 }
  0x1d   : > { %v1225_v52 = vadd.s32 88, %v437_v9  ;;  %v1228_v53 = vmul.u32.u64.low 2863311531, %v1213_v41  ;;  %v1229_v54 = vmul.u32.u64.high 2863311531, %v1213_v41, %v1228_v53  ;;  %v522_v55 = vmul.u32 12, %v521_v43 }
  0x1e   : > { %v490_v56 = vsub.s32 %v440_v13, %v489_v44  ;;  %vm583_vm2 = vcmp.ne.s32.totalorder %v1215_v42, 0  ;;  %v501_v57 = vsub.s32 %v441_v14, %v500_v45  ;;  %vm595_vm3 = vcmp.lt.s32.totalorder %v1215_v42, 0 }
  0x1f   : > { %991 = vmatmul.mubr.msk.bf16.gmra.mxu1 %vm272_vm1, %v1070_v7  ;;  %v1233_v58 = vmul.u32.u64.low 2863311531, %v1218_v46  ;;  %v1234_v59 = vmul.u32.u64.high 2863311531, %v1218_v46, %v1233_v58  ;;  %vm581_vm4 = vcmp.ne.s32.totalorder %v457_v49, 0  ;;  %v532_v60 = vshrl.u32 %v1210_v39, 3  ;;  %vm1247_vm8 = vmand %vm595_vm3, %vm583_vm2 }
  0x20   : > { %v468_v61 = vsub.s32 %v438_v17, %v467_v50  ;;  %vm593_vm5 = vcmp.lt.s32.totalorder %v457_v49, 0  ;;  %v511_v62 = vmul.u32 12, %v510_v51  ;;  %v619_v1 = vadd.s32 12, %v1215_v42 }
  0x21   : > { %v1239_v63 = vmul.u32.u64.low 2863311531, %v1225_v52  ;;  %v1240_v0 = vmul.u32.u64.high 2863311531, %v1225_v52, %v1239_v63  ;;  %v1243_v2 = vsub.s32 %v443_v18, %v522_v55  ;;  %vm584_vm6 = vcmp.ne.s32.totalorder %v490_v56, 0  ;;  %vm1253_vm11 = vmand %vm593_vm5, %vm581_vm4 }
  0x22   : > { %vm596_vm7 = vcmp.lt.s32.totalorder %v490_v56, 0  ;;  %v617_v4 = vadd.s32 12, %v457_v49  ;;  %vm585_vm9 = vcmp.ne.s32.totalorder %v501_v57, 0  ;;  %vm597_vm10 = vcmp.lt.s32.totalorder %v501_v57, 0 }
  0x23   : > { %v543_v5 = vshrl.u32 %v1222_v48, 3  ;;  %v620_v7 = vadd.s32 12, %v490_v56  ;;  %v533_v8 = vmul.u32 12, %v532_v60  ;;  %vm582_vm12 = vcmp.ne.s32.totalorder %v468_v61, 0  ;;  %vm1257_vm14 = vmand %vm596_vm7, %vm584_vm6 }
  0x24   : > { %vm594_vm13 = vcmp.lt.s32.totalorder %v468_v61, 0  ;;  %v1261_v10 = vsub.s32 %v442_v25, %v511_v62  ;;  %v554_v11 = vshrl.u32 %v1229_v54, 3  ;;  %vm587_vm15 = vcmp.ne.s32.totalorder %v1243_v2, 0  ;;  %vm1267_vm1 = vmand %vm597_vm10, %vm585_vm9 }
  0x25   : > { %vm599_vm0 = vcmp.lt.s32.totalorder %v1243_v2, 0  ;;  %v621_v13 = vadd.s32 12, %v501_v57  ;;  %v618_v14 = vadd.s32 12, %v468_v61  ;;  %v631_v15 = vsel %vm1247_vm8, %v619_v1, %v1215_v42  ;;  %vm1274_vm2 = vmand %vm594_vm13, %vm582_vm12 }
  0x26   : > { %v565_v17 = vshrl.u32 %v1234_v59, 3  ;;  %v544_v18 = vmul.u32 12, %v543_v5  ;;  %v623_v19 = vadd.s32 12, %v1243_v2  ;;  %v629_v20 = vsel %vm1253_vm11, %v617_v4, %v457_v49  ;;  %vm1287_vm3 = vmand %vm599_vm0, %vm587_vm15 }
  0x27   : > { %v632_v21 = vsel %vm1257_vm14, %v620_v7, %v490_v56  ;;  %v1285_v22 = vsub.s32 %v1199_v30, %v533_v8  ;;  %vm586_vm4 = vcmp.ne.s32.totalorder %v1261_v10, 0  ;;  %vm598_vm5 = vcmp.lt.s32.totalorder %v1261_v10, 0 }
  0x28   : > { %v576_v24 = vshrl.u32 %v1240_v0, 3  ;;  %v555_v25 = vmul.u32 12, %v554_v11  ;;  %vm1294_vm6 = vcmp.lt.s32.totalorder %v631_v15, 8  ;;  %v633_v27 = vsel %vm1267_vm1, %v621_v13, %v501_v57  ;;  %vm1321_vm11 = vmand %vm598_vm5, %vm586_vm4 }
  0x29   : > { %v630_v28 = vsel %vm1274_vm2, %v618_v14, %v468_v61  ;;  %vm1302_vm7 = vcmp.lt.s32.totalorder %v629_v20, 8  ;;  %v622_v30 = vadd.s32 12, %v1261_v10  ;;  %v566_v31 = vmul.u32 12, %v565_v17 }
  0x2a   : > { %v1308_v32 = vsub.s32 %v1206_v36, %v544_v18  ;;  %v635_v33 = vsel %vm1287_vm3, %v623_v19, %v1243_v2  ;;  %vm1313_vm8 = vcmp.lt.s32.totalorder %v632_v21, 8  ;;  %vm588_vm9 = vcmp.ne.s32.totalorder %v1285_v22, 0 }
  0x2b   : > { %vm600_vm10 = vcmp.lt.s32.totalorder %v1285_v22, 0  ;;  %vm1327_vm12 = vcmp.lt.s32.totalorder %v633_v27, 8  ;;  %vm1331_vm13 = vcmp.lt.s32.totalorder %v630_v28, 8  ;;  %v577_v39 = vmul.u32 12, %v576_v24 }
  0x2c   : > { %v1336_v40 = vsub.s32 %v1213_v41, %v555_v25  ;;  %v1111_v42 = vmov 0.0   ;;  %v624_v47 = vadd.s32 12, %v1285_v22  ;;  %vm1347_vm14 = vmand %vm600_vm10, %vm588_vm9  ;;  %v634_v41 = vsel %vm1321_vm11, %v622_v30, %v1261_v10 }
  0x2d   : > { %v914_v43 = vsel %vm1294_vm6, 1.0, %v1111_v42  ;;  %v912_v45 = vsel %vm1302_vm7, 1.0, %v1111_v42  ;;  %v1355_v50 = vsub.s32 %v1218_v46, %v566_v31  ;;  %vm589_vm15 = vcmp.ne.s32.totalorder %v1308_v32, 0 }
  0x2e   : > { %vm601_vm0 = vcmp.lt.s32.totalorder %v1308_v32, 0  ;;  %vm1359_vm1 = vcmp.lt.s32.totalorder %v635_v33, 8  ;;  %v916_v54 = vsel %vm1327_vm12, 1.0, %v1111_v42  ;;  %v915_v55 = vsel %vm1313_vm8, 1.0, %v1111_v42 }
  0x2f   : > { %v913_v46 = vsel %vm1331_vm13, 1.0, %v1111_v42  ;;  %v625_v57 = vadd.s32 12, %v1308_v32  ;;  %v1383_v58 = vsub.s32 %v1225_v52, %v577_v39  ;;  %vm590_vm2 = vcmp.ne.s32.totalorder %v1336_v40, 0  ;;  %vm1401_vm5 = vmand %vm601_vm0, %vm589_vm15 }
  0x30   : > { %vm602_vm3 = vcmp.lt.s32.totalorder %v1336_v40, 0  ;;  %v636_v62 = vsel %vm1347_vm14, %v624_v47, %v1285_v22  ;;  %vm1393_vm4 = vcmp.lt.s32.totalorder %v634_v41, 8  ;;  %vm591_vm6 = vcmp.ne.s32.totalorder %v1355_v50, 0 }
  0x31   : > { %vm603_vm7 = vcmp.lt.s32.totalorder %v1355_v50, 0  ;;  %v626_v2 = vadd.s32 12, %v1336_v40  ;;  %v627_v7 = vadd.s32 12, %v1355_v50  ;;  %vm1417_vm8 = vmand %vm602_vm3, %vm590_vm2  ;;  %v637_v10 = vsel %vm1401_vm5, %v625_v57, %v1308_v32 }
  0x32   : > { %vm592_vm9 = vcmp.ne.s32.totalorder %v1383_v58, 0  ;;  %vm604_vm10 = vcmp.lt.s32.totalorder %v1383_v58, 0  ;;  %vm1433_vm11 = vmand %vm603_vm7, %vm591_vm6  ;;  %vm1437_vm12 = vcmp.lt.s32.totalorder %v636_v62, 8  ;;  %v917_v18 = vsel %vm1393_vm4, 1.0, %v1111_v42 }
  0x33   : > { %v628_v19 = vadd.s32 12, %v1383_v58  ;;  %v638_v20 = vsel %vm1417_vm8, %v626_v2, %v1336_v40  ;;  %vm1455_vm13 = vmand %vm604_vm10, %vm592_vm9  ;;  %v918_v27 = vsel %vm1359_vm1, 1.0, %v1111_v42  ;;  %v639_v28 = vsel %vm1433_vm11, %v627_v7, %v1355_v50 }
  0x34   : > { %vm1465_vm14 = vcmp.lt.s32.totalorder %v637_v10, 8  ;;  %v919_v35 = vsel %vm1437_vm12, 1.0, %v1111_v42  ;;  %vm1475_vm15 = vcmp.lt.s32.totalorder %v638_v20, 8  ;;  %vm651_vm0 = vcmp.lt.s32.totalorder %v639_v28, 8 }
  0x35   : > { %v640_v37 = vsel %vm1455_vm13, %v628_v19, %v1383_v58  ;;  %v922_v58 = vsel %vm651_vm0, 1.0, %v1111_v42 }
  0x36   : > { %vm652_vm1 = vcmp.lt.s32.totalorder %v640_v37, 8 }
  0x37   : > { %v923_v52 = vsel %vm652_vm1, 1.0, %v1111_v42 }
  0xd7   : > { %v1325_v36 = vpop.f32.mrf.mxu0  ;;  %v1341_v44 = vpop.f32.mrf.mxu1 }
  0xd8   : > { %v679_v3 = vmul.f32 %v1325_v36, %v914_v43  ;;  %v683_v39 = vmul.f32 %v1341_v44, %v918_v27 }
  0xd9   : > { %v329_v48 = vpop.f32.mrf.mxu0  ;;  %v1363_v53 = vpop.f32.mrf.mxu1 }
  0xda   : > { %v677_v59 = vmul.f32 %v912_v45, %v329_v48  ;;  %v709_v21 = vmul.f32 %v1325_v36, %v679_v3  ;;  %v681_v22 = vmul.f32 %v916_v54, %v1363_v53 }
  0xdb   : > { %v985_v56 = vpop.f32.mrf.mxu0  ;;  %v1388_v61 = vpop.f32.mrf.mxu1 }
  0xdc   : > { %v946_v60 = vpack.c.bf16 %v985_v56, %v1325_v36  ;;  %v956_v0 = vpack.c.bf16 %v1388_v61, %v1341_v44  ;;  %v707_v11 = vmul.f32 %v677_v59, %v329_v48  ;;  %v680_v12 = vmul.f32 %v985_v56, %v915_v55 }
  0xdd   : > { %v332_v1 = vpop.f32.mrf.mxu0  ;;  %v348_v6 = vpop.f32.mrf.mxu1  ;;  %v711_v40 = vmul.f32 %v681_v22, %v1363_v53  ;;  %v684_v41 = vmul.f32 %v1388_v61, %v919_v35  ;;  %v713_v55 = vmul.f32 %v1341_v44, %v683_v39 }
  0xde   : > { %968 = vst [vmem:[%s1379_s30 + $0x8] sm:$0xff] %v946_v60   ;;  %v941_v4 = vpack.c.bf16 %v332_v1, %v329_v48  ;;  %v678_v5 = vmul.f32 %v913_v46, %v332_v1  ;;  %970 = vst [vmem:[%s1379_s30 + $0x18] sm:$0xff] %v956_v0   ;;  %v951_v9 = vpack.c.bf16 %v348_v6, %v1363_v53  ;;  %v920_v48 = vsel %vm1465_vm14, 1.0, %v1111_v42 }
  0xdf   : > { %v992_v15 = vpop.f32.mrf.mxu1  ;;  %v710_v30 = vmul.f32 %v985_v56, %v680_v12  ;;  %v682_v33 = vmul.f32 %v917_v18, %v348_v6  ;;  %v921_v53 = vsel %vm1475_vm15, 1.0, %v1111_v42 }
  0xe0   : > { %942 = vst [vmem:[%s1379_s30] sm:$0xff] %v941_v4   ;;  %v689_v13 = vadd.f32 %v678_v5, %v677_v59  ;;  %v708_v14 = vmul.f32 %v678_v5, %v332_v1  ;;  %969 = vst [vmem:[%s1379_s30 + $0x10] sm:$0xff] %v951_v9   ;;  %v714_v59 = vmul.f32 %v1388_v61, %v684_v41 }
  0xe1   : > { %v361_v25 = vpop.f32.mrf.mxu1  ;;  %v712_v51 = vmul.f32 %v682_v33, %v348_v6  ;;  %v687_v0 = vmul.f32 %v992_v15, %v922_v58 }
  0xe2   : > { %v690_v23 = vadd.f32 %v689_v13, %v679_v3  ;;  %v719_v24 = vadd.f32 %v708_v14, %v707_v11  ;;  %v685_v57 = vmul.f32 %v920_v48, %v361_v25 }
  0xe3   : > { %v993_v34 = vpop.f32.mrf.mxu1  ;;  %v717_v7 = vmul.f32 %v992_v15, %v687_v0 }
  0xe4   : > { %v691_v31 = vadd.f32 %v690_v23, %v680_v12  ;;  %v720_v32 = vadd.f32 %v719_v24, %v709_v21  ;;  %v966_v36 = vpack.c.bf16 %v993_v34, %v992_v15  ;;  %v715_v2 = vmul.f32 %v685_v57, %v361_v25 }
  0xe5   : > { %v364_v47 = vpop.f32.mrf.mxu1  ;;  %v688_v44 = vmul.f32 %v993_v34, %v923_v52 }
  0xe6   : > { %v721_v43 = vadd.f32 %v720_v32, %v710_v30  ;;  %v692_v45 = vadd.f32 %v691_v31, %v681_v22  ;;  %972 = vst [vmem:[%s1379_s30 + $0x28] sm:$0xff] %v966_v36   ;;  %v961_v49 = vpack.c.bf16 %v364_v47, %v361_v25  ;;  %v686_v63 = vmul.f32 %v921_v53, %v364_v47 }
  0xe7   : > { %v718_v10 = vmul.f32 %v993_v34, %v688_v44 }
  0xe8   : > { %v693_v50 = vadd.f32 %v692_v45, %v682_v33  ;;  %v722_v54 = vadd.f32 %v721_v43, %v711_v40  ;;  %971 = vst [vmem:[%s1379_s30 + $0x20] sm:$0xff] %v961_v49   ;;  %v716_v6 = vmul.f32 %v686_v63, %v364_v47 }
  0xea   : > { %v694_v46 = vadd.f32 %v693_v50, %v683_v39  ;;  %v723_v56 = vadd.f32 %v722_v54, %v712_v51 }
  0xec   : > { %v724_v60 = vadd.f32 %v723_v56, %v713_v55  ;;  %v695_v62 = vadd.f32 %v694_v46, %v684_v41 }
  0xee   : > { %v696_v1 = vadd.f32 %v695_v62, %v685_v57  ;;  %v725_v3 = vadd.f32 %v724_v60, %v714_v59 }
  0xf0   : > { %v726_v4 = vadd.f32 %v725_v3, %v715_v2  ;;  %v697_v5 = vadd.f32 %v696_v1, %v686_v63 }
  0xf2   : > { %v698_v8 = vadd.f32 %v697_v5, %v687_v0  ;;  %v727_v9 = vadd.f32 %v726_v4, %v716_v6 }
  0xf4   : > { %v699_v61 = vadd.f32 %v698_v8, %v688_v44  ;;  %v728_v11 = vadd.f32 %v727_v9, %v717_v7 }
  0xf6   : > { %v700_v12 = vrot.slane %v699_v61, 4  ;;  %v729_v13 = vadd.f32 %v728_v11, %v718_v10 }
  0xf8   : > { %v701_v14 = vadd.f32 %v700_v12, %v699_v61  ;;  %v730_v42 = vrot.slane %v729_v13, 4 }
  0xfa   : > { %v702_v16 = vrot.slane %v701_v14, 2  ;;  %v731_v17 = vadd.f32 %v730_v42, %v729_v13 }
  0xfc   : > { %v703_v18 = vadd.f32 %v702_v16, %v701_v14  ;;  %v732_v19 = vrot.slane %v731_v17, 2 }
  0xfe   : > { %v704_v20 = vrot.slane %v703_v18, 1  ;;  %v733_v21 = vadd.f32 %v732_v19, %v731_v17 }
 0x100   : > { %v705_v15 = vadd.f32 %v704_v20, %v703_v18  ;;  %v734_v22 = vrot.slane %v733_v21, 1 }
 0x102   : > { %706 = vst [vmem:[%s227_s9] sm:$0x1] %v705_v15  ;;  %v735_v23 = vadd.f32 %v734_v22, %v733_v21 }
 0x104   : > { %736 = vst [vmem:[%s227_s9 + $0x1] sm:$0x1] %v735_v23 }
 0x105 PF: > { %s14_s16 = sadd.s32 1, %s1109_s16   ;;  %s1562_s12 = smov %s1101_s14 }
 0x106   : > { %p11_p7 = scmp.ge.s32.totalorder %s14_s16, 18   ;;  %s1563_s13 = smov %s1105_s15 }
 0x107   : > { %s1564_s14 = smov %s1567_s17  ;;  %s1565_s15 = smov %s1571_s18 }
 0x108   :  { %13 = sbr.rel (!%p11_p7) target bundleno = 3 (0x3), region = 70 }

// kernel: residual_block_forward.7
= control target key start
LH: loop header
LB: loop body
LE: loop exit
PB: predicated region body
PF: predicated region fallthrough
CT: control target
= control target key end

     0   :  { %s3732_s12 = smov 0   ;;  %s3734_s13 = smov 0   ;;  %s4364_s0 = inlined_call_operand.vmem [shape: bf16[2,10,132,128], index: 0, kind: input, shape index: {}]   ;;  %s4365_s1 = inlined_call_operand.vmem [shape: bf16[3,9,128,128], index: 1, kind: input, shape index: {}]   ;;  %s4366_s2 = inlined_call_operand.vmem [shape: bf16[2,8,96,128], index: 2, kind: output, shape index: {0}]   ;;  %s4367_s3 = inlined_call_operand.vmem [shape: f32[2,8,2,128], index: 3, kind: output, shape index: {1}]  }
   0x1   :  { %s3736_s14 = smov 0   ;;  %s3738_s15 = smov 0  }
   0x2   :  { %s3740_s16 = smov 0   ;;  %s3742_s17 = smov 0  }
   0x3   :  { %s3744_s18 = smov 0  }
   0x4 LB: > { %s26_s19 = sadd.s32 1, %s3697_s15  ;;  %s29_s20 = sadd.s32 1, %s3701_s16  ;;  %s3709_s18 = sphi %s3744_s18, %s14_s18   ;;  %s3705_s17 = sphi %s3742_s17, %s4401_s17   ;;  %s3701_s16 = sphi %s3740_s16, %s4400_s16   ;;  %s3697_s15 = sphi %s3738_s15, %s4399_s15   ;;  %s3693_s14 = sphi %s3736_s14, %s4398_s14   ;;  %s3689_s13 = sphi %s3734_s13, %s4397_s13   ;;  %s3685_s12 = sphi %s3732_s12, %s4396_s12  }
   0x5   : > { %p27_p0 = scmp.ge.s32.totalorder %s26_s19, 3  ;;  %p2751_p1 = scmp.ge.s32.totalorder %s3709_s18, 1 }
   0x6   : > { %p173_p2 = scmp.lt.s32.totalorder %s3709_s18, 49  ;;  %s33_s21 = sadd.s32 1, %s3705_s17 }
   0x7   : > { %s4403_s19 = smov (%p27_p0, %s26_s19), 0  ;;  %s4405_s20 = smov (!%p27_p0, %s29_s20), %s3701_s16 }
   0x8   : > { %p174_p3 = pnand %p2751_p1, %p173_p2  ;;  %p31_p4 = scmp.ge.s32.totalorder %s4405_s20, 8 }
   0xa   : > { %s4407_s20 = smov (%p31_p4, %s4405_s20), 0  ;;  %s4409_s21 = smov (!%p31_p4, %s33_s21), %s3705_s17 }
   0xb   : > { %p35_p5 = scmp.ge.s32.totalorder %s4409_s21, 2  ;;  %177 = sbr.rel (%p174_p3) target bundleno = 492 (0x1ec), region = 28 }
   0xd   : > { %s4411_s21 = smov (%p35_p5, %s4409_s21), 0 }
  0x10   : > { %s3025_s22 = smul.u32 576, %s3685_s12  ;;  %s214_s23 = sadd.s32 %s3685_s12, %s3689_s13  ;;  %vm327_vm0 = vsmask.f32 7424  ;;  %vm673_vm1 = vcmask 1046528   ;;  %vm899_vm2 = vcmask 1045504   ;;  %vm1316_vm4 = vcmask 1044480  }
  0x11   : > { %p215_p6 = scmp.lt.s32.totalorder %s3693_s14, 1  ;;  %p217_p7 = scmp.lt.s32.totalorder %s214_s23, 9  ;;  %vm1083_vm3 = vsmask.f32 5376 }
  0x12   : > { %s3784_s26 = scalar_lea.vmem %s4365_s1, %s3025_s22  ;;  %p227_p8 = scmp.lt.s32.totalorder %s3689_s13, 7 }
  0x13   : > { %v3552_v0 = vld [vmem:[%s3784_s26 + $0x78] sm:$0xff]   ;;  %s4413_s14 = smov (!%p215_p6, %s3693_s14), 1  ;;  %s4415_s23 = smov (!%p217_p7, %s214_s23), 9  ;;  %v3554_v2 = vld [vmem:[%s3784_s26 + $0x70] sm:$0xff]   ;;  %v3556_v4 = vld [vmem:[%s3784_s26 + $0x68] sm:$0xff]  }
  0x14   : > { %v3553_v1 = vld [vmem:[%s3784_s26 + $0x38] sm:$0xff]   ;;  %3199 = vmatprep.subr.bf16.mxu0 %v3552_v0  ;;  %s3468_s27 = smul.u32 170, %s4413_s14  ;;  %v3555_v3 = vld [vmem:[%s3784_s26 + $0x30] sm:$0xff]   ;;  %s4417_s13 = smov (!%p227_p8, %s3689_s13), 7  ;;  %v3557_v5 = vld [vmem:[%s3784_s26 + $0x28] sm:$0xff]  }
  0x15   : > { %3227 = vmatprep.subr.bf16.mxu1 %v3553_v1  ;;  %3200 = vmatpush3.bf16.msra.mxu0 %v3552_v0  ;;  %s3467_s28 = smul.u32 17, %s4415_s23  ;;  %v3558_v6 = vld [vmem:[%s3784_s26 + $0x60] sm:$0xff]   ;;  %s2754_s5 = sshll.u32 %s4413_s14, 3  ;;  %v3560_v8 = vld [vmem:[%s3784_s26 + $0x58] sm:$0xff]   ;;  %v3562_v10 = vld [vmem:[%s3784_s26 + $0x50] sm:$0xff]  }
  0x16   : > { %3228 = vmatpush3.bf16.msra.mxu1 %v3553_v1  ;;  %3201 = vmatprep.subr.bf16.mxu0 %v3554_v2  ;;  %s3470_s29 = smul.u32 96, %s4413_s14  ;;  %v3559_v7 = vld [vmem:[%s3784_s26 + $0x20] sm:$0xff]   ;;  %s239_s7 = sadd.s32 %s2754_s5, %s4417_s13  ;;  %v3561_v9 = vld [vmem:[%s3784_s26 + $0x18] sm:$0xff]   ;;  %v3563_v11 = vld [vmem:[%s3784_s26 + $0x10] sm:$0xff]  }
  0x17   : > { %3229 = vmatprep.subr.bf16.mxu1 %v3555_v3  ;;  %s221_s30 = sadd.s32 %s3468_s27, %s3467_s28  ;;  %s3469_s4 = smul.u32 12, %s4417_s13  ;;  %v3564_v20 = vld [vmem:[%s3784_s26 + $0x48] sm:$0xff]   ;;  %v3566_v27 = vld [vmem:[%s3784_s26 + $0x40] sm:$0xff]   ;;  %v3571_v35 = vld [vmem:[%s3784_s26 + $0xb8] sm:$0xff]  }
  0x18   : > { %s2752_s8 = sshll.u32 %s221_s30, 2  ;;  %s2755_s23 = sshll.u32 %s239_s7, 1  ;;  %v3565_v21 = vld [vmem:[%s3784_s26 + $0x8] sm:$0xff]   ;;  %v3567_v28 = vld [vmem:[%s3784_s26] sm:$0xff]   ;;  %v3572_v37 = vld [vmem:[%s3784_s26 + $0xf8] sm:$0xff]  }
  0x19   : > { %3202 = vmatpush3.bf16.msra.mxu0 %v3554_v2  ;;  %s231_s6 = sadd.s32 %s3470_s29, %s3469_s4  ;;  %s3807_s25 = scalar_lea.vmem %s4367_s3, %s2755_s23  ;;  %v3573_v44 = vld [vmem:[%s3784_s26 + $0xb0] sm:$0xff]   ;;  %v3575_v52 = vld [vmem:[%s3784_s26 + $0xa8] sm:$0xff]   ;;  %v3579_v54 = vld [vmem:[%s3784_s26 + $0xa0] sm:$0xff]  }
  0x1a   : > { %3230 = vmatpush3.bf16.msra.mxu1 %v3555_v3  ;;  %3203 = vmatprep.subr.bf16.mxu0 %v3556_v4  ;;  %s2753_s9 = sshll.u32 %s231_s6, 2  ;;  %s3813_s28 = scalar_lea.vmem %s4364_s0, %s2752_s8  ;;  %v3574_v45 = vld [vmem:[%s3784_s26 + $0xf0] sm:$0xff]   ;;  %v3576_v53 = vld [vmem:[%s3784_s26 + $0xe8] sm:$0xff]   ;;  %v3580_v63 = vld [vmem:[%s3784_s26 + $0xe0] sm:$0xff]  }
  0x1b   : > { %3231 = vmatprep.subr.bf16.mxu1 %v3557_v5  ;;  %s3801_s22 = scalar_lea.vmem %s4366_s2, %s2753_s9  ;;  %v243_v12 = vld [vmem:[%s3813_s28] sm:$0xf]  ;;  %v3819_v13 = vld [vmem:[%s3813_s28 + $0x4] sm:$0xf]  ;;  %v3823_v15 = vld [vmem:[%s3813_s28 + $0x8] sm:$0xff]   ;;  %p2996_p9 = scmp.ne.s32.totalorder %s3685_s12, 0 }
  0x1c   : > { %v2774_v14 = vcombine.low %v243_v12, %v3819_v13  ;;  %v3826_v16 = vld [vmem:[%s3813_s28 + $0x10] sm:$0xff]   ;;  %v336_v19 = vshll.u32 %v3823_v15, 16  ;;  %v340_v24 = vshrl.u32 %v3823_v15, 16  ;;  %v3837_v30 = vld [vmem:[%s3813_s28 + $0x18] sm:$0xff]   ;;  %v3841_v34 = vld [vmem:[%s3813_s28 + $0x20] sm:$0xff]  }
  0x1d   : > { %3204 = vmatpush3.bf16.msra.mxu0 %v3556_v4  ;;  %v344_v25 = vshll.u32 %v3826_v16, 16  ;;  %v348_v31 = vshrl.u32 %v3826_v16, 16  ;;  %v352_v36 = vshll.u32 %v3837_v30, 16  ;;  %v356_v40 = vshrl.u32 %v3837_v30, 16  ;;  %v3850_v43 = vld [vmem:[%s3813_s28 + $0x28] sm:$0xff]   ;;  %v3581_v2 = vld [vmem:[%s3784_s26 + $0x98] sm:$0xff]  }
  0x1e   : > { %3232 = vmatpush3.bf16.msra.mxu1 %v3557_v5  ;;  %3205 = vmatprep.subr.bf16.mxu0 %v3558_v6  ;;  %v329_v17 = vshrl.u32 %v2774_v14, 16  ;;  %v331_v18 = vshll.u32 %v2774_v14, 16  ;;  %v338_v23 = vrot.slane %v336_v19, 1  ;;  %v360_v42 = vshll.u32 %v3841_v34, 16  ;;  %v650_v60 = vld [vmem:[%s3813_s28] sm:$0xe] }
  0x1f   : > { %3233 = vmatprep.subr.bf16.mxu1 %v3559_v7  ;;  %3243 = vmatprep.mubr.bf16.mxu1 %v2774_v14  ;;  %v346_v33 = vrot.slane %v344_v25, 1  ;;  %v354_v39 = vrot.slane %v352_v36, 1  ;;  %v364_v46 = vshrl.u32 %v3841_v34, 16  ;;  %v368_v47 = vshll.u32 %v3850_v43, 16  ;;  %v834_v61 = vld [vmem:[%s3813_s28 + $0x4] sm:$0xc] }
  0x20   : > { %v333_v22 = vrot.slane %v331_v18, 1  ;;  %v342_v32 = vor.u32 %v340_v24, %v338_v23  ;;  %v3857_v48 = vld [vmem:[%s3813_s28 + $0x30] ss:$0 sps:$4 sm:$0x11]   ;;  %v362_v51 = vrot.slane %v360_v42, 1  ;;  %v372_v58 = vshrl.u32 %v3850_v43, 16 }
  0x21   : > { %3206 = vmatpush3.bf16.msra.mxu0 %v3558_v6  ;;  %v350_v38 = vor.u32 %v348_v31, %v346_v33  ;;  %v358_v50 = vor.u32 %v356_v40, %v354_v39  ;;  %v370_v56 = vrot.slane %v368_v47, 1  ;;  %v376_v59 = vshll.u32 %v3857_v48, 16  ;;  %v3871_v62 = vld [vmem:[%s3813_s28 + $0x8] sm:$0xf]  ;;  %v3882_v6 = vld [vmem:[%s3813_s28 + $0xc] sm:$0xff]   ;;  %v3904_v24 = vld [vmem:[%s3813_s28 + $0x1c] sm:$0xff]  }
  0x22   : > { %3234 = vmatpush3.bf16.msra.mxu1 %v3559_v7  ;;  %3207 = vmatprep.subr.bf16.mxu0 %v3560_v8  ;;  %v334_v26 = vor.u32 %v333_v22, %v329_v17  ;;  %v347_v41 = vsel %vm327_vm0, %v342_v32, %v346_v33  ;;  %v366_v55 = vor.u32 %v364_v46, %v362_v51  ;;  %v3582_v7 = vld [vmem:[%s3784_s26 + $0xd8] sm:$0xff]   ;;  %v901_v12 = vrot.slane %v3882_v6, 2  ;;  %v3586_v14 = vld [vmem:[%s3784_s26 + $0xd0] sm:$0xff]   ;;  %v3587_v18 = vld [vmem:[%s3784_s26 + $0x88] sm:$0xff]  }
  0x23   : > { %3235 = vmatprep.subr.bf16.mxu1 %v3561_v9  ;;  %v355_v49 = vsel %vm327_vm0, %v350_v38, %v354_v39  ;;  %v363_v57 = vsel %vm327_vm0, %v358_v50, %v362_v51  ;;  %v2814_v1 = vcombine.low %v650_v60, %v3819_v13  ;;  %v374_v3 = vor.u32 %v372_v58, %v370_v56  ;;  %v3585_v13 = vld [vmem:[%s3784_s26 + $0x90] sm:$0xff]   ;;  %v3588_v19 = vld [vmem:[%s3784_s26 + $0xc8] sm:$0xff]   ;;  %v3590_v22 = vld [vmem:[%s3784_s26 + $0xc0] sm:$0xff]  }
  0x24   : > { %v339_v29 = vsel %vm327_vm0, %v334_v26, %v338_v23  ;;  %v371_v0 = vsel %vm327_vm0, %v366_v55, %v370_v56  ;;  %v378_v4 = vrot.slane %v376_v59, 1  ;;  %v3879_v5 = vcombine.low %v834_v61, %v3871_v62  ;;  %v3595_v26 = vld [vmem:[%s3784_s26 + $0x138] sm:$0xff]   ;;  %v3597_v31 = vld [vmem:[%s3784_s26 + $0x130] sm:$0xff]   ;;  %v3915_v33 = vld [vmem:[%s3813_s28 + $0x24] sm:$0xff]  }
  0x25   : > { %3208 = vmatpush3.bf16.msra.mxu0 %v3560_v8  ;;  %3215 = vmatprep.mubr.bf16.mxu0 %v339_v29  ;;  %v674_v8 = vrot.slane %v2814_v1, 1  ;;  %v677_v23 = vrot.slane %v3826_v16, 1  ;;  %v681_v36 = vrot.slane %v3841_v34, 1  ;;  %v3922_v38 = vld [vmem:[%s3813_s28 + $0x2c] sm:$0xff]   ;;  %v907_v40 = vrot.slane %v3915_v33, 2  ;;  %v3606_v1 = vld [vmem:[%s3784_s26 + $0x158] sm:$0xff]  }
  0x26   : > { %3236 = vmatpush3.bf16.msra.mxu1 %v3561_v9  ;;  %3209 = vmatprep.subr.bf16.mxu0 %v3562_v10  ;;  %v675_v9 = vrot.slane %v3823_v15, 1  ;;  %v3599_v39 = vld [vmem:[%s3784_s26 + $0x128] sm:$0xff]   ;;  %v1093_v46 = vshrl.u32 %v3882_v6, 16  ;;  %v1096_v47 = vshll.u32 %v3882_v6, 16  ;;  %v909_v50 = vrot.slane %v3922_v38, 2 }
  0x27   : > { %3237 = vmatprep.subr.bf16.mxu1 %v3563_v11  ;;  %v3600_v42 = vld [vmem:[%s3784_s26 + $0x168] sm:$0xff]   ;;  %v685_v59 = vrot.slane %v3857_v48, 1 }
  0x28   : > { %v678_v29 = vsel %vm673_vm1, %v675_v9, %v677_v23  ;;  %v1098_v58 = vrot.slane %v1096_v47, 3  ;;  %v910_v60 = vsel %vm899_vm2, %v907_v40, %v909_v50 }
  0x29   : > { %3210 = vmatpush3.bf16.msra.mxu0 %v3562_v10  ;;  %v379_v10 = vsel %vm327_vm0, %v374_v3, %v378_v4 }
  0x2a   : > { %3238 = vmatpush3.bf16.msra.mxu1 %v3563_v11  ;;  %3211 = vmatprep.subr.bf16.mxu0 %v3564_v20  ;;  %v900_v11 = vrot.slane %v3879_v5, 2 }
  0x2b   : > { %3239 = vmatprep.subr.bf16.mxu1 %v3565_v21 }
  0x2c   : > { %v902_v17 = vsel %vm899_vm2, %v900_v11, %v901_v12 }
  0x2d   : > { %3212 = vmatpush3.bf16.msra.mxu0 %v3564_v20  ;;  %v3589_v20 = vld [vmem:[%s3784_s26 + $0x80] sm:$0xff]  }
  0x2e   : > { %3240 = vmatpush3.bf16.msra.mxu1 %v3565_v21  ;;  %3213 = vmatprep.subr.bf16.mxu0 %v3566_v27  ;;  %v3899_v21 = vld [vmem:[%s3813_s28 + $0x14] sm:$0xff]  }
  0x2f   : > { %3241 = vmatprep.subr.bf16.mxu1 %v3567_v28  ;;  %v903_v25 = vrot.slane %v3899_v21, 2  ;;  %v1105_v11 = vshll.u32 %v3899_v21, 16 }
  0x31   : > { %3214 = vmatpush3.bf16.msra.mxu0 %v3566_v27  ;;  %v3596_v27 = vld [vmem:[%s3784_s26 + $0x178] sm:$0xff]   ;;  %v904_v32 = vsel %vm899_vm2, %v901_v12, %v903_v25  ;;  %v3611_v12 = vld [vmem:[%s3784_s26 + $0x108] sm:$0xff]  }
  0x32   : > { %3242 = vmatpush3.bf16.msra.mxu1 %v3567_v28  ;;  %3255 = vmatprep.subr.bf16.mxu0 %v3571_v35  ;;  %v679_v28 = vrot.slane %v3837_v30, 1 }
  0x33   : > { %3283 = vmatprep.subr.bf16.mxu1 %v3572_v37 }
  0x34   : > { %3216 = vmatmul.mubr.bf16.vlgmr.msra.gmra.mxu0 %v347_v41  ;;  %v1085_v41 = vshrl.u32 %v3879_v5, 16 }
  0x35   : > { %3244 = vmatmul.mubr.bf16.vlgmr.msra.gmra.mxu1 %v3823_v15  ;;  %3256 = vmatpush3.bf16.msra.mxu0 %v3571_v35  ;;  %v676_v15 = vsel %vm673_vm1, %v674_v8, %v675_v9  ;;  %v3598_v35 = vld [vmem:[%s3784_s26 + $0x170] sm:$0xff]  }
  0x36   : > { %3284 = vmatpush3.bf16.msra.mxu1 %v3572_v37  ;;  %3257 = vmatprep.subr.bf16.mxu0 %v3573_v44  ;;  %v3610_v8 = vld [vmem:[%s3784_s26 + $0x150] sm:$0xff]  }
  0x37   : > { %3285 = vmatprep.subr.bf16.mxu1 %v3574_v45  ;;  %3219 = vmatprep.mubr.bf16.mxu0 %v355_v49  ;;  %v682_v49 = vsel %vm673_vm1, %v679_v28, %v681_v36 }
  0x38   : > { %3247 = vmatprep.mubr.bf16.mxu1 %v3826_v16  ;;  %v905_v16 = vrot.slane %v3904_v24, 2 }
  0x39   : > { %3258 = vmatpush3.bf16.msra.mxu0 %v3573_v44  ;;  %v683_v44 = vrot.slane %v3850_v43, 1 }
  0x3a   : > { %3286 = vmatpush3.bf16.msra.mxu1 %v3574_v45  ;;  %3259 = vmatprep.subr.bf16.mxu0 %v3575_v52  ;;  %v906_v37 = vsel %vm899_vm2, %v903_v25, %v905_v16  ;;  %v3608_v45 = vld [vmem:[%s3813_s28 + $0x34] ss:$0 sps:$4 sm:$0x33]   ;;  %v908_v51 = vsel %vm899_vm2, %v905_v16, %v907_v40 }
  0x3b   : > { %3287 = vmatprep.subr.bf16.mxu1 %v3576_v53  ;;  %v684_v56 = vsel %vm673_vm1, %v681_v36, %v683_v44  ;;  %v686_v48 = vsel %vm673_vm1, %v683_v44, %v685_v59  ;;  %v3618_v36 = vld [vmem:[%s3784_s26 + $0x1b0] sm:$0xff]  }
  0x3c   : > { %3220 = vmatmul.mubr.bf16.gmra.mxu0 %v363_v57  ;;  %v1095_v57 = vrot.slane %v1093_v46, 2  ;;  %v3976_v44 = vld [vmem:[%s3813_s28 + $0x10] sm:$0xf] }
  0x3d   : > { %3260 = vmatpush3.bf16.msra.mxu0 %v3575_v52  ;;  %3248 = vmatmul.mubr.bf16.gmra.mxu1 %v3837_v30  ;;  %v680_v30 = vsel %vm673_vm1, %v677_v23, %v679_v28  ;;  %v3603_v52 = vld [vmem:[%s3784_s26 + $0x120] sm:$0xff]   ;;  %v1123_v23 = vshll.u32 %v3915_v33, 16  ;;  %v1320_v28 = vrot.slane %v3899_v21, 3 }
  0x3e   : > { %3288 = vmatpush3.bf16.msra.mxu1 %v3576_v53  ;;  %3261 = vmatprep.subr.bf16.mxu0 %v3579_v54  ;;  %v1293_v53 = vld [vmem:[%s3813_s28 + $0x4] sm:$0x8]  ;;  %v1099_v3 = vor.u32 %v1098_v58, %v1095_v57 }
  0x3f   : > { %3289 = vmatprep.subr.bf16.mxu1 %v3580_v63  ;;  %3223 = vmatprep.mubr.bf16.mxu0 %v371_v0  ;;  %v2898_v61 = vcombine.low %v1293_v53, %v3871_v62  ;;  %v911_v0 = vrot.slane %v3608_v45, 2  ;;  %v1324_v53 = vrot.slane %v3915_v33, 3 }
  0x40   : > { %3251 = vmatprep.mubr.bf16.mxu1 %v3841_v34  ;;  %v1088_v34 = vshll.u32 %v3879_v5, 16  ;;  %v1318_v5 = vrot.slane %v3882_v6, 3 }
  0x41   : > { %3262 = vmatpush3.bf16.msra.mxu0 %v3579_v54  ;;  %v3604_v54 = vld [vmem:[%s3784_s26 + $0x160] sm:$0xff]   ;;  %v1317_v4 = vrot.slane %v2898_v61, 3  ;;  %v912_v62 = vsel %vm899_vm2, %v909_v50, %v911_v0 }
  0x42   : > { %3290 = vmatpush3.bf16.msra.mxu1 %v3580_v63  ;;  %3263 = vmatprep.subr.bf16.mxu0 %v3581_v2  ;;  %v1090_v55 = vrot.slane %v1088_v34, 3  ;;  %v3605_v63 = vld [vmem:[%s3784_s26 + $0x118] sm:$0xff]   ;;  %v3623_v0 = vld [vmem:[%s3784_s26 + $0x1e0] sm:$0xff]  }
  0x43   : > { %3291 = vmatprep.subr.bf16.mxu1 %v3582_v7  ;;  %v1319_v6 = vsel %vm1316_vm4, %v1317_v4, %v1318_v5 }
  0x44   : > { %3224 = vmatmul.mubr.bf16.gmra.mxu0 %v379_v10  ;;  %v1102_v10 = vshrl.u32 %v3899_v21, 16  ;;  %v1132_v21 = vshll.u32 %v3922_v38, 16 }
  0x45   : > { %3264 = vmatpush3.bf16.msra.mxu0 %v3581_v2  ;;  %3252 = vmatmul.mubr.bf16.gmra.mxu1 %v3850_v43  ;;  %v1087_v43 = vrot.slane %v1085_v41, 2  ;;  %v1685_v41 = vld [vmem:[%s3813_s28 + $0xc] sm:$0xf] }
  0x46   : > { %3292 = vmatpush3.bf16.msra.mxu1 %v3582_v7  ;;  %3265 = vmatprep.subr.bf16.mxu0 %v3585_v13  ;;  %v3609_v7 = vld [vmem:[%s3784_s26 + $0x110] sm:$0xff]   ;;  %v1134_v47 = vrot.slane %v1132_v21, 3 }
  0x47   : > { %3293 = vmatprep.subr.bf16.mxu1 %v3586_v14  ;;  %3271 = vmatprep.mubr.bf16.mxu0 %v676_v15  ;;  %v1091_v2 = vor.u32 %v1090_v55, %v1087_v43  ;;  %v1107_v15 = vrot.slane %v1105_v11, 3  ;;  %v3620_v43 = vld [vmem:[%s3784_s26 + $0x1a8] sm:$0xff]   ;;  %v1326_v55 = vrot.slane %v3922_v38, 3 }
  0x48   : > { %3299 = vmatprep.mubr.bf16.mxu1 %v902_v17  ;;  %v1111_v17 = vshrl.u32 %v3904_v24, 16 }
  0x49   : > { %3266 = vmatpush3.bf16.msra.mxu0 %v3585_v13  ;;  %v1100_v9 = vsel %vm1083_vm3, %v1091_v2, %v1099_v3  ;;  %v3612_v13 = vld [vmem:[%s3784_s26 + $0x148] sm:$0xff]  }
  0x4a   : > { %3294 = vmatpush3.bf16.msra.mxu1 %v3586_v14  ;;  %3267 = vmatprep.subr.bf16.mxu0 %v3587_v18  ;;  %v1104_v14 = vrot.slane %v1102_v10, 2  ;;  %v1113_v25 = vrot.slane %v1111_v17, 2  ;;  %v4009_v17 = vld [vmem:[%s3813_s28 + $0x1c] sm:$0xff]  }
  0x4b   : > { %3295 = vmatprep.subr.bf16.mxu1 %v3588_v19 }
  0x4d   : > { %3268 = vmatpush3.bf16.msra.mxu0 %v3587_v18  ;;  %v1114_v18 = vshll.u32 %v3904_v24, 16 }
  0x4e   : > { %3296 = vmatpush3.bf16.msra.mxu1 %v3588_v19  ;;  %3269 = vmatprep.subr.bf16.mxu0 %v3589_v20  ;;  %v3613_v19 = vld [vmem:[%s3784_s26 + $0x100] sm:$0xff]  }
  0x4f   : > { %3297 = vmatprep.subr.bf16.mxu1 %v3590_v22 }
  0x51   : > { %3270 = vmatpush3.bf16.msra.mxu0 %v3589_v20  ;;  %v1120_v20 = vshrl.u32 %v3915_v33, 16 }
  0x52   : > { %3298 = vmatpush3.bf16.msra.mxu1 %v3590_v22  ;;  %3311 = vmatprep.subr.bf16.mxu0 %v3595_v26  ;;  %v3614_v22 = vld [vmem:[%s3784_s26 + $0x140] sm:$0xff]  }
  0x53   : > { %3339 = vmatprep.subr.bf16.mxu1 %v3596_v27  ;;  %v1122_v16 = vrot.slane %v1120_v20, 2  ;;  %v3631_v20 = vld [vmem:[%s3784_s26 + $0x180] sm:$0xff]  }
  0x54   : > { %3272 = vmatmul.mubr.bf16.vlgmr.msra.gmra.mxu0 %v678_v29  ;;  %v3616_v29 = vld [vmem:[%s3784_s26 + $0x1b8] sm:$0xff]  }
  0x55   : > { %3300 = vmatmul.mubr.bf16.vlgmr.msra.gmra.mxu1 %v904_v32  ;;  %3312 = vmatpush3.bf16.msra.mxu0 %v3595_v26  ;;  %v1116_v26 = vrot.slane %v1114_v18, 3  ;;  %v1125_v32 = vrot.slane %v1123_v23, 3  ;;  %v3630_v18 = vld [vmem:[%s3784_s26 + $0x1c8] sm:$0xff]   ;;  %v1766_v23 = vshll.u32 %v4009_v17, 16 }
  0x56   : > { %3340 = vmatpush3.bf16.msra.mxu1 %v3596_v27  ;;  %3313 = vmatprep.subr.bf16.mxu0 %v3597_v31  ;;  %v1108_v27 = vor.u32 %v1107_v15, %v1104_v14  ;;  %v3629_v15 = vld [vmem:[%s3784_s26 + $0x188] sm:$0xff]  }
  0x57   : > { %3341 = vmatprep.subr.bf16.mxu1 %v3598_v35  ;;  %3275 = vmatprep.mubr.bf16.mxu0 %v680_v30  ;;  %v3967_v30 = vld [vmem:[%s3813_s28 + $0x34] ss:$0 sps:$4 sm:$0x77]   ;;  %v1126_v45 = vor.u32 %v1125_v32, %v1122_v16  ;;  %v4023_v16 = vld [vmem:[%s3813_s28 + $0x2c] sm:$0xff]  }
  0x58   : > { %3303 = vmatprep.mubr.bf16.mxu1 %v906_v37  ;;  %v1117_v37 = vor.u32 %v1116_v26, %v1113_v25  ;;  %v1109_v40 = vsel %vm1083_vm3, %v1099_v3, %v1108_v27  ;;  %v1138_v50 = vshrl.u32 %v3967_v30, 16  ;;  %v3632_v25 = vld [vmem:[%s3784_s26 + $0x1c0] sm:$0xff]   ;;  %v1770_v26 = vshrl.u32 %v4009_v17, 16  ;;  %v3636_v32 = vld [vmem:[%s3813_s28 + $0x14] sm:$0xff]  }
  0x59   : > { %3314 = vmatpush3.bf16.msra.mxu0 %v3597_v31  ;;  %v3617_v31 = vld [vmem:[%s3784_s26 + $0x1f8] sm:$0xff]  }
  0x5a   : > { %3342 = vmatpush3.bf16.msra.mxu1 %v3598_v35  ;;  %3315 = vmatprep.subr.bf16.mxu0 %v3599_v39  ;;  %v1322_v35 = vrot.slane %v3904_v24, 3  ;;  %v3619_v24 = vld [vmem:[%s3784_s26 + $0x1f0] sm:$0xff]   ;;  %v1118_v34 = vsel %vm1083_vm3, %v1108_v27, %v1117_v37  ;;  %v1127_v57 = vsel %vm1083_vm3, %v1117_v37, %v1126_v45  ;;  %v1140_v58 = vrot.slane %v1138_v50, 2  ;;  %v3641_v50 = vld [vmem:[%s3813_s28 + $0x24] sm:$0xff]  }
  0x5b   : > { %3343 = vmatprep.subr.bf16.mxu1 %v3600_v42 }
  0x5c   : > { %3276 = vmatmul.mubr.bf16.gmra.mxu0 %v682_v49  ;;  %v1323_v49 = vsel %vm1316_vm4, %v1320_v28, %v1322_v35  ;;  %v1325_v33 = vsel %vm1316_vm4, %v1322_v35, %v1324_v53 }
  0x5d   : > { %3316 = vmatpush3.bf16.msra.mxu0 %v3599_v39  ;;  %3304 = vmatmul.mubr.bf16.gmra.mxu1 %v908_v51  ;;  %v1129_v39 = vshrl.u32 %v3922_v38, 16  ;;  %v1141_v51 = vshll.u32 %v3967_v30, 16 }
  0x5e   : > { %3344 = vmatpush3.bf16.msra.mxu1 %v3600_v42  ;;  %3317 = vmatprep.subr.bf16.mxu0 %v3603_v52  ;;  %v1321_v42 = vsel %vm1316_vm4, %v1318_v5, %v1320_v28  ;;  %v3625_v5 = vld [vmem:[%s3784_s26 + $0x198] sm:$0xff]  }
  0x5f   : > { %3345 = vmatprep.subr.bf16.mxu1 %v3604_v54  ;;  %3279 = vmatprep.mubr.bf16.mxu0 %v684_v56  ;;  %v1131_v46 = vrot.slane %v1129_v39, 2  ;;  %v1143_v59 = vrot.slane %v1141_v51, 3  ;;  %v3639_v39 = vld [vmem:[%s3784_s26 + $0x230] sm:$0xff]  }
  0x60   : > { %3307 = vmatprep.mubr.bf16.mxu1 %v910_v60  ;;  %v3990_v60 = vld [vmem:[%s3813_s28 + $0x14] sm:$0xff]  }
  0x61   : > { %3318 = vmatpush3.bf16.msra.mxu0 %v3603_v52  ;;  %v2955_v52 = vcombine.low %v1685_v41, %v3976_v44  ;;  %v1135_v56 = vor.u32 %v1134_v47, %v1131_v46  ;;  %v1144_v2 = vor.u32 %v1143_v59, %v1140_v58  ;;  %v1758_v4 = vshll.u32 %v3990_v60, 16  ;;  %v3640_v41 = vld [vmem:[%s3813_s28 + $0x1c] sm:$0xff]  }
  0x62   : > { %3346 = vmatpush3.bf16.msra.mxu1 %v3604_v54  ;;  %3319 = vmatprep.subr.bf16.mxu0 %v3605_v63  ;;  %v3621_v54 = vld [vmem:[%s3784_s26 + $0x1e8] sm:$0xff]  }
  0x63   : > { %3347 = vmatprep.subr.bf16.mxu1 %v3606_v1  ;;  %v1753_v61 = vshll.u32 %v2955_v52, 16  ;;  %v1136_v38 = vsel %vm1083_vm3, %v1126_v45, %v1135_v56  ;;  %v1751_v3 = vshrl.u32 %v2955_v52, 16  ;;  %v1760_v10 = vrot.slane %v1758_v4, 1  ;;  %v3642_v45 = vld [vmem:[%s3784_s26 + $0x228] sm:$0xff]  }
  0x64   : > { %3280 = vmatmul.mubr.bf16.gmra.mxu0 %v686_v48 }
  0x65   : > { %3320 = vmatpush3.bf16.msra.mxu0 %v3605_v63  ;;  %3308 = vmatmul.mubr.bf16.gmra.mxu1 %v912_v62  ;;  %v3622_v63 = vld [vmem:[%s3784_s26 + $0x1a0] sm:$0xff]   ;;  %v1755_v48 = vrot.slane %v1753_v61, 1  ;;  %v1328_v62 = vrot.slane %v3967_v30, 3  ;;  %v3648_v61 = vld [vmem:[%s3784_s26 + $0x218] sm:$0xff]  }
  0x66   : > { %3348 = vmatpush3.bf16.msra.mxu1 %v3606_v1  ;;  %3321 = vmatprep.subr.bf16.mxu0 %v3609_v7  ;;  %v1327_v1 = vsel %vm1316_vm4, %v1324_v53, %v1326_v55 }
  0x67   : > { %3349 = vmatprep.subr.bf16.mxu1 %v3610_v8  ;;  %3327 = vmatprep.mubr.bf16.mxu0 %v1100_v9  ;;  %v1756_v9 = vor.u32 %v1755_v48, %v1751_v3  ;;  %v1329_v11 = vsel %vm1316_vm4, %v1326_v55, %v1328_v62  ;;  %v3651_v48 = vld [vmem:[%s3784_s26 + $0x210] sm:$0xff]   ;;  %v3653_v62 = vld [vmem:[%s3784_s26 + $0x200] sm:$0xff]  }
  0x68   : > { %3355 = vmatprep.mubr.bf16.mxu1 %v1319_v6  ;;  %v3627_v6 = vld [vmem:[%s3784_s26 + $0x190] sm:$0xff]  }
  0x69   : > { %3322 = vmatpush3.bf16.msra.mxu0 %v3609_v7  ;;  %v3626_v7 = vld [vmem:[%s3784_s26 + $0x1d8] sm:$0xff]   ;;  %v1761_v14 = vsel %vm327_vm0, %v1756_v9, %v1760_v10 }
  0x6a   : > { %3350 = vmatpush3.bf16.msra.mxu1 %v3610_v8  ;;  %3323 = vmatprep.subr.bf16.mxu0 %v3611_v12  ;;  %v1145_v8 = vsel %vm1083_vm3, %v1135_v56, %v1144_v2 }
  0x6b   : > { %3351 = vmatprep.subr.bf16.mxu1 %v3612_v13 }
  0x6d   : > { %3324 = vmatpush3.bf16.msra.mxu0 %v3611_v12  ;;  %v3628_v12 = vld [vmem:[%s3784_s26 + $0x1d0] sm:$0xff]  }
  0x6e   : > { %3352 = vmatpush3.bf16.msra.mxu1 %v3612_v13  ;;  %3325 = vmatprep.subr.bf16.mxu0 %v3613_v19  ;;  %v3633_v13 = vld [vmem:[%s3813_s28 + $0xc] sm:$0xff]  }
  0x6f   : > { %3353 = vmatprep.subr.bf16.mxu1 %v3614_v22 }
  0x71   : > { %3326 = vmatpush3.bf16.msra.mxu0 %v3613_v19  ;;  %v4013_v19 = vld [vmem:[%s3813_s28 + $0x24] sm:$0xff]  }
  0x72   : > { %3354 = vmatpush3.bf16.msra.mxu1 %v3614_v22  ;;  %3367 = vmatprep.subr.bf16.mxu0 %v3616_v29  ;;  %v1762_v22 = vshrl.u32 %v3990_v60, 16  ;;  %v1774_v27 = vshll.u32 %v4013_v19, 16  ;;  %v1778_v21 = vshrl.u32 %v4013_v19, 16  ;;  %v1977_v2 = vrot.slane %v4013_v19, 1 }
  0x73   : > { %3395 = vmatprep.subr.bf16.mxu1 %v3617_v31 }
  0x74   : > { %3328 = vmatmul.mubr.bf16.vlgmr.msra.gmra.mxu0 %v1109_v40  ;;  %v1764_v28 = vor.u32 %v1762_v22, %v1760_v10  ;;  %v1776_v30 = vrot.slane %v1774_v27, 1  ;;  %v1782_v40 = vshll.u32 %v4023_v16, 16 }
  0x75   : > { %3356 = vmatmul.mubr.bf16.vlgmr.msra.gmra.mxu1 %v1321_v42  ;;  %3368 = vmatpush3.bf16.msra.mxu0 %v3616_v29  ;;  %v1768_v29 = vrot.slane %v1766_v23, 1 }
  0x76   : > { %3396 = vmatpush3.bf16.msra.mxu1 %v3617_v31  ;;  %3369 = vmatprep.subr.bf16.mxu0 %v3618_v36  ;;  %v3638_v31 = vld [vmem:[%s3784_s26 + $0x238] sm:$0xff]   ;;  %v1780_v46 = vor.u32 %v1778_v21, %v1776_v30  ;;  %v1784_v47 = vrot.slane %v1782_v40, 1 }
  0x77   : > { %3397 = vmatprep.subr.bf16.mxu1 %v3619_v24  ;;  %3331 = vmatprep.mubr.bf16.mxu0 %v1118_v34  ;;  %v1772_v35 = vor.u32 %v1770_v26, %v1768_v29  ;;  %v1769_v37 = vsel %vm327_vm0, %v1764_v28, %v1768_v29 }
  0x78   : > { %3359 = vmatprep.mubr.bf16.mxu1 %v1323_v49  ;;  %v4039_v49 = vld [vmem:[%s3813_s28 + $0x3c] ss:$0 sps:$4 sm:$0x11]   ;;  %v1785_v53 = vsel %vm327_vm0, %v1780_v46, %v1784_v47 }
  0x79   : > { %3370 = vmatpush3.bf16.msra.mxu0 %v3618_v36  ;;  %v4027_v36 = vld [vmem:[%s3813_s28 + $0x34] sm:$0xff]   ;;  %v1777_v42 = vsel %vm327_vm0, %v1772_v35, %v1776_v30  ;;  %v1798_v56 = vshll.u32 %v4039_v49, 16 }
  0x7a   : > { %3398 = vmatpush3.bf16.msra.mxu1 %v3619_v24  ;;  %3371 = vmatprep.subr.bf16.mxu0 %v3620_v43  ;;  %v1786_v24 = vshrl.u32 %v4023_v16, 16  ;;  %v1790_v34 = vshll.u32 %v4027_v36, 16  ;;  %v1794_v55 = vshrl.u32 %v4027_v36, 16 }
  0x7b   : > { %3399 = vmatprep.subr.bf16.mxu1 %v3621_v54 }
  0x7c   : > { %3332 = vmatmul.mubr.bf16.gmra.mxu0 %v1127_v57  ;;  %v1788_v51 = vor.u32 %v1786_v24, %v1784_v47  ;;  %v1792_v52 = vrot.slane %v1790_v34, 1  ;;  %v3646_v57 = vld [vmem:[%s3813_s28 + $0x2c] sm:$0xff]  }
  0x7d   : > { %3372 = vmatpush3.bf16.msra.mxu0 %v3620_v43  ;;  %3360 = vmatmul.mubr.bf16.gmra.mxu1 %v1325_v33  ;;  %v1949_v43 = vld [vmem:[%s3813_s28 + $0xc] sm:$0xe] }
  0x7e   : > { %3400 = vmatpush3.bf16.msra.mxu1 %v3621_v54  ;;  %3373 = vmatprep.subr.bf16.mxu0 %v3622_v63  ;;  %v3645_v54 = vld [vmem:[%s3784_s26 + $0x220] sm:$0xff]   ;;  %v2987_v58 = vcombine.low %v1949_v43, %v3976_v44  ;;  %v1793_v59 = vsel %vm327_vm0, %v1788_v51, %v1792_v52  ;;  %v1796_v33 = vor.u32 %v1794_v55, %v1792_v52  ;;  %v1975_v44 = vrot.slane %v4009_v17, 1 }
  0x7f   : > { %3401 = vmatprep.subr.bf16.mxu1 %v3623_v0  ;;  %3335 = vmatprep.mubr.bf16.mxu0 %v1136_v38 }
  0x80   : > { %3363 = vmatprep.mubr.bf16.mxu1 %v1327_v1  ;;  %v1972_v38 = vrot.slane %v2987_v58, 1  ;;  %v1973_v1 = vrot.slane %v3990_v60, 1  ;;  %v1978_v60 = vsel %vm673_vm1, %v1975_v44, %v1977_v2 }
  0x81   : > { %3374 = vmatpush3.bf16.msra.mxu0 %v3622_v63  ;;  %v1800_v63 = vrot.slane %v1798_v56, 1 }
  0x82   : > { %3402 = vmatpush3.bf16.msra.mxu1 %v3623_v0  ;;  %3375 = vmatprep.subr.bf16.mxu0 %v3625_v5  ;;  %v3647_v0 = vld [vmem:[%s3813_s28 + $0x34] sm:$0xff]   ;;  %v1974_v4 = vsel %vm673_vm1, %v1972_v38, %v1973_v1  ;;  %v1976_v9 = vsel %vm673_vm1, %v1973_v1, %v1975_v44 }
  0x83   : > { %3403 = vmatprep.subr.bf16.mxu1 %v3626_v7  ;;  %v1801_v3 = vsel %vm327_vm0, %v1796_v33, %v1800_v63 }
  0x84   : > { %3336 = vmatmul.mubr.bf16.gmra.mxu0 %v1145_v8  ;;  %v1981_v8 = vrot.slane %v4027_v36, 1 }
  0x85   : > { %3376 = vmatpush3.bf16.msra.mxu0 %v3625_v5  ;;  %3364 = vmatmul.mubr.bf16.gmra.mxu1 %v1329_v11  ;;  %v3652_v5 = vld [vmem:[%s3784_s26 + $0x208] sm:$0xff]  }
  0x86   : > { %3404 = vmatpush3.bf16.msra.mxu1 %v3626_v7  ;;  %3377 = vmatprep.subr.bf16.mxu0 %v3627_v6  ;;  %v1979_v7 = vrot.slane %v4023_v16, 1 }
  0x87   : > { %3405 = vmatprep.subr.bf16.mxu1 %v3628_v12  ;;  %3383 = vmatprep.mubr.bf16.mxu0 %v3633_v13 }
  0x88   : > { %3411 = vmatprep.mubr.bf16.mxu1 %v1761_v14  ;;  %v1980_v10 = vsel %vm673_vm1, %v1977_v2, %v1979_v7  ;;  %v1982_v11 = vsel %vm673_vm1, %v1979_v7, %v1981_v8 }
  0x89   : > { %3378 = vmatpush3.bf16.msra.mxu0 %v3627_v6  ;;  %v1983_v6 = vrot.slane %v4039_v49, 1 }
  0x8a   : > { %3406 = vmatpush3.bf16.msra.mxu1 %v3628_v12  ;;  %3379 = vmatprep.subr.bf16.mxu0 %v3629_v15 }
  0x8b   : > { %3407 = vmatprep.subr.bf16.mxu1 %v3630_v18  ;;  %v1984_v12 = vsel %vm673_vm1, %v1981_v8, %v1983_v6 }
  0x8d   : > { %3380 = vmatpush3.bf16.msra.mxu0 %v3629_v15 }
  0x8e   : > { %3408 = vmatpush3.bf16.msra.mxu1 %v3630_v18  ;;  %3381 = vmatprep.subr.bf16.mxu0 %v3631_v20 }
  0x8f   : > { %3409 = vmatprep.subr.bf16.mxu1 %v3632_v25 }
  0x91   : > { %3382 = vmatpush3.bf16.msra.mxu0 %v3631_v20 }
  0x92   : > { %3410 = vmatpush3.bf16.msra.mxu1 %v3632_v25  ;;  %3423 = vmatprep.subr.bf16.mxu0 %v3638_v31 }
  0x93   : > { %3451 = vmatprep.subr.bf16.mxu1 %v3638_v31 }
  0x94   : > { %3384 = vmatmul.mubr.bf16.vlgmr.msra.gmra.mxu0 %v3636_v32 }
  0x95   : > { %3412 = vmatmul.mubr.bf16.vlgmr.msra.gmra.mxu1 %v1769_v37  ;;  %3424 = vmatpush3.bf16.msra.mxu0 %v3638_v31 }
  0x96   : > { %3459 = vmatpush3.bf16.msra.mxu1 %v3638_v31  ;;  %3425 = vmatprep.subr.bf16.mxu0 %v3639_v39 }
  0x97   : > { %3452 = vmatprep.subr.bf16.mxu1 %v3639_v39  ;;  %3387 = vmatprep.mubr.bf16.mxu0 %v3640_v41 }
  0x98   : > { %3415 = vmatprep.mubr.bf16.mxu1 %v1777_v42 }
  0x99   : > { %3426 = vmatpush3.bf16.msra.mxu0 %v3639_v39 }
  0x9a   : > { %3460 = vmatpush3.bf16.msra.mxu1 %v3639_v39  ;;  %3427 = vmatprep.subr.bf16.mxu0 %v3642_v45 }
  0x9b   : > { %3453 = vmatprep.subr.bf16.mxu1 %v3642_v45 }
  0x9c   : > { %3388 = vmatmul.mubr.bf16.gmra.mxu0 %v3641_v50 }
  0x9d   : > { %3428 = vmatpush3.bf16.msra.mxu0 %v3642_v45  ;;  %3416 = vmatmul.mubr.bf16.gmra.mxu1 %v1785_v53 }
  0x9e   : > { %3461 = vmatpush3.bf16.msra.mxu1 %v3642_v45  ;;  %3429 = vmatprep.subr.bf16.mxu0 %v3645_v54 }
  0x9f   : > { %3454 = vmatprep.subr.bf16.mxu1 %v3645_v54  ;;  %3391 = vmatprep.mubr.bf16.mxu0 %v3646_v57 }
  0xa0   : > { %3419 = vmatprep.mubr.bf16.mxu1 %v1793_v59 }
  0xa1   : > { %3430 = vmatpush3.bf16.msra.mxu0 %v3645_v54 }
  0xa2   : > { %3462 = vmatpush3.bf16.msra.mxu1 %v3645_v54  ;;  %3431 = vmatprep.subr.bf16.mxu0 %v3648_v61 }
  0xa3   : > { %3455 = vmatprep.subr.bf16.mxu1 %v3648_v61 }
  0xa4   : > { %3392 = vmatmul.mubr.bf16.gmra.mxu0 %v3647_v0 }
  0xa5   : > { %3432 = vmatpush3.bf16.msra.mxu0 %v3648_v61  ;;  %3420 = vmatmul.mubr.bf16.gmra.mxu1 %v1801_v3 }
  0xa6   : > { %3463 = vmatpush3.bf16.msra.mxu1 %v3648_v61  ;;  %3433 = vmatprep.subr.bf16.mxu0 %v3651_v48 }
  0xa7   : > { %3456 = vmatprep.subr.bf16.mxu1 %v3651_v48  ;;  %3439 = vmatprep.mubr.bf16.mxu0 %v1974_v4 }
  0xa8   : > { %3443 = vmatprep.mubr.bf16.mxu1 %v1978_v60 }
  0xa9   : > { %3434 = vmatpush3.bf16.msra.mxu0 %v3651_v48 }
  0xaa   : > { %3464 = vmatpush3.bf16.msra.mxu1 %v3651_v48  ;;  %3435 = vmatprep.subr.bf16.mxu0 %v3652_v5 }
  0xab   : > { %3457 = vmatprep.subr.bf16.mxu1 %v3652_v5 }
  0xad   : > { %3436 = vmatpush3.bf16.msra.mxu0 %v3652_v5 }
  0xae   : > { %3465 = vmatpush3.bf16.msra.mxu1 %v3652_v5  ;;  %3437 = vmatprep.subr.bf16.mxu0 %v3653_v62 }
  0xaf   : > { %3458 = vmatprep.subr.bf16.mxu1 %v3653_v62 }
  0xb1   : > { %3438 = vmatpush3.bf16.msra.mxu0 %v3653_v62 }
  0xb2   : > { %3466 = vmatpush3.bf16.msra.mxu1 %v3653_v62 }
  0xb4   : > { %3440 = vmatmul.mubr.bf16.vlgmr.msra.gmra.mxu0 %v1976_v9 }
  0xb5   : > { %3444 = vmatmul.mubr.bf16.vlgmr.msra.gmra.mxu1 %v1980_v10 }
  0xb6   : > { %3447 = vmatprep.mubr.bf16.mxu1 %v1982_v11 }
  0xbd   : > { %3448 = vmatmul.mubr.bf16.gmra.mxu1 %v1984_v12 }
  0xf4   : > { %v3217_v13 = vpop.f32.mrf.mxu0 }
  0xf5   : > { %v3245_v14 = vpop.f32.mrf.mxu1 }
  0xf6   : > { %v612_v15 = vadd.f32 %v3245_v14, %v3217_v13  ;;  %v468_v17 = vpop.f32.mrf.mxu0 }
  0xf7   : > { %v603_v18 = vpop.f32.mrf.mxu1 }
  0xf8   : > { %v604_v19 = vadd.f32 %v603_v18, %v468_v17  ;;  %v3218_v20 = vpop.f32.mrf.mxu0 }
  0xf9   : > { %v3246_v22 = vpop.f32.mrf.mxu1 }
  0xfa   : > { %v615_v23 = vadd.f32 %v3246_v22, %v3218_v20  ;;  %v471_v25 = vpop.f32.mrf.mxu0 }
  0xfb   : > { %v606_v26 = vpop.f32.mrf.mxu1 }
  0xfc   : > { %v607_v27 = vadd.f32 %v606_v26, %v471_v25  ;;  %v3221_v28 = vpop.f32.mrf.mxu0 }
  0xfd   : > { %v3249_v29 = vpop.f32.mrf.mxu1 }
  0xfe   : > { %v628_v31 = vadd.f32 %v3249_v29, %v3221_v28  ;;  %v484_v16 = vpop.f32.mrf.mxu0 }
  0xff   : > { %v619_v32 = vpop.f32.mrf.mxu1 }
 0x100   : > { %v620_v35 = vadd.f32 %v619_v32, %v484_v16  ;;  %v3222_v30 = vpop.f32.mrf.mxu0 }
 0x101   : > { %v3250_v36 = vpop.f32.mrf.mxu1 }
 0x102   : > { %v631_v37 = vadd.f32 %v3250_v36, %v3222_v30  ;;  %v487_v39 = vpop.f32.mrf.mxu0 }
 0x103   : > { %v622_v21 = vpop.f32.mrf.mxu1 }
 0x104   : > { %v4068_v40 = vadd.f32 %v622_v21, %v487_v39  ;;  %v3225_v41 = vpop.f32.mrf.mxu0 }
 0x105   : > { %v3253_v42 = vpop.f32.mrf.mxu1 }
 0x106   : > { %v4070_v24 = vadd.f32 %v3253_v42, %v3225_v41  ;;  %v500_v34 = vpop.f32.mrf.mxu0 }
 0x107   : > { %v635_v45 = vpop.f32.mrf.mxu1 }
 0x108   : > { %v4072_v46 = vadd.f32 %v635_v45, %v500_v34  ;;  %v3226_v47 = vpop.f32.mrf.mxu0 }
 0x109   : > { %v3254_v49 = vpop.f32.mrf.mxu1 }
 0x10a   : > { %v4074_v50 = vadd.f32 %v3254_v49, %v3226_v47  ;;  %v503_v51 = vpop.f32.mrf.mxu0 }
 0x10b   : > { %v638_v52 = vpop.f32.mrf.mxu1 }
 0x10c   : > { %v4076_v43 = vadd.f32 %v638_v52, %v503_v51 }
 0x114   : > { %v3273_v53 = vpop.f32.mrf.mxu0 }
 0x115   : > { %v824_v54 = vadd.f32 %v3273_v53, %v612_v15  ;;  %v3301_v55 = vpop.f32.mrf.mxu1 }
 0x116   : > { %v775_v56 = vpop.f32.mrf.mxu0 }
 0x117   : > { %v4078_v57 = vadd.f32 %v3301_v55, %v824_v54  ;;  %v822_v58 = vadd.f32 %v775_v56, %v604_v19  ;;  %v1001_v59 = vpop.f32.mrf.mxu1 }
 0x118   : > { %v3274_v61 = vpop.f32.mrf.mxu0 }
 0x119   : > { %v4080_v33 = vadd.f32 %v1001_v59, %v822_v58  ;;  %v825_v63 = vadd.f32 %v3274_v61, %v615_v23  ;;  %v3302_v0 = vpop.f32.mrf.mxu1 }
 0x11a   : > { %v778_v38 = vpop.f32.mrf.mxu0 }
 0x11b   : > { %v4082_v1 = vadd.f32 %v3302_v0, %v825_v63  ;;  %v823_v44 = vadd.f32 %v778_v38, %v607_v27  ;;  %v1004_v2 = vpop.f32.mrf.mxu1 }
 0x11c   : > { %v3277_v3 = vpop.f32.mrf.mxu0 }
 0x11d   : > { %v4084_v48 = vadd.f32 %v1004_v2, %v823_v44  ;;  %v828_v4 = vadd.f32 %v3277_v3, %v628_v31  ;;  %v3305_v60 = vpop.f32.mrf.mxu1 }
 0x11e   : > { %v791_v5 = vpop.f32.mrf.mxu0 }
 0x11f   : > { %v826_v62 = vadd.f32 %v791_v5, %v620_v35  ;;  %v1054_v7 = vadd.f32 %v3305_v60, %v828_v4  ;;  %v1017_v8 = vpop.f32.mrf.mxu1 }
 0x120   : > { %v3278_v9 = vpop.f32.mrf.mxu0 }
 0x121   : > { %v829_v10 = vadd.f32 %v3278_v9, %v631_v37  ;;  %v1052_v11 = vadd.f32 %v1017_v8, %v826_v62  ;;  %v3306_v6 = vpop.f32.mrf.mxu1 }
 0x122   : > { %v794_v12 = vpop.f32.mrf.mxu0 }
 0x123   : > { %v4086_v13 = vadd.f32 %v3306_v6, %v829_v10  ;;  %v1020_v14 = vpop.f32.mrf.mxu1 }
 0x124   : > { %v3281_v15 = vpop.f32.mrf.mxu0 }
 0x125   : > { %v4088_v17 = vpop.f32.mrf.mxu1 }
 0x126   : > { %v807_v18 = vpop.f32.mrf.mxu0 }
 0x127   : > { %v4090_v19 = vpop.f32.mrf.mxu1 }
 0x128   : > { %v3282_v20 = vpop.f32.mrf.mxu0 }
 0x129   : > { %v4092_v22 = vpop.f32.mrf.mxu1 }
 0x12a   : > { %v4094_v23 = vpop.f32.mrf.mxu0 }
 0x12b   : > { %v4096_v25 = vpop.f32.mrf.mxu1 }
 0x134   : > { %v3329_v26 = vpop.f32.mrf.mxu0 }
 0x135   : > { %v3357_v27 = vpop.f32.mrf.mxu1 }
 0x136   : > { %v1234_v28 = vpop.f32.mrf.mxu0 }
 0x137   : > { %v1418_v29 = vpop.f32.mrf.mxu1 }
 0x138   : > { %v3330_v31 = vpop.f32.mrf.mxu0 }
 0x139   : > { %v4098_v16 = vpop.f32.mrf.mxu1 }
 0x13a   : > { %v1237_v32 = vpop.f32.mrf.mxu0 }
 0x13b   : > { %v4100_v35 = vpop.f32.mrf.mxu1 }
 0x13c   : > { %v3333_v30 = vpop.f32.mrf.mxu0 }
 0x13d   : > { %v3361_v36 = vpop.f32.mrf.mxu1 }
 0x13e   : > { %v1250_v37 = vpop.f32.mrf.mxu0 }
 0x13f   : > { %v1434_v39 = vpop.f32.mrf.mxu1 }
 0x140   : > { %v3334_v21 = vpop.f32.mrf.mxu0 }
 0x141   : > { %v3362_v41 = vpop.f32.mrf.mxu1 }
 0x142   : > { %v1253_v42 = vpop.f32.mrf.mxu0 }
 0x143   : > { %v4102_v34 = vpop.f32.mrf.mxu1 }
 0x144   : > { %4368 = vst [vmem:[#allocation3_spill] sm:$0xff] %v4102_v34  ;;  %v3337_v45 = vpop.f32.mrf.mxu0  ;;  %v1284_v34 = vadd.f32 %v3330_v31, %v4082_v1 }
 0x145   : > { %v4104_v47 = vpop.f32.mrf.mxu1 }
 0x146   : > { %4369 = vst [vmem:[#allocation4_spill] sm:$0xff] %v4104_v47  ;;  %v1266_v49 = vpop.f32.mrf.mxu0  ;;  %v830_v47 = vadd.f32 %v807_v18, %v4072_v46  ;;  %v831_v46 = vadd.f32 %v4094_v23, %v4076_v43 }
 0x147   : > { %v4106_v51 = vpop.f32.mrf.mxu1 }
 0x148   : > { %4370 = vst [vmem:[#allocation5_spill] sm:$0xff] %v4106_v51  ;;  %v4108_v52 = vpop.f32.mrf.mxu0  ;;  %v1281_v51 = vadd.f32 %v1234_v28, %v4080_v33  ;;  %v1282_v33 = vadd.f32 %v1237_v32, %v4084_v48  ;;  %v1057_v23 = vadd.f32 %v4096_v25, %v831_v46 }
 0x149   : > { %4371 = vst [vmem:[#allocation6_spill] sm:$0xff] %v4108_v52  ;;  %v4110_v53 = vpop.f32.mrf.mxu1 }
 0x14a   : > { %4372 = vst [vmem:[#allocation7_spill] sm:$0xff] %v4110_v53  ;;  %v4112_v54 = vpop.f32.mrf.mxu0  ;;  %v827_v53 = vadd.f32 %v794_v12, %v4068_v40  ;;  %v1288_v40 = vadd.f32 %v3334_v21, %v4086_v13  ;;  %v1466_v48 = vadd.f32 %v4100_v35, %v1282_v33 }
 0x14b   : > { %4373 = vst [vmem:[#allocation8_spill] sm:$0xff] %v4112_v54  ;;  %v4114_v55 = vpop.f32.mrf.mxu1  ;;  %v1287_v54 = vadd.f32 %v3333_v30, %v1054_v7 }
 0x14c   : > { %4374 = vst [vmem:[#allocation9_spill] sm:$0xff] %v4114_v55  ;;  %v1283_v55 = vadd.f32 %v3329_v26, %v4078_v57  ;;  %v833_v57 = vadd.f32 %v3282_v20, %v4074_v50  ;;  %v1468_v50 = vadd.f32 %v4098_v16, %v1284_v34 }
 0x14d   : > { %v1471_v26 = vadd.f32 %v3361_v36, %v1287_v54 }
 0x14f   : > { %v4383_v25 = vld [vmem:[#allocation5_spill] sm:$0xff] }
 0x154   : > { %v3385_v56 = vpop.f32.mrf.mxu0 }
 0x155   : > { %v3413_v58 = vpop.f32.mrf.mxu1 }
 0x156   : > { %v1626_v59 = vpop.f32.mrf.mxu0 }
 0x157   : > { %v1890_v61 = vpop.f32.mrf.mxu1 }
 0x158   : > { %v3386_v63 = vpop.f32.mrf.mxu0 }
 0x159   : > { %v4116_v0 = vpop.f32.mrf.mxu1  ;;  %v1676_v36 = vadd.f32 %v3386_v63, %v1468_v50 }
 0x15a   : > { %4375 = vst [vmem:[#allocation10_spill] sm:$0xff] %v4116_v0  ;;  %v1629_v38 = vpop.f32.mrf.mxu0 }
 0x15b   : > { %v4118_v44 = vpop.f32.mrf.mxu1 }
 0x15c   : > { %4376 = vst [vmem:[#allocation11_spill] sm:$0xff] %v4118_v44  ;;  %v3389_v2 = vpop.f32.mrf.mxu0  ;;  %v832_v44 = vadd.f32 %v3281_v15, %v4070_v24  ;;  %v1465_v24 = vadd.f32 %v1418_v29, %v1281_v51  ;;  %v4382_v51 = vld [vmem:[#allocation6_spill] sm:$0xff] }
 0x15d   : > { %v3417_v3 = vpop.f32.mrf.mxu1  ;;  %v1679_v1 = vadd.f32 %v3389_v2, %v1471_v26  ;;  %v4385_v2 = vld [vmem:[#allocation8_spill] sm:$0xff] }
 0x15e   : > { %v1642_v4 = vpop.f32.mrf.mxu0  ;;  %v1058_v12 = vadd.f32 %v4088_v17, %v832_v44  ;;  %v1673_v13 = vadd.f32 %v1626_v59, %v1465_v24  ;;  %v1472_v17 = vadd.f32 %v3362_v41, %v1288_v40 }
 0x15f   : > { %v1906_v60 = vpop.f32.mrf.mxu1 }
 0x160   : > { %v3390_v5 = vpop.f32.mrf.mxu0  ;;  %v1291_v20 = vadd.f32 %v3337_v45, %v1058_v12  ;;  %v1937_v45 = vadd.f32 %v1890_v61, %v1673_v13 }
 0x161   : > { %v4120_v62 = vpop.f32.mrf.mxu1  ;;  %v1680_v21 = vadd.f32 %v3390_v5, %v1472_v17 }
 0x162   : > { %4377 = vst [vmem:[#allocation12_spill] sm:$0xff] %v4120_v62  ;;  %v1645_v8 = vpop.f32.mrf.mxu0  ;;  %v1285_v62 = vadd.f32 %v1250_v37, %v1052_v11  ;;  %v4380_v37 = vld [vmem:[#allocation3_spill] sm:$0xff] }
 0x163   : > { %v4122_v9 = vpop.f32.mrf.mxu1 }
 0x164   : > { %4378 = vst [vmem:[#allocation13_spill] sm:$0xff] %v4122_v9  ;;  %v3393_v10 = vpop.f32.mrf.mxu0  ;;  %v1467_v9 = vadd.f32 %v3357_v27, %v1283_v55  ;;  %v1469_v11 = vadd.f32 %v1434_v39, %v1285_v62  ;;  %v1059_v27 = vadd.f32 %v4092_v22, %v833_v57  ;;  %v1674_v22 = vadd.f32 %v1629_v38, %v1466_v48  ;;  %v4388_v57 = vld [vmem:[#allocation7_spill] sm:$0xff] }
 0x165   : > { %v4124_v6 = vpop.f32.mrf.mxu1 }
 0x166   : > { %4379 = vst [vmem:[#allocation14_spill] sm:$0xff] %v4124_v6  ;;  %v4128_v0 = vpop.f32.mrf.mxu0  ;;  %v1053_v6 = vadd.f32 %v1020_v14, %v827_v53  ;;  %v1675_v15 = vadd.f32 %v3385_v56, %v1467_v9  ;;  %v1056_v14 = vadd.f32 %v4090_v19, %v830_v47  ;;  %v1677_v29 = vadd.f32 %v1642_v4, %v1469_v11  ;;  %v4387_v9 = vld [vmem:[#allocation11_spill] sm:$0xff] }
 0x167   : > { %v4132_v52 = vpop.f32.mrf.mxu1  ;;  %v1943_v19 = vadd.f32 %v3417_v3, %v1679_v1  ;;  %v1292_v35 = vadd.f32 %v4382_v51, %v1059_v27  ;;  %v1290_v3 = vadd.f32 %v4385_v2, %v1057_v23 }
 0x168   : > { %v3394_v7 = vpop.f32.mrf.mxu0  ;;  %v1286_v18 = vadd.f32 %v1253_v42, %v1053_v6  ;;  %v1289_v32 = vadd.f32 %v1266_v49, %v1056_v14  ;;  %v1939_v30 = vadd.f32 %v3413_v58, %v1675_v15  ;;  %v4381_v42 = vld [vmem:[#allocation4_spill] sm:$0xff]  ;;  %v1941_v49 = vadd.f32 %v1906_v60, %v1677_v29  ;;  %v4384_v58 = vld [vmem:[#allocation10_spill] sm:$0xff] }
 0x169   : > { %v3422_v28 = vpop.f32.mrf.mxu1  ;;  %v1475_v34 = vadd.f32 %v4381_v42, %v1291_v20  ;;  %v1940_v59 = vadd.f32 %v4384_v58, %v1676_v36  ;;  %v4386_v61 = vld [vmem:[#allocation12_spill] sm:$0xff]  ;;  %v1938_v6 = vadd.f32 %v4387_v9, %v1674_v22  ;;  %v1476_v26 = vadd.f32 %v4388_v57, %v1292_v35 }
 0x16a   : > { %v1661_v31 = vpop.f32.mrf.mxu0  ;;  %v1470_v39 = vadd.f32 %v4380_v37, %v1286_v18  ;;  %v1473_v56 = vadd.f32 %v4383_v25, %v1289_v32  ;;  %v1944_v38 = vadd.f32 %v4386_v61, %v1680_v21  ;;  %v4390_v18 = vld [vmem:[#allocation9_spill] sm:$0xff] }
 0x16b   : > { %v1925_v43 = vpop.f32.mrf.mxu1  ;;  %v1683_v4 = vadd.f32 %v3393_v10, %v1475_v34  ;;  %v4389_v40 = vld [vmem:[#allocation13_spill] sm:$0xff]  ;;  %v1474_v1 = vadd.f32 %v4390_v18, %v1290_v3  ;;  %v1684_v50 = vadd.f32 %v3394_v7, %v1476_v26 }
 0x16c   : > { %v1678_v53 = vadd.f32 %v1645_v8, %v1470_v39  ;;  %v1681_v24 = vadd.f32 %v4128_v0, %v1473_v56 }
 0x16d   : > { %v4391_v14 = vld [vmem:[#allocation14_spill] sm:$0xff]  ;;  %v1682_v17 = vadd.f32 %v1661_v31, %v1474_v1  ;;  %v1948_v32 = vadd.f32 %v3422_v28, %v1684_v50 }
 0x16e   : > { %v1942_v12 = vadd.f32 %v4389_v40, %v1678_v53  ;;  %v1947_v10 = vadd.f32 %v4391_v14, %v1683_v4  ;;  %v1945_v27 = vadd.f32 %v4132_v52, %v1681_v24 }
 0x16f   : > { %v1946_v0 = vadd.f32 %v1925_v43, %v1682_v17 }
 0x174   : > { %v3441_v16 = vpop.f32.mrf.mxu0 }
 0x175   : > { %v4149_v41 = vadd.f32 %v3441_v16, %v1939_v30  ;;  %v3445_v47 = vpop.f32.mrf.mxu1 }
 0x176   : > { %v4152_v54 = vadd.f32 %v3445_v47, %v1943_v19  ;;  %v2073_v55 = vpop.f32.mrf.mxu0 }
 0x177   : > { %v2120_v63 = vadd.f32 %v2073_v55, %v1937_v45  ;;  %v2089_v44 = vpop.f32.mrf.mxu1 }
 0x178   : > { %v2124_v5 = vadd.f32 %v2089_v44, %v1941_v49  ;;  %v3442_v62 = vpop.f32.mrf.mxu0 }
 0x179   : > { %v2123_v60 = vadd.f32 %v3442_v62, %v1940_v59  ;;  %v3446_v8 = vpop.f32.mrf.mxu1 }
 0x17a   : > { %v2127_v33 = vadd.f32 %v3446_v8, %v1944_v38  ;;  %v2076_v15 = vpop.f32.mrf.mxu0 }
 0x17b   : > { %v2121_v46 = vadd.f32 %v2076_v15, %v1938_v6  ;;  %v2092_v11 = vpop.f32.mrf.mxu1 }
 0x17c   : > { %v2125_v20 = vadd.f32 %v2092_v11, %v1942_v12 }
 0x17d   : > { %v3449_v13 = vpop.f32.mrf.mxu1 }
 0x17e   : > { %v2130_v29 = vadd.f32 %v3449_v13, %v1947_v10 }
 0x17f   : > { %v2105_v48 = vpop.f32.mrf.mxu1 }
 0x180   : > { %v2128_v30 = vadd.f32 %v2105_v48, %v1945_v27  ;;  %2135 = sbr.rel (%p2996_p9) target bundleno = 395 (0x18b), region = 32 }
 0x181   : > { %v3450_v36 = vpop.f32.mrf.mxu1 }
 0x182   : > { %v2131_v23 = vadd.f32 %v3450_v36, %v1948_v32 }
 0x183   : > { %v2108_v37 = vpop.f32.mrf.mxu1 }
 0x184   : > { %v2129_v39 = vadd.f32 %v2108_v37, %v1946_v0 }
 0x185   : > { %2136 = vst [vmem:[#allocation2 + $0x30] sm:$0xff] %v2120_v63  ;;  %2137 = vst [vmem:[#allocation2] sm:$0xff] %v2121_v46 }
 0x186   : > { %2138 = vst [vmem:[#allocation2 + $0x58] sm:$0xff] %v4149_v41  ;;  %2139 = vst [vmem:[#allocation2 + $0x18] sm:$0xff] %v2123_v60 }
 0x187   : > { %2140 = vst [vmem:[#allocation2 + $0x50] sm:$0xff] %v2124_v5  ;;  %2141 = vst [vmem:[#allocation2 + $0x20] sm:$0xff] %v2125_v20 }
 0x188   : > { %2142 = vst [vmem:[#allocation2 + $0x8] sm:$0xff] %v4152_v54  ;;  %2143 = vst [vmem:[#allocation2 + $0x38] sm:$0xff] %v2127_v33 }
 0x189   : > { %2144 = vst [vmem:[#allocation2 + $0x28] sm:$0xff] %v2128_v30  ;;  %2145 = vst [vmem:[#allocation2 + $0x48] sm:$0xff] %v2129_v39 }
 0x18a   : > { %2146 = vst [vmem:[#allocation2 + $0x10] sm:$0xff] %v2130_v29  ;;  %2147 = vst [vmem:[#allocation2 + $0x40] sm:$0xff] %v2131_v23 }
 0x18b PF: > { %p2997_p10 = scmp.eq.s32.totalorder %s3685_s12, 0 }
 0x18d   : > { %2151 = sbr.rel (%p2997_p10) target bundleno = 411 (0x19b), region = 36 }
 0x192   : > { %v2152_v52 = vld [vmem:[#allocation2 + $0x30] sm:$0xff]  ;;  %v2153_v7 = vld [vmem:[#allocation2] sm:$0xff]  ;;  %v2154_v28 = vld [vmem:[#allocation2 + $0x58] sm:$0xff] }
 0x193   : > { %v2164_v31 = vadd.f32 %v2152_v52, %v2120_v63  ;;  %v2165_v43 = vadd.f32 %v2153_v7, %v2121_v46  ;;  %v2166_v19 = vadd.f32 %v2154_v28, %v4149_v41  ;;  %v2155_v21 = vld [vmem:[#allocation2 + $0x18] sm:$0xff]  ;;  %v2156_v16 = vld [vmem:[#allocation2 + $0x50] sm:$0xff]  ;;  %v2157_v42 = vld [vmem:[#allocation2 + $0x20] sm:$0xff] }
 0x194   : > { %v2167_v34 = vadd.f32 %v2155_v21, %v2123_v60  ;;  %v2168_v45 = vadd.f32 %v2156_v16, %v2124_v5  ;;  %v2169_v22 = vadd.f32 %v2157_v42, %v2125_v20  ;;  %v2158_v47 = vld [vmem:[#allocation2 + $0x8] sm:$0xff]  ;;  %v2159_v51 = vld [vmem:[#allocation2 + $0x38] sm:$0xff]  ;;  %v2162_v56 = vld [vmem:[#allocation2 + $0x10] sm:$0xff] }
 0x195   : > { %v2160_v35 = vld [vmem:[#allocation2 + $0x28] sm:$0xff]  ;;  %2176 = vst [vmem:[#allocation2 + $0x30] sm:$0xff] %v2164_v31  ;;  %2177 = vst [vmem:[#allocation2] sm:$0xff] %v2165_v43  ;;  %v2170_v49 = vadd.f32 %v2158_v47, %v4152_v54  ;;  %v2171_v53 = vadd.f32 %v2159_v51, %v2127_v33  ;;  %v2163_v58 = vld [vmem:[#allocation2 + $0x40] sm:$0xff]  ;;  %v2174_v59 = vadd.f32 %v2162_v56, %v2130_v29 }
 0x196   : > { %2178 = vst [vmem:[#allocation2 + $0x58] sm:$0xff] %v2166_v19  ;;  %v2172_v55 = vadd.f32 %v2160_v35, %v2128_v30  ;;  %v2161_v25 = vld [vmem:[#allocation2 + $0x48] sm:$0xff]  ;;  %2179 = vst [vmem:[#allocation2 + $0x18] sm:$0xff] %v2167_v34  ;;  %v2175_v63 = vadd.f32 %v2163_v58, %v2131_v23 }
 0x197   : > { %2180 = vst [vmem:[#allocation2 + $0x50] sm:$0xff] %v2168_v45  ;;  %2181 = vst [vmem:[#allocation2 + $0x20] sm:$0xff] %v2169_v22  ;;  %v2173_v41 = vadd.f32 %v2161_v25, %v2129_v39 }
 0x198   : > { %2182 = vst [vmem:[#allocation2 + $0x8] sm:$0xff] %v2170_v49  ;;  %2183 = vst [vmem:[#allocation2 + $0x38] sm:$0xff] %v2171_v53 }
 0x199   : > { %2184 = vst [vmem:[#allocation2 + $0x28] sm:$0xff] %v2172_v55  ;;  %2185 = vst [vmem:[#allocation2 + $0x48] sm:$0xff] %v2173_v41 }
 0x19a   : > { %2186 = vst [vmem:[#allocation2 + $0x10] sm:$0xff] %v2174_v59  ;;  %2187 = vst [vmem:[#allocation2 + $0x40] sm:$0xff] %v2175_v63 }
 0x19b PF: > { %p2998_p11 = scmp.ne.s32.totalorder %s3685_s12, 2 }
 0x19d   : > { %2191 = sbr.rel (%p2998_p11) target bundleno = 492 (0x1ec), region = 40 }
 0x1a2   : > { %v4172_v54 = vld [vmem:[#allocation2 + $0x30] sm:$0xff]  ;;  %v4174_v44 = vld [vmem:[#allocation2] sm:$0xff]  ;;  %v2264_v2 = vlaneseq  ;;  %v4176_v3 = vld [vmem:[#allocation2 + $0x58] sm:$0xff] }
 0x1a3   : > { %v3041_v61 = vpack.c.bf16 %v4174_v44, %v4172_v54  ;;  %v4180_v38 = vld [vmem:[#allocation2 + $0x18] sm:$0xff]  ;;  %v4182_v4 = vld [vmem:[#allocation2 + $0x50] sm:$0xff]  ;;  %v4184_v5 = vld [vmem:[#allocation2 + $0x20] sm:$0xff] }
 0x1a4   : > { %v4186_v62 = vshrl.u32 %v2264_v2, 7  ;;  %v3046_v9 = vpack.c.bf16 %v4180_v38, %v4176_v3  ;;  %v3051_v6 = vpack.c.bf16 %v4184_v5, %v4182_v4  ;;  %v4192_v60 = vld [vmem:[#allocation2 + $0x8] sm:$0xff]  ;;  %v4194_v8 = vld [vmem:[#allocation2 + $0x38] sm:$0xff]  ;;  %v4260_v22 = vld [vmem:[#allocation2 + $0x10] sm:$0xff] }
 0x1a5   : > { %3042 = vst [vmem:[%s3801_s22] sm:$0xff] %v3041_v61   ;;  %v3056_v57 = vpack.c.bf16 %v4194_v8, %v4192_v60  ;;  %v4236_v30 = vld [vmem:[#allocation2 + $0x28] sm:$0xff]  ;;  %v4262_v47 = vld [vmem:[#allocation2 + $0x40] sm:$0xff] }
 0x1a6   : > { %v2266_v26 = vadd.s32 8, %v4186_v62  ;;  %v4201_v40 = vmul.u32.u64.low 2863311531, %v4186_v62  ;;  %v4202_v12 = vmul.u32.u64.high 2863311531, %v4186_v62, %v4201_v40  ;;  %3068 = vst [vmem:[%s3801_s22 + $0x8] sm:$0xff] %v3046_v9   ;;  %v2267_v24 = vadd.s32 16, %v4186_v62  ;;  %3069 = vst [vmem:[%s3801_s22 + $0x10] sm:$0xff] %v3051_v6  }
 0x1a7   : > { %v2268_v33 = vadd.s32 24, %v4186_v62  ;;  %v2269_v15 = vadd.s32 32, %v4186_v62  ;;  %v4210_v46 = vadd.s32 40, %v4186_v62  ;;  %3070 = vst [vmem:[%s3801_s22 + $0x18] sm:$0xff] %v3056_v57   ;;  %v4214_v11 = vadd.s32 48, %v4186_v62  ;;  %v4238_v36 = vld [vmem:[#allocation2 + $0x48] sm:$0xff] }
 0x1a8   : > { %v4216_v18 = vmul.u32.u64.low 2863311531, %v2266_v26  ;;  %v4217_v1 = vmul.u32.u64.high 2863311531, %v2266_v26, %v4216_v18  ;;  %v4219_v14 = vmul.u32.u64.low 2863311531, %v2267_v24  ;;  %v4220_v10 = vmul.u32.u64.high 2863311531, %v2267_v24, %v4219_v14 }
 0x1a9   : > { %v4222_v50 = vmul.u32.u64.low 2863311531, %v2268_v33  ;;  %v4223_v20 = vmul.u32.u64.high 2863311531, %v2268_v33, %v4222_v50  ;;  %v4225_v13 = vmul.u32.u64.low 2863311531, %v2269_v15  ;;  %v4226_v27 = vmul.u32.u64.high 2863311531, %v2269_v15, %v4225_v13 }
 0x1aa   : > { %v2283_v17 = vshrl.u32 %v4202_v12, 3  ;;  %v4230_v29 = vmul.u32.u64.low 2863311531, %v4210_v46  ;;  %v4231_v48 = vmul.u32.u64.high 2863311531, %v4210_v46, %v4230_v29  ;;  %v4234_v32 = vadd.s32 56, %v4186_v62 }
 0x1ab   : > { %v4241_v0 = vmul.u32.u64.low 2863311531, %v4214_v11  ;;  %v4242_v23 = vmul.u32.u64.high 2863311531, %v4214_v11, %v4241_v0  ;;  %v3061_v37 = vpack.c.bf16 %v4238_v36, %v4236_v30  ;;  %v2294_v52 = vshrl.u32 %v4217_v1, 3 }
 0x1ac   : > { %v2284_v39 = vmul.u32 12, %v2283_v17  ;;  %v2305_v7 = vshrl.u32 %v4220_v10, 3  ;;  %v4249_v28 = vadd.s32 64, %v4186_v62  ;;  %v2316_v31 = vshrl.u32 %v4223_v20, 3 }
 0x1ad   : > { %v2327_v43 = vshrl.u32 %v4226_v27, 3  ;;  %v4254_v19 = vmul.u32.u64.low 2863311531, %v4234_v32  ;;  %v4255_v21 = vmul.u32.u64.high 2863311531, %v4234_v32, %v4254_v19  ;;  %3071 = vst [vmem:[%s3801_s22 + $0x20] sm:$0xff] %v3061_v37   ;;  %v2295_v42 = vmul.u32 12, %v2294_v52 }
 0x1ae   : > { %v2285_v16 = vsub.s32 %v4186_v62, %v2284_v39  ;;  %v2306_v34 = vmul.u32 12, %v2305_v7  ;;  %v2338_v45 = vshrl.u32 %v4231_v48, 3  ;;  %v2317_v51 = vmul.u32 12, %v2316_v31 }
 0x1af   : > { %v2328_v35 = vmul.u32 12, %v2327_v43  ;;  %v2349_v49 = vshrl.u32 %v4242_v23, 3  ;;  %v3066_v53 = vpack.c.bf16 %v4262_v47, %v4260_v22  ;;  %v2296_v55 = vsub.s32 %v2266_v26, %v2295_v42 }
 0x1b0   : > { %vm2409_vm5 = vcmp.ne.s32.totalorder %v2285_v16, 0  ;;  %vm2421_vm6 = vcmp.lt.s32.totalorder %v2285_v16, 0  ;;  %v2445_v25 = vadd.s32 12, %v2285_v16  ;;  %v2307_v56 = vsub.s32 %v2267_v24, %v2306_v34 }
 0x1b1   : > { %vm2433_vm7 = vmand %vm2421_vm6, %vm2409_vm5  ;;  %v2318_v58 = vsub.s32 %v2268_v33, %v2317_v51  ;;  %v2329_v41 = vsub.s32 %v2269_v15, %v2328_v35  ;;  %v2339_v59 = vmul.u32 12, %v2338_v45  ;;  %3072 = vst [vmem:[%s3801_s22 + $0x28] sm:$0xff] %v3066_v53   ;;  %vm2410_vm8 = vcmp.ne.s32.totalorder %v2296_v55, 0 }
 0x1b2   : > { %vm2422_vm9 = vcmp.lt.s32.totalorder %v2296_v55, 0  ;;  %v2446_v63 = vadd.s32 12, %v2296_v55  ;;  %v2457_v2 = vsel %vm2433_vm7, %v2445_v25, %v2285_v16  ;;  %vm2411_vm12 = vcmp.ne.s32.totalorder %v2307_v56, 0 }
 0x1b3   : > { %vm2434_vm10 = vmand %vm2422_vm9, %vm2410_vm8  ;;  %vm2469_vm11 = vcmp.lt.s32.totalorder %v2457_v2, 8  ;;  %vm2412_vm13 = vcmp.ne.s32.totalorder %v2318_v58, 0  ;;  %vm2423_vm14 = vcmp.lt.s32.totalorder %v2307_v56, 0  ;;  %v3711_v9 = vmov 0.0  }
 0x1b4   : > { %v2458_v61 = vsel %vm2434_vm10, %v2446_v63, %v2296_v55  ;;  %v3011_v6 = vsel %vm2469_vm11, 1.0, %v3711_v9  ;;  %vm2424_vm15 = vcmp.lt.s32.totalorder %v2318_v58, 0  ;;  %vm2435_vm0 = vmand %vm2423_vm14, %vm2411_vm12  ;;  %v2447_v57 = vadd.s32 12, %v2307_v56 }
 0x1b5   : > { %vm2470_vm1 = vcmp.lt.s32.totalorder %v2458_v61, 8  ;;  %v2505_v26 = vmul.f32 %v3011_v6, %v4172_v54  ;;  %vm2436_vm2 = vmand %vm2424_vm15, %vm2412_vm13  ;;  %v2448_v40 = vadd.s32 12, %v2318_v58  ;;  %v2340_v12 = vsub.s32 %v4210_v46, %v2339_v59 }
 0x1b6   : > { %v3012_v24 = vsel %vm2470_vm1, 1.0, %v3711_v9  ;;  %v2459_v33 = vsel %vm2435_vm0, %v2447_v57, %v2307_v56  ;;  %vm2413_vm3 = vcmp.ne.s32.totalorder %v2329_v41, 0  ;;  %vm2425_vm4 = vcmp.lt.s32.totalorder %v2329_v41, 0 }
 0x1b7   : > { %v2506_v15 = vmul.f32 %v3012_v24, %v4174_v44  ;;  %v2535_v18 = vmul.f32 %v2505_v26, %v4172_v54  ;;  %v2460_v1 = vsel %vm2436_vm2, %v2448_v40, %v2318_v58  ;;  %vm2471_vm5 = vcmp.lt.s32.totalorder %v2459_v33, 8  ;;  %vm4275_vm9 = vmand %vm2425_vm4, %vm2413_vm3 }
 0x1b8   : > { %vm2472_vm6 = vcmp.lt.s32.totalorder %v2460_v1, 8  ;;  %v3013_v14 = vsel %vm2471_vm5, 1.0, %v3711_v9  ;;  %vm2414_vm7 = vcmp.ne.s32.totalorder %v2340_v12, 0  ;;  %vm2426_vm8 = vcmp.lt.s32.totalorder %v2340_v12, 0 }
 0x1b9   : > { %v2517_v46 = vadd.f32 %v2506_v15, %v2505_v26  ;;  %v2536_v50 = vmul.f32 %v2506_v15, %v4174_v44  ;;  %v3014_v20 = vsel %vm2472_vm6, 1.0, %v3711_v9  ;;  %v2507_v13 = vmul.f32 %v3013_v14, %v4176_v3  ;;  %vm4282_vm10 = vmand %vm2426_vm8, %vm2414_vm7 }
 0x1ba   : > { %v2508_v27 = vmul.f32 %v3014_v20, %v4180_v38  ;;  %v2449_v17 = vadd.s32 12, %v2329_v41  ;;  %v2450_v29 = vadd.s32 12, %v2340_v12  ;;  %v2350_v48 = vmul.u32 12, %v2349_v49 }
 0x1bb   : > { %v2547_v0 = vadd.f32 %v2536_v50, %v2535_v18  ;;  %v2518_v23 = vadd.f32 %v2517_v46, %v2507_v13  ;;  %v2537_v37 = vmul.f32 %v2507_v13, %v4176_v3  ;;  %v2360_v39 = vshrl.u32 %v4255_v21, 3 }
 0x1bc   : > { %v2538_v44 = vmul.f32 %v2508_v27, %v4180_v38  ;;  %v2461_v52 = vsel %vm4275_vm9, %v2449_v17, %v2329_v41  ;;  %v2462_v7 = vsel %vm4282_vm10, %v2450_v29, %v2340_v12  ;;  %v2351_v31 = vsub.s32 %v4214_v11, %v2350_v48 }
 0x1bd   : > { %v2519_v43 = vadd.f32 %v2518_v23, %v2508_v27  ;;  %v2548_v19 = vadd.f32 %v2547_v0, %v2537_v37  ;;  %vm2473_vm11 = vcmp.lt.s32.totalorder %v2461_v52, 8  ;;  %vm2474_vm12 = vcmp.lt.s32.totalorder %v2462_v7, 8 }
 0x1be   : > { %v3015_v16 = vsel %vm2473_vm11, 1.0, %v3711_v9  ;;  %v3016_v3 = vsel %vm2474_vm12, 1.0, %v3711_v9  ;;  %v2361_v42 = vmul.u32 12, %v2360_v39  ;;  %vm2415_vm13 = vcmp.ne.s32.totalorder %v2351_v31, 0 }
 0x1bf   : > { %v2549_v21 = vadd.f32 %v2548_v19, %v2538_v44  ;;  %v2509_v38 = vmul.f32 %v3015_v16, %v4182_v4  ;;  %v2510_v34 = vmul.f32 %v3016_v3, %v4184_v5  ;;  %vm2427_vm14 = vcmp.lt.s32.totalorder %v2351_v31, 0 }
 0x1c0   : > { %v2362_v45 = vsub.s32 %v4234_v32, %v2361_v42  ;;  %vm2439_vm15 = vmand %vm2427_vm14, %vm2415_vm13  ;;  %v2451_v11 = vadd.s32 12, %v2351_v31  ;;  %v4301_v51 = vmul.u32.u64.low 2863311531, %v4249_v28  ;;  %v4302_v35 = vmul.u32.u64.high 2863311531, %v4249_v28, %v4301_v51 }
 0x1c1   : > { %v2520_v49 = vadd.f32 %v2519_v43, %v2509_v38  ;;  %v2539_v53 = vmul.f32 %v2509_v38, %v4182_v4  ;;  %v2274_v55 = vadd.s32 72, %v4186_v62  ;;  %v2540_v58 = vmul.f32 %v2510_v34, %v4184_v5 }
 0x1c2   : > { %vm2416_vm0 = vcmp.ne.s32.totalorder %v2362_v45, 0  ;;  %vm2428_vm1 = vcmp.lt.s32.totalorder %v2362_v45, 0  ;;  %v2452_v25 = vadd.s32 12, %v2362_v45  ;;  %v2463_v56 = vsel %vm2439_vm15, %v2451_v11, %v2351_v31 }
 0x1c3   : > { %v2550_v41 = vadd.f32 %v2549_v21, %v2539_v53  ;;  %vm2440_vm2 = vmand %vm2428_vm1, %vm2416_vm0  ;;  %vm2475_vm3 = vcmp.lt.s32.totalorder %v2463_v56, 8  ;;  %v2371_v63 = vshrl.u32 %v4302_v35, 3  ;;  %v2275_v2 = vadd.s32 80, %v4186_v62 }
 0x1c4   : > { %v2464_v32 = vsel %vm2440_vm2, %v2452_v25, %v2362_v45  ;;  %v3017_v59 = vsel %vm2475_vm3, 1.0, %v3711_v9  ;;  %v2521_v61 = vadd.f32 %v2520_v49, %v2510_v34  ;;  %v2276_v33 = vadd.s32 88, %v4186_v62 }
 0x1c5   : > { %vm2476_vm4 = vcmp.lt.s32.totalorder %v2464_v32, 8  ;;  %v2511_v4 = vmul.f32 %v3017_v59, %v4192_v60  ;;  %v2372_v57 = vmul.u32 12, %v2371_v63  ;;  %v2551_v5 = vadd.f32 %v2550_v41, %v2540_v58 }
 0x1c6   : > { %v3018_v6 = vsel %vm2476_vm4, 1.0, %v3711_v9  ;;  %v4312_v26 = vmul.u32.u64.low 2863311531, %v2274_v55  ;;  %v4313_v40 = vmul.u32.u64.high 2863311531, %v2274_v55, %v4312_v26 }
 0x1c7   : > { %v2512_v12 = vmul.f32 %v3018_v6, %v4194_v8  ;;  %v2541_v24 = vmul.f32 %v2511_v4, %v4192_v60  ;;  %v2373_v15 = vsub.s32 %v4249_v28, %v2372_v57  ;;  %v2522_v14 = vadd.f32 %v2521_v61, %v2511_v4 }
 0x1c8   : > { %v4319_v18 = vmul.u32.u64.low 2863311531, %v2275_v2  ;;  %v4320_v1 = vmul.u32.u64.high 2863311531, %v2275_v2, %v4319_v18  ;;  %v2382_v10 = vshrl.u32 %v4313_v40, 3 }
 0x1c9   : > { %vm2417_vm5 = vcmp.ne.s32.totalorder %v2373_v15, 0  ;;  %vm2429_vm6 = vcmp.lt.s32.totalorder %v2373_v15, 0  ;;  %v2453_v46 = vadd.s32 12, %v2373_v15  ;;  %v2542_v50 = vmul.f32 %v2512_v12, %v4194_v8 }
 0x1ca   : > { %v2552_v20 = vadd.f32 %v2551_v5, %v2541_v24  ;;  %vm2441_vm7 = vmand %vm2429_vm6, %vm2417_vm5  ;;  %v4324_v13 = vmul.u32.u64.low 2863311531, %v2276_v33  ;;  %v4325_v54 = vmul.u32.u64.high 2863311531, %v2276_v33, %v4324_v13  ;;  %v2383_v60 = vmul.u32 12, %v2382_v10 }
 0x1cb   : > { %v2465_v62 = vsel %vm2441_vm7, %v2453_v46, %v2373_v15  ;;  %v2393_v28 = vshrl.u32 %v4320_v1, 3  ;;  %v2523_v48 = vadd.f32 %v2522_v14, %v2512_v12 }
 0x1cc   : > { %vm2477_vm8 = vcmp.lt.s32.totalorder %v2465_v62, 8  ;;  %v2384_v27 = vsub.s32 %v2274_v55, %v2383_v60  ;;  %v2553_v0 = vadd.f32 %v2552_v20, %v2542_v50  ;;  %v2404_v8 = vshrl.u32 %v4325_v54, 3 }
 0x1cd   : > { %v3019_v17 = vsel %vm2477_vm8, 1.0, %v3711_v9  ;;  %v2394_v29 = vmul.u32 12, %v2393_v28 }
 0x1ce   : > { %v2513_v23 = vmul.f32 %v3019_v17, %v4236_v30  ;;  %vm2418_vm9 = vcmp.ne.s32.totalorder %v2384_v27, 0  ;;  %vm2430_vm10 = vcmp.lt.s32.totalorder %v2384_v27, 0  ;;  %v2454_v37 = vadd.s32 12, %v2384_v27 }
 0x1cf   : > { %v2395_v39 = vsub.s32 %v2275_v2, %v2394_v29  ;;  %vm2442_vm11 = vmand %vm2430_vm10, %vm2418_vm9  ;;  %v2405_v52 = vmul.u32 12, %v2404_v8 }
 0x1d0   : > { %v2543_v44 = vmul.f32 %v2513_v23, %v4236_v30  ;;  %v2466_v7 = vsel %vm2442_vm11, %v2454_v37, %v2384_v27  ;;  %v2524_v43 = vadd.f32 %v2523_v48, %v2513_v23 }
 0x1d1   : > { %vm2419_vm12 = vcmp.ne.s32.totalorder %v2395_v39, 0  ;;  %vm2431_vm13 = vcmp.lt.s32.totalorder %v2395_v39, 0  ;;  %v2455_v31 = vadd.s32 12, %v2395_v39  ;;  %vm2478_vm14 = vcmp.lt.s32.totalorder %v2466_v7, 8 }
 0x1d2   : > { %v2406_v19 = vsub.s32 %v2276_v33, %v2405_v52  ;;  %vm2443_vm15 = vmand %vm2431_vm13, %vm2419_vm12  ;;  %v3020_v16 = vsel %vm2478_vm14, 1.0, %v3711_v9  ;;  %v2554_v3 = vadd.f32 %v2553_v0, %v2543_v44 }
 0x1d3   : > { %v2467_v42 = vsel %vm2443_vm15, %v2455_v31, %v2395_v39  ;;  %v2514_v21 = vmul.f32 %v3020_v16, %v4238_v36 }
 0x1d4   : > { %vm2420_vm0 = vcmp.ne.s32.totalorder %v2406_v19, 0  ;;  %vm2432_vm1 = vcmp.lt.s32.totalorder %v2406_v19, 0  ;;  %v2456_v38 = vadd.s32 12, %v2406_v19  ;;  %vm2479_vm3 = vcmp.lt.s32.totalorder %v2467_v42, 8 }
 0x1d5   : > { %vm2444_vm2 = vmand %vm2432_vm1, %vm2420_vm0  ;;  %v2525_v30 = vadd.f32 %v2524_v43, %v2514_v21  ;;  %v2544_v34 = vmul.f32 %v2514_v21, %v4238_v36  ;;  %v3021_v11 = vsel %vm2479_vm3, 1.0, %v3711_v9 }
 0x1d6   : > { %v2468_v45 = vsel %vm2444_vm2, %v2456_v38, %v2406_v19  ;;  %v2515_v51 = vmul.f32 %v3021_v11, %v4260_v22 }
 0x1d7   : > { %vm2480_vm4 = vcmp.lt.s32.totalorder %v2468_v45, 8  ;;  %v2555_v35 = vadd.f32 %v2554_v3, %v2544_v34 }
 0x1d8   : > { %v3022_v49 = vsel %vm2480_vm4, 1.0, %v3711_v9  ;;  %v2526_v55 = vadd.f32 %v2525_v30, %v2515_v51  ;;  %v2545_v25 = vmul.f32 %v2515_v51, %v4260_v22 }
 0x1d9   : > { %v2516_v53 = vmul.f32 %v3022_v49, %v4262_v47 }
 0x1da   : > { %v2556_v58 = vadd.f32 %v2555_v35, %v2545_v25 }
 0x1db   : > { %v2546_v56 = vmul.f32 %v2516_v53, %v4262_v47  ;;  %v2527_v36 = vadd.f32 %v2526_v55, %v2516_v53 }
 0x1dd   : > { %v2528_v41 = vrot.slane %v2527_v36, 4  ;;  %v2557_v32 = vadd.f32 %v2556_v58, %v2546_v56 }
 0x1df   : > { %v2529_v59 = vadd.f32 %v2528_v41, %v2527_v36  ;;  %v2558_v63 = vrot.slane %v2557_v32, 4 }
 0x1e1   : > { %v2530_v2 = vrot.slane %v2529_v59, 2  ;;  %v2559_v61 = vadd.f32 %v2558_v63, %v2557_v32 }
 0x1e3   : > { %v2531_v4 = vadd.f32 %v2530_v2, %v2529_v59  ;;  %v2560_v6 = vrot.slane %v2559_v61, 2 }
 0x1e5   : > { %v2532_v9 = vrot.slane %v2531_v4, 1  ;;  %v2561_v57 = vadd.f32 %v2560_v6, %v2559_v61 }
 0x1e7   : > { %v2533_v26 = vadd.f32 %v2532_v9, %v2531_v4  ;;  %v2562_v40 = vrot.slane %v2561_v57, 1 }
 0x1e9   : > { %2534 = vst [vmem:[%s3807_s25] sm:$0x1] %v2533_v26  ;;  %v2563_v22 = vadd.f32 %v2562_v40, %v2561_v57 }
 0x1eb   : > { %2564 = vst [vmem:[%s3807_s25 + $0x1] sm:$0x1] %v2563_v22 }
 0x1ec PF: > { %s14_s18 = sadd.s32 1, %s3709_s18   ;;  %s4396_s12 = smov %s3697_s15 }
 0x1ed   : > { %p11_p12 = scmp.ge.s32.totalorder %s14_s18, 50   ;;  %s4397_s13 = smov %s3701_s16 }
 0x1ee   : > { %s4398_s14 = smov %s3705_s17  ;;  %s4399_s15 = smov %s4403_s19 }
 0x1ef   : > { %s4400_s16 = smov %s4407_s20  ;;  %s4401_s17 = smov %s4411_s21 }
 0x1f0   :  { %13 = sbr.rel (!%p11_p12) target bundleno = 4 (0x4), region = 91 }

</bundles_post_ra>
